<compile_context>
chip_gen: v5e
topology: v5e:2x2
jax: 0.10.0
libtpu: 0.0.40
codegen_flags: <defaults>
</compile_context>

<pallas_src>
import math
import functools

import jax
import jax.numpy as jnp
from jax.experimental import pallas as pl


# ---------------------------------------------------------------------------
# In-kernel helpers (traced inside the Pallas kernel body).
# ---------------------------------------------------------------------------
def _layernorm(x, g, b, eps=1e-5):
    mu = jnp.mean(x, axis=-1, keepdims=True)
    xc = x - mu
    var = jnp.mean(xc * xc, axis=-1, keepdims=True)
    return xc * jax.lax.rsqrt(var + eps) * g + b


def _softmax(s):
    s = s - jnp.max(s, axis=-1, keepdims=True)
    p = jnp.exp(s)
    return p * pl.reciprocal(jnp.sum(p, axis=-1, keepdims=True), approx=True)


def _act_quant(x, eps=1e-5):
    """BitNet-b1.58 per-token 8-bit abs-max activation fake-quantization."""
    gamma = jnp.maximum(jnp.max(jnp.abs(x), axis=-1, keepdims=True), eps)
    inv_gamma = pl.reciprocal(gamma, approx=True)
    q = jnp.clip(jnp.round(x * (127.0 * inv_gamma)), -128.0, 127.0)
    return q * (gamma * (1.0 / 127.0))


def _erf(z):
    """Abramowitz & Stegun 7.1.26 polynomial erf (max abs err ~1.5e-7)."""
    a1, a2, a3, a4, a5 = (0.254829592, -0.284496736, 1.421413741,
                          -1.453152027, 1.061405429)
    p = 0.3275911
    az = jnp.abs(z)
    t = 1.0 / (1.0 + p * az)
    poly = ((((a5 * t + a4) * t + a3) * t + a2) * t + a1) * t
    e = 1.0 - poly * jnp.exp(-az * az)
    return jnp.where(z < 0.0, -e, e)


def _gelu_exact(x):
    """Exact (erf-based) GELU, matching torch.nn.GELU() default."""
    return x * 0.5 * (1.0 + _erf(x * (1.0 / math.sqrt(2.0))))


def _attn_core(q2, k2, v2, wo, bo, heads, B, Nq, Nk):
    """Multi-head scaled-dot-product attention + single output projection.

    q2: (B*Nq, D), k2/v2: (B*Nk, D), wo: (D, D), bo: (1, D).
    Per-head contractions use single-batch-dim einsums (the Mosaic-safe
    pattern); the head outputs are lane-concatenated once so the output
    projection is one (B*Nq, D) @ (D, D) matmul (no per-head K=dh matmuls,
    no axis-0 concatenation of Q/K/V head blocks).
    """
    D = q2.shape[-1]
    dh = D // heads
    scale = 1.0 / math.sqrt(dh)

    q3 = q2.reshape(B, Nq, D)
    k3 = k2.reshape(B, Nk, D)
    v3 = v2.reshape(B, Nk, D)

    o_heads = []
    for h in range(heads):                       # static unroll over heads
        lo, hi = h * dh, (h + 1) * dh
        s = jnp.einsum("bqd,bkd->bqk", q3[:, :, lo:hi], k3[:, :, lo:hi],
                       preferred_element_type=jnp.float32) * scale
        p = _softmax(s)
        o_heads.append(jnp.einsum("bqk,bkd->bqd", p, v3[:, :, lo:hi],
                                  preferred_element_type=jnp.float32))

    o2 = jnp.concatenate(o_heads, axis=-1).reshape(B * Nq, D)
    return jnp.dot(o2, wo, preferred_element_type=jnp.float32) + bo


# Order of stacked parameter arrays as seen by the kernel.
PARAM_KEYS = [
    "sa_wqkv", "sa_bqkv", "sa_wo", "sa_bo",
    "ca_wq", "ca_bq", "ca_wkv", "ca_bkv", "ca_wo", "ca_bo",
    "ln1_g", "ln1_b", "ln2_g", "ln2_b", "ln3_g", "ln3_b",
    "ff_w1", "ff_w2",
]


# ---------------------------------------------------------------------------
# Fused Pallas kernel: pos-emb add + all decoder layers, whole batch at once.
# ---------------------------------------------------------------------------
def fused_decoder_kernel(depth, heads, B, N, M, apply_immutable, *refs):
    refs = list(refs)
    x_ref, ctx_ref, pos_ref = refs[:3]
    rest = refs[3:]
    if apply_immutable:
        imm_ref, rest = rest[0], rest[1:]
    (sa_wqkv_ref, sa_bqkv_ref, sa_wo_ref, sa_bo_ref,
     ca_wq_ref, ca_bq_ref, ca_wkv_ref, ca_bkv_ref, ca_wo_ref, ca_bo_ref,
     ln1_g_ref, ln1_b_ref, ln2_g_ref, ln2_b_ref, ln3_g_ref, ln3_b_ref,
     ff_w1_ref, ff_w2_ref, out_ref) = rest

    D = x_ref.shape[-1]

    # AbsolutePositionalEmbedding: emb[:N] * dim**-0.5 (pos pre-tiled to
    # (B*N, D) in the wrapper; the scale stays in-kernel).
    x2 = x_ref[...] + pos_ref[...] * (D ** -0.5)
    ctx2 = ctx_ref[...]

    if apply_immutable:
        frozen = imm_ref[...] > 0.0          # (B*N, D), computed ONCE
        x_frozen = x2                        # snapshot right after pos-emb add

    # depth=2 here: static unroll keeps everything in VMEM/vregs.
    # TODO(synk): switch to lax.fori_loop + dynamic ref[l] indexing if depth grows.
    for l in range(depth):
        # ---- self attention (fused QKV matmul) + residual + LayerNorm 1 ----
        qkv = jnp.dot(x2, sa_wqkv_ref[l],
                      preferred_element_type=jnp.float32) + sa_bqkv_ref[l]
        a = _attn_core(qkv[:, :D], qkv[:, D:2 * D], qkv[:, 2 * D:],
                       sa_wo_ref[l], sa_bo_ref[l], heads, B, N, N)
        x2 = _layernorm(a + x2, ln1_g_ref[l], ln1_b_ref[l])

        # ---- cross attention (fused KV from context) + residual + LN 2 ----
        q = jnp.dot(x2, ca_wq_ref[l],
                    preferred_element_type=jnp.float32) + ca_bq_ref[l]
        kv = jnp.dot(ctx2, ca_wkv_ref[l],
                     preferred_element_type=jnp.float32) + ca_bkv_ref[l]
        c = _attn_core(q, kv[:, :D], kv[:, D:],
                       ca_wo_ref[l], ca_bo_ref[l], heads, B, N, M)
        x2 = _layernorm(c + x2, ln2_g_ref[l], ln2_b_ref[l])

        # ---- BitFeedForward (BitLinear -> GELU -> BitLinear) + res + LN 3 ----
        # TODO(synk): int8 MXU path for v5e/v6e (ternary weights / int8 acts).
        h = jnp.dot(_act_quant(x2), ff_w1_ref[l],
                    preferred_element_type=jnp.float32)
        h = _gelu_exact(h)
        y = jnp.dot(_act_quant(h), ff_w2_ref[l],
                    preferred_element_type=jnp.float32)
        x2 = _layernorm(y + x2, ln3_g_ref[l], ln3_b_ref[l])

        if apply_immutable:
            # torch: x[:, immutable, :] = temp   (temp captured before layer 0)
            x2 = jnp.where(frozen, x_frozen, x2)

    out_ref[...] = x2.astype(out_ref.dtype)


# ---------------------------------------------------------------------------
# Full module forward: one grid-less pallas_call, everything resident in VMEM.
# ---------------------------------------------------------------------------
def bitnet_transformer_decoder(x, context, params, heads, immutable=None):
    B, N, D = x.shape
    M = context.shape[1]
    depth = int(params["sa_wqkv"].shape[0])
    Dff = int(params["ff_w1"].shape[-1])
    dh = D // heads

    # Wrapper-side shape plumbing (free XLA metadata; keeps the kernel 2-D).
    x2 = x.reshape(B * N, D)
    ctx2 = context.reshape(B * M, D)
    pos = jnp.tile(params["pos_emb"][:N], (B, 1))          # (B*N, D)

    imm_seq = tuple(immutable) if immutable is not None else ()
    apply_imm = len(imm_seq) > 0

    inputs = [x2, ctx2, pos]
    if apply_imm:
        idx = jnp.asarray(imm_seq, dtype=jnp.int32)
        mask_n = jnp.zeros((N,), jnp.float32).at[idx].set(1.0)
        imm = jnp.broadcast_to(jnp.tile(mask_n, (B,))[:, None], (B * N, D))
        inputs.append(imm)                                  # only when used
    inputs += [params[k] for k in PARAM_KEYS]

    # Advisory cost hint so XLA schedules this micro-kernel sensibly.
    BN = B * N
    flops_layer = (
        2 * BN * D * (3 * D)             # fused self-attn QKV projection
        + 4 * B * heads * N * N * dh     # self-attn scores + attn @ V
        + 2 * BN * D * D                 # self-attn output projection
        + 2 * BN * D * D                 # cross-attn Q projection
        + 2 * B * M * D * (2 * D)        # fused cross-attn KV projection
        + 4 * B * heads * N * M * dh     # cross-attn scores + attn @ V
        + 2 * BN * D * D                 # cross-attn output projection
        + 2 * BN * D * Dff * 2           # Bit-FFN (two matmuls)
    )
    transc_layer = B * heads * N * (N + M) + BN * Dff + 3 * BN
    bytes_accessed = sum(int(a.size) * a.dtype.itemsize for a in inputs) + BN * D * 4
    cost = pl.CostEstimate(flops=int(depth * flops_layer),
                           transcendentals=int(depth * transc_layer),
                           bytes_accessed=int(bytes_accessed))

    # TODO(synk): on v7x, add grid=(B,) with dimension_semantics=("parallel",)
    #   to use the second TensorCore, and per-layer weight pipelining once
    #   depth*dim grows past the 64 MiB VMEM budget.
    out2 = pl.pallas_call(
        functools.partial(fused_decoder_kernel, depth, heads, B, N, M, apply_imm),
        out_shape=jax.ShapeDtypeStruct((B * N, D), x.dtype),
        cost_estimate=cost,
    )(*inputs)
    return out2.reshape(B, N, D)


# ---------------------------------------------------------------------------
# Parameter init (deterministic, PyTorch-default-like), plain JAX glue.
# Weights are packed once here into the layout the fused kernel expects.
# ---------------------------------------------------------------------------
def _linear_init(key, fan_in, fan_out):
    kw, kb = jax.random.split(key)
    bound = 1.0 / math.sqrt(fan_in)
    w = jax.random.uniform(kw, (fan_in, fan_out), jnp.float32, -bound, bound)
    b = jax.random.uniform(kb, (1, fan_out), jnp.float32, -bound, bound)
    return w, b


def _weight_quant(w, eps=1e-5):
    """BitNet-b1.58 ternary abs-mean weight fake-quantization (static)."""
    scale = jnp.maximum(jnp.mean(jnp.abs(w)), eps)
    return jnp.clip(jnp.round(w / scale), -1.0, 1.0) * scale


def init_params(key, dim, heads, depth, ff_mult, max_seq_len):
    assert dim % heads == 0
    keys = jax.random.split(key, depth + 1)
    pos_emb = jax.random.normal(keys[0], (max_seq_len, dim), jnp.float32)

    per_layer = {k: [] for k in PARAM_KEYS}
    for d in range(depth):
        lk = jax.random.split(keys[d + 1], 10)
        sa_wq, sa_bq = _linear_init(lk[0], dim, dim)
        sa_wk, sa_bk = _linear_init(lk[1], dim, dim)
        sa_wv, sa_bv = _linear_init(lk[2], dim, dim)
        sa_wo, sa_bo = _linear_init(lk[3], dim, dim)
        ca_wq, ca_bq = _linear_init(lk[4], dim, dim)
        ca_wk, ca_bk = _linear_init(lk[5], dim, dim)
        ca_wv, ca_bv = _linear_init(lk[6], dim, dim)
        ca_wo, ca_bo = _linear_init(lk[7], dim, dim)
        ff1, _ = _linear_init(lk[8], dim, dim * ff_mult)
        ff2, _ = _linear_init(lk[9], dim * ff_mult, dim)

        per_layer["sa_wqkv"].append(jnp.concatenate([sa_wq, sa_wk, sa_wv], axis=1))
        per_layer["sa_bqkv"].append(jnp.concatenate([sa_bq, sa_bk, sa_bv], axis=1))
        per_layer["sa_wo"].append(sa_wo)                   # plain (D, D)
        per_layer["sa_bo"].append(sa_bo)
        per_layer["ca_wq"].append(ca_wq)
        per_layer["ca_bq"].append(ca_bq)
        per_layer["ca_wkv"].append(jnp.concatenate([ca_wk, ca_wv], axis=1))
        per_layer["ca_bkv"].append(jnp.concatenate([ca_bk, ca_bv], axis=1))
        per_layer["ca_wo"].append(ca_wo)                   # plain (D, D)
        per_layer["ca_bo"].append(ca_bo)
        for i in (1, 2, 3):
            per_layer[f"ln{i}_g"].append(jnp.ones((1, dim), jnp.float32))
            per_layer[f"ln{i}_b"].append(jnp.zeros((1, dim), jnp.float32))
        per_layer["ff_w1"].append(_weight_quant(ff1))      # BitLinear: no bias
        per_layer["ff_w2"].append(_weight_quant(ff2))

    params = {k: jnp.stack(v, axis=0) for k, v in per_layer.items()}
    params["pos_emb"] = pos_emb
    return params


if __name__ == "__main__":
    dim, heads, depth, ff_mult = 32, 4, 2, 2
    B, N, M = 2, 8, 8
    max_seq_len = 64 ** 2 + 1

    key = jax.random.PRNGKey(0)
    kx, kc, kp = jax.random.split(key, 3)
    params = init_params(kp, dim, heads, depth, ff_mult, max_seq_len)

    x = jax.random.normal(kx, (B, N, dim), dtype=jnp.float32)
    context = jax.random.normal(kc, (B, M, dim), dtype=jnp.float32)

    out = bitnet_transformer_decoder(x, context, params, heads, immutable=None)
    out = jax.block_until_ready(out)

    assert out.shape == (B, N, dim), out.shape
    assert bool(jnp.all(jnp.isfinite(out)))
    print("KERNEL_OK")
</pallas_src>

<mosaic_0001>
module attributes {stable_mosaic.version = 11 : i64} {
  func.func @fused_decoder_kernel(%arg0: memref<16x32xf32, #tpu.memory_space<vmem>>, %arg1: memref<16x32xf32, #tpu.memory_space<vmem>>, %arg2: memref<16x32xf32, #tpu.memory_space<vmem>>, %arg3: memref<2x32x96xf32, #tpu.memory_space<vmem>>, %arg4: memref<2x1x96xf32, #tpu.memory_space<vmem>>, %arg5: memref<2x32x32xf32, #tpu.memory_space<vmem>>, %arg6: memref<2x1x32xf32, #tpu.memory_space<vmem>>, %arg7: memref<2x32x32xf32, #tpu.memory_space<vmem>>, %arg8: memref<2x1x32xf32, #tpu.memory_space<vmem>>, %arg9: memref<2x32x64xf32, #tpu.memory_space<vmem>>, %arg10: memref<2x1x64xf32, #tpu.memory_space<vmem>>, %arg11: memref<2x32x32xf32, #tpu.memory_space<vmem>>, %arg12: memref<2x1x32xf32, #tpu.memory_space<vmem>>, %arg13: memref<2x1x32xf32, #tpu.memory_space<vmem>>, %arg14: memref<2x1x32xf32, #tpu.memory_space<vmem>>, %arg15: memref<2x1x32xf32, #tpu.memory_space<vmem>>, %arg16: memref<2x1x32xf32, #tpu.memory_space<vmem>>, %arg17: memref<2x1x32xf32, #tpu.memory_space<vmem>>, %arg18: memref<2x1x32xf32, #tpu.memory_space<vmem>>, %arg19: memref<2x32x64xf32, #tpu.memory_space<vmem>>, %arg20: memref<2x64x32xf32, #tpu.memory_space<vmem>>, %arg21: memref<16x32xf32, #tpu.memory_space<vmem>>) attributes {dimension_semantics = [], scalar_prefetch = 0 : i64, scratch_operands = 0 : i64, tpu.core_type = #tpu.core_type<tc>} {
    %c0 = arith.constant 0 : index
    %c0_0 = arith.constant 0 : index
    %0 = vector.load %arg0[%c0, %c0_0] : memref<16x32xf32, #tpu.memory_space<vmem>>, vector<16x32xf32>
    %c0_1 = arith.constant 0 : index
    %c0_2 = arith.constant 0 : index
    %1 = vector.load %arg2[%c0_1, %c0_2] : memref<16x32xf32, #tpu.memory_space<vmem>>, vector<16x32xf32>
    %cst = arith.constant 0.176776692 : f32
    %2 = vector.broadcast %cst : f32 to vector<16x32xf32>
    %3 = arith.mulf %1, %2 : vector<16x32xf32>
    %4 = arith.addf %0, %3 : vector<16x32xf32>
    %c0_3 = arith.constant 0 : index
    %c0_4 = arith.constant 0 : index
    %5 = vector.load %arg1[%c0_3, %c0_4] : memref<16x32xf32, #tpu.memory_space<vmem>>, vector<16x32xf32>
    %c0_5 = arith.constant 0 : index
    %c0_6 = arith.constant 0 : index
    %c0_7 = arith.constant 0 : index
    %6 = vector.load %arg3[%c0_5, %c0_6, %c0_7] : memref<2x32x96xf32, #tpu.memory_space<vmem>>, vector<1x32x96xf32>
    %7 = vector.shape_cast %6 : vector<1x32x96xf32> to vector<32x96xf32>
    %cst_8 = arith.constant dense<0.000000e+00> : vector<16x96xf32>
    %8 = tpu.matmul %4, %7, %cst_8 {dimension_numbers = #tpu.dot_dimension_numbers<[1], [0], [0], [1], [0, 0, 1, 1], [], []>} : vector<16x32xf32>, vector<32x96xf32>, vector<16x96xf32> -> vector<16x96xf32>
    %c0_9 = arith.constant 0 : index
    %c0_10 = arith.constant 0 : index
    %c0_11 = arith.constant 0 : index
    %9 = vector.load %arg4[%c0_9, %c0_10, %c0_11] : memref<2x1x96xf32, #tpu.memory_space<vmem>>, vector<1x1x96xf32>
    %10 = vector.shape_cast %9 : vector<1x1x96xf32> to vector<1x96xf32>
    %11 = vector.broadcast %10 : vector<1x96xf32> to vector<16x96xf32>
    %12 = arith.addf %8, %11 : vector<16x96xf32>
    %13 = vector.extract_strided_slice %12 {offsets = [0, 0], sizes = [16, 32], strides = [1, 1]} : vector<16x96xf32> to vector<16x32xf32>
    %14 = vector.extract_strided_slice %12 {offsets = [0, 32], sizes = [16, 32], strides = [1, 1]} : vector<16x96xf32> to vector<16x32xf32>
    %15 = vector.extract_strided_slice %12 {offsets = [0, 64], sizes = [16, 32], strides = [1, 1]} : vector<16x96xf32> to vector<16x32xf32>
    %c0_12 = arith.constant 0 : index
    %c0_13 = arith.constant 0 : index
    %c0_14 = arith.constant 0 : index
    %16 = vector.load %arg5[%c0_12, %c0_13, %c0_14] : memref<2x32x32xf32, #tpu.memory_space<vmem>>, vector<1x32x32xf32>
    %17 = vector.shape_cast %16 : vector<1x32x32xf32> to vector<32x32xf32>
    %c0_15 = arith.constant 0 : index
    %c0_16 = arith.constant 0 : index
    %c0_17 = arith.constant 0 : index
    %18 = vector.load %arg6[%c0_15, %c0_16, %c0_17] : memref<2x1x32xf32, #tpu.memory_space<vmem>>, vector<1x1x32xf32>
    %19 = vector.shape_cast %18 : vector<1x1x32xf32> to vector<1x32xf32>
    %20 = vector.shape_cast %13 : vector<16x32xf32> to vector<2x8x32xf32>
    %21 = vector.shape_cast %14 : vector<16x32xf32> to vector<2x8x32xf32>
    %22 = vector.shape_cast %15 : vector<16x32xf32> to vector<2x8x32xf32>
    %23 = vector.extract_strided_slice %20 {offsets = [0, 0, 0], sizes = [2, 8, 8], strides = [1, 1, 1]} : vector<2x8x32xf32> to vector<2x8x8xf32>
    %24 = vector.extract_strided_slice %21 {offsets = [0, 0, 0], sizes = [2, 8, 8], strides = [1, 1, 1]} : vector<2x8x32xf32> to vector<2x8x8xf32>
    "tpu.trace_start"() <{level = 10 : i32, message = "bqd,bkd->bqk"}> : () -> ()
    %cst_18 = arith.constant dense<0.000000e+00> : vector<2x8x8xf32>
    %25 = tpu.matmul %23, %24, %cst_18 {dimension_numbers = #tpu.dot_dimension_numbers<[2], [2], [1], [1], [0, 0, 0, 1, 1, 1], [0], [0]>} : vector<2x8x8xf32>, vector<2x8x8xf32>, vector<2x8x8xf32> -> vector<2x8x8xf32>
    "tpu.trace_stop"() : () -> ()
    %cst_19 = arith.constant 0.353553385 : f32
    %26 = vector.broadcast %cst_19 : f32 to vector<2x8x8xf32>
    %27 = arith.mulf %25, %26 : vector<2x8x8xf32>
    %cst_20 = arith.constant dense<0xFF800000> : vector<2x8xf32>
    %28 = vector.multi_reduction <maximumf>, %27, %cst_20 [2] : vector<2x8x8xf32> to vector<2x8xf32>
    %29 = vector.shape_cast %28 : vector<2x8xf32> to vector<2x8x1xf32>
    %30 = vector.broadcast %29 : vector<2x8x1xf32> to vector<2x8x8xf32>
    %31 = arith.subf %27, %30 : vector<2x8x8xf32>
    %32 = math.exp %31 : vector<2x8x8xf32>
    %cst_21 = arith.constant dense<0.000000e+00> : vector<2x8xf32>
    %33 = vector.multi_reduction <add>, %32, %cst_21 [2] : vector<2x8x8xf32> to vector<2x8xf32>
    %34 = vector.shape_cast %33 : vector<2x8xf32> to vector<2x8x1xf32>
    %35 = tpu.reciprocal %34 {approx = true} : vector<2x8x1xf32> -> vector<2x8x1xf32>
    %36 = vector.broadcast %35 : vector<2x8x1xf32> to vector<2x8x8xf32>
    %37 = arith.mulf %32, %36 : vector<2x8x8xf32>
    %38 = vector.extract_strided_slice %22 {offsets = [0, 0, 0], sizes = [2, 8, 8], strides = [1, 1, 1]} : vector<2x8x32xf32> to vector<2x8x8xf32>
    "tpu.trace_start"() <{level = 10 : i32, message = "bqk,bkd->bqd"}> : () -> ()
    %cst_22 = arith.constant dense<0.000000e+00> : vector<2x8x8xf32>
    %39 = tpu.matmul %37, %38, %cst_22 {dimension_numbers = #tpu.dot_dimension_numbers<[2], [1], [1], [2], [0, 0, 0, 1, 1, 2], [0], [0]>} : vector<2x8x8xf32>, vector<2x8x8xf32>, vector<2x8x8xf32> -> vector<2x8x8xf32>
    "tpu.trace_stop"() : () -> ()
    %40 = vector.extract_strided_slice %20 {offsets = [0, 0, 8], sizes = [2, 8, 8], strides = [1, 1, 1]} : vector<2x8x32xf32> to vector<2x8x8xf32>
    %41 = vector.extract_strided_slice %21 {offsets = [0, 0, 8], sizes = [2, 8, 8], strides = [1, 1, 1]} : vector<2x8x32xf32> to vector<2x8x8xf32>
    "tpu.trace_start"() <{level = 10 : i32, message = "bqd,bkd->bqk"}> : () -> ()
    %cst_23 = arith.constant dense<0.000000e+00> : vector<2x8x8xf32>
    %42 = tpu.matmul %40, %41, %cst_23 {dimension_numbers = #tpu.dot_dimension_numbers<[2], [2], [1], [1], [0, 0, 0, 1, 1, 1], [0], [0]>} : vector<2x8x8xf32>, vector<2x8x8xf32>, vector<2x8x8xf32> -> vector<2x8x8xf32>
    "tpu.trace_stop"() : () -> ()
    %cst_24 = arith.constant 0.353553385 : f32
    %43 = vector.broadcast %cst_24 : f32 to vector<2x8x8xf32>
    %44 = arith.mulf %42, %43 : vector<2x8x8xf32>
    %cst_25 = arith.constant dense<0xFF800000> : vector<2x8xf32>
    %45 = vector.multi_reduction <maximumf>, %44, %cst_25 [2] : vector<2x8x8xf32> to vector<2x8xf32>
    %46 = vector.shape_cast %45 : vector<2x8xf32> to vector<2x8x1xf32>
    %47 = vector.broadcast %46 : vector<2x8x1xf32> to vector<2x8x8xf32>
    %48 = arith.subf %44, %47 : vector<2x8x8xf32>
    %49 = math.exp %48 : vector<2x8x8xf32>
    %cst_26 = arith.constant dense<0.000000e+00> : vector<2x8xf32>
    %50 = vector.multi_reduction <add>, %49, %cst_26 [2] : vector<2x8x8xf32> to vector<2x8xf32>
    %51 = vector.shape_cast %50 : vector<2x8xf32> to vector<2x8x1xf32>
    %52 = tpu.reciprocal %51 {approx = true} : vector<2x8x1xf32> -> vector<2x8x1xf32>
    %53 = vector.broadcast %52 : vector<2x8x1xf32> to vector<2x8x8xf32>
    %54 = arith.mulf %49, %53 : vector<2x8x8xf32>
    %55 = vector.extract_strided_slice %22 {offsets = [0, 0, 8], sizes = [2, 8, 8], strides = [1, 1, 1]} : vector<2x8x32xf32> to vector<2x8x8xf32>
    "tpu.trace_start"() <{level = 10 : i32, message = "bqk,bkd->bqd"}> : () -> ()
    %cst_27 = arith.constant dense<0.000000e+00> : vector<2x8x8xf32>
    %56 = tpu.matmul %54, %55, %cst_27 {dimension_numbers = #tpu.dot_dimension_numbers<[2], [1], [1], [2], [0, 0, 0, 1, 1, 2], [0], [0]>} : vector<2x8x8xf32>, vector<2x8x8xf32>, vector<2x8x8xf32> -> vector<2x8x8xf32>
    "tpu.trace_stop"() : () -> ()
    %57 = vector.extract_strided_slice %20 {offsets = [0, 0, 16], sizes = [2, 8, 8], strides = [1, 1, 1]} : vector<2x8x32xf32> to vector<2x8x8xf32>
    %58 = vector.extract_strided_slice %21 {offsets = [0, 0, 16], sizes = [2, 8, 8], strides = [1, 1, 1]} : vector<2x8x32xf32> to vector<2x8x8xf32>
    "tpu.trace_start"() <{level = 10 : i32, message = "bqd,bkd->bqk"}> : () -> ()
    %cst_28 = arith.constant dense<0.000000e+00> : vector<2x8x8xf32>
    %59 = tpu.matmul %57, %58, %cst_28 {dimension_numbers = #tpu.dot_dimension_numbers<[2], [2], [1], [1], [0, 0, 0, 1, 1, 1], [0], [0]>} : vector<2x8x8xf32>, vector<2x8x8xf32>, vector<2x8x8xf32> -> vector<2x8x8xf32>
    "tpu.trace_stop"() : () -> ()
    %cst_29 = arith.constant 0.353553385 : f32
    %60 = vector.broadcast %cst_29 : f32 to vector<2x8x8xf32>
    %61 = arith.mulf %59, %60 : vector<2x8x8xf32>
    %cst_30 = arith.constant dense<0xFF800000> : vector<2x8xf32>
    %62 = vector.multi_reduction <maximumf>, %61, %cst_30 [2] : vector<2x8x8xf32> to vector<2x8xf32>
    %63 = vector.shape_cast %62 : vector<2x8xf32> to vector<2x8x1xf32>
    %64 = vector.broadcast %63 : vector<2x8x1xf32> to vector<2x8x8xf32>
    %65 = arith.subf %61, %64 : vector<2x8x8xf32>
    %66 = math.exp %65 : vector<2x8x8xf32>
    %cst_31 = arith.constant dense<0.000000e+00> : vector<2x8xf32>
    %67 = vector.multi_reduction <add>, %66, %cst_31 [2] : vector<2x8x8xf32> to vector<2x8xf32>
    %68 = vector.shape_cast %67 : vector<2x8xf32> to vector<2x8x1xf32>
    %69 = tpu.reciprocal %68 {approx = true} : vector<2x8x1xf32> -> vector<2x8x1xf32>
    %70 = vector.broadcast %69 : vector<2x8x1xf32> to vector<2x8x8xf32>
    %71 = arith.mulf %66, %70 : vector<2x8x8xf32>
    %72 = vector.extract_strided_slice %22 {offsets = [0, 0, 16], sizes = [2, 8, 8], strides = [1, 1, 1]} : vector<2x8x32xf32> to vector<2x8x8xf32>
    "tpu.trace_start"() <{level = 10 : i32, message = "bqk,bkd->bqd"}> : () -> ()
    %cst_32 = arith.constant dense<0.000000e+00> : vector<2x8x8xf32>
    %73 = tpu.matmul %71, %72, %cst_32 {dimension_numbers = #tpu.dot_dimension_numbers<[2], [1], [1], [2], [0, 0, 0, 1, 1, 2], [0], [0]>} : vector<2x8x8xf32>, vector<2x8x8xf32>, vector<2x8x8xf32> -> vector<2x8x8xf32>
    "tpu.trace_stop"() : () -> ()
    %74 = vector.extract_strided_slice %20 {offsets = [0, 0, 24], sizes = [2, 8, 8], strides = [1, 1, 1]} : vector<2x8x32xf32> to vector<2x8x8xf32>
    %75 = vector.extract_strided_slice %21 {offsets = [0, 0, 24], sizes = [2, 8, 8], strides = [1, 1, 1]} : vector<2x8x32xf32> to vector<2x8x8xf32>
    "tpu.trace_start"() <{level = 10 : i32, message = "bqd,bkd->bqk"}> : () -> ()
    %cst_33 = arith.constant dense<0.000000e+00> : vector<2x8x8xf32>
    %76 = tpu.matmul %74, %75, %cst_33 {dimension_numbers = #tpu.dot_dimension_numbers<[2], [2], [1], [1], [0, 0, 0, 1, 1, 1], [0], [0]>} : vector<2x8x8xf32>, vector<2x8x8xf32>, vector<2x8x8xf32> -> vector<2x8x8xf32>
    "tpu.trace_stop"() : () -> ()
    %cst_34 = arith.constant 0.353553385 : f32
    %77 = vector.broadcast %cst_34 : f32 to vector<2x8x8xf32>
    %78 = arith.mulf %76, %77 : vector<2x8x8xf32>
    %cst_35 = arith.constant dense<0xFF800000> : vector<2x8xf32>
    %79 = vector.multi_reduction <maximumf>, %78, %cst_35 [2] : vector<2x8x8xf32> to vector<2x8xf32>
    %80 = vector.shape_cast %79 : vector<2x8xf32> to vector<2x8x1xf32>
    %81 = vector.broadcast %80 : vector<2x8x1xf32> to vector<2x8x8xf32>
    %82 = arith.subf %78, %81 : vector<2x8x8xf32>
    %83 = math.exp %82 : vector<2x8x8xf32>
    %cst_36 = arith.constant dense<0.000000e+00> : vector<2x8xf32>
    %84 = vector.multi_reduction <add>, %83, %cst_36 [2] : vector<2x8x8xf32> to vector<2x8xf32>
    %85 = vector.shape_cast %84 : vector<2x8xf32> to vector<2x8x1xf32>
    %86 = tpu.reciprocal %85 {approx = true} : vector<2x8x1xf32> -> vector<2x8x1xf32>
    %87 = vector.broadcast %86 : vector<2x8x1xf32> to vector<2x8x8xf32>
    %88 = arith.mulf %83, %87 : vector<2x8x8xf32>
    %89 = vector.extract_strided_slice %22 {offsets = [0, 0, 24], sizes = [2, 8, 8], strides = [1, 1, 1]} : vector<2x8x32xf32> to vector<2x8x8xf32>
    "tpu.trace_start"() <{level = 10 : i32, message = "bqk,bkd->bqd"}> : () -> ()
    %cst_37 = arith.constant dense<0.000000e+00> : vector<2x8x8xf32>
    %90 = tpu.matmul %88, %89, %cst_37 {dimension_numbers = #tpu.dot_dimension_numbers<[2], [1], [1], [2], [0, 0, 0, 1, 1, 2], [0], [0]>} : vector<2x8x8xf32>, vector<2x8x8xf32>, vector<2x8x8xf32> -> vector<2x8x8xf32>
    "tpu.trace_stop"() : () -> ()
    %91 = tpu.concatenate %39, %56, %73, %90 in 2 : vector<2x8x8xf32>, vector<2x8x8xf32>, vector<2x8x8xf32>, vector<2x8x8xf32> -> vector<2x8x32xf32>
    %92 = vector.shape_cast %91 : vector<2x8x32xf32> to vector<16x32xf32>
    %cst_38 = arith.constant dense<0.000000e+00> : vector<16x32xf32>
    %93 = tpu.matmul %92, %17, %cst_38 {dimension_numbers = #tpu.dot_dimension_numbers<[1], [0], [0], [1], [0, 0, 1, 1], [], []>} : vector<16x32xf32>, vector<32x32xf32>, vector<16x32xf32> -> vector<16x32xf32>
    %94 = vector.broadcast %19 : vector<1x32xf32> to vector<16x32xf32>
    %95 = arith.addf %93, %94 : vector<16x32xf32>
    %96 = arith.addf %95, %4 : vector<16x32xf32>
    %c0_39 = arith.constant 0 : index
    %c0_40 = arith.constant 0 : index
    %c0_41 = arith.constant 0 : index
    %97 = vector.load %arg13[%c0_39, %c0_40, %c0_41] : memref<2x1x32xf32, #tpu.memory_space<vmem>>, vector<1x1x32xf32>
    %98 = vector.shape_cast %97 : vector<1x1x32xf32> to vector<1x32xf32>
    %c0_42 = arith.constant 0 : index
    %c0_43 = arith.constant 0 : index
    %c0_44 = arith.constant 0 : index
    %99 = vector.load %arg14[%c0_42, %c0_43, %c0_44] : memref<2x1x32xf32, #tpu.memory_space<vmem>>, vector<1x1x32xf32>
    %100 = vector.shape_cast %99 : vector<1x1x32xf32> to vector<1x32xf32>
    %cst_45 = arith.constant dense<0.000000e+00> : vector<16xf32>
    %101 = vector.multi_reduction <add>, %96, %cst_45 [1] : vector<16x32xf32> to vector<16xf32>
    %102 = vector.shape_cast %101 : vector<16xf32> to vector<16x1xf32>
    %cst_46 = arith.constant 3.200000e+01 : f32
    %103 = vector.broadcast %cst_46 : f32 to vector<16x1xf32>
    %104 = arith.divf %102, %103 : vector<16x1xf32>
    %105 = vector.broadcast %104 : vector<16x1xf32> to vector<16x32xf32>
    %106 = arith.subf %96, %105 : vector<16x32xf32>
    %107 = arith.mulf %106, %106 : vector<16x32xf32>
    %cst_47 = arith.constant dense<0.000000e+00> : vector<16xf32>
    %108 = vector.multi_reduction <add>, %107, %cst_47 [1] : vector<16x32xf32> to vector<16xf32>
    %109 = vector.shape_cast %108 : vector<16xf32> to vector<16x1xf32>
    %cst_48 = arith.constant 3.200000e+01 : f32
    %110 = vector.broadcast %cst_48 : f32 to vector<16x1xf32>
    %111 = arith.divf %109, %110 : vector<16x1xf32>
    %cst_49 = arith.constant 9.99999974E-6 : f32
    %112 = vector.broadcast %cst_49 : f32 to vector<16x1xf32>
    %113 = arith.addf %111, %112 : vector<16x1xf32>
    %114 = math.rsqrt %113 : vector<16x1xf32>
    %115 = vector.broadcast %114 : vector<16x1xf32> to vector<16x32xf32>
    %116 = arith.mulf %106, %115 : vector<16x32xf32>
    %117 = vector.broadcast %98 : vector<1x32xf32> to vector<16x32xf32>
    %118 = arith.mulf %116, %117 : vector<16x32xf32>
    %119 = vector.broadcast %100 : vector<1x32xf32> to vector<16x32xf32>
    %120 = arith.addf %118, %119 : vector<16x32xf32>
    %c0_50 = arith.constant 0 : index
    %c0_51 = arith.constant 0 : index
    %c0_52 = arith.constant 0 : index
    %121 = vector.load %arg7[%c0_50, %c0_51, %c0_52] : memref<2x32x32xf32, #tpu.memory_space<vmem>>, vector<1x32x32xf32>
    %122 = vector.shape_cast %121 : vector<1x32x32xf32> to vector<32x32xf32>
    %cst_53 = arith.constant dense<0.000000e+00> : vector<16x32xf32>
    %123 = tpu.matmul %120, %122, %cst_53 {dimension_numbers = #tpu.dot_dimension_numbers<[1], [0], [0], [1], [0, 0, 1, 1], [], []>} : vector<16x32xf32>, vector<32x32xf32>, vector<16x32xf32> -> vector<16x32xf32>
    %c0_54 = arith.constant 0 : index
    %c0_55 = arith.constant 0 : index
    %c0_56 = arith.constant 0 : index
    %124 = vector.load %arg8[%c0_54, %c0_55, %c0_56] : memref<2x1x32xf32, #tpu.memory_space<vmem>>, vector<1x1x32xf32>
    %125 = vector.shape_cast %124 : vector<1x1x32xf32> to vector<1x32xf32>
    %126 = vector.broadcast %125 : vector<1x32xf32> to vector<16x32xf32>
    %127 = arith.addf %123, %126 : vector<16x32xf32>
    %c0_57 = arith.constant 0 : index
    %c0_58 = arith.constant 0 : index
    %c0_59 = arith.constant 0 : index
    %128 = vector.load %arg9[%c0_57, %c0_58, %c0_59] : memref<2x32x64xf32, #tpu.memory_space<vmem>>, vector<1x32x64xf32>
    %129 = vector.shape_cast %128 : vector<1x32x64xf32> to vector<32x64xf32>
    %cst_60 = arith.constant dense<0.000000e+00> : vector<16x64xf32>
    %130 = tpu.matmul %5, %129, %cst_60 {dimension_numbers = #tpu.dot_dimension_numbers<[1], [0], [0], [1], [0, 0, 1, 1], [], []>} : vector<16x32xf32>, vector<32x64xf32>, vector<16x64xf32> -> vector<16x64xf32>
    %c0_61 = arith.constant 0 : index
    %c0_62 = arith.constant 0 : index
    %c0_63 = arith.constant 0 : index
    %131 = vector.load %arg10[%c0_61, %c0_62, %c0_63] : memref<2x1x64xf32, #tpu.memory_space<vmem>>, vector<1x1x64xf32>
    %132 = vector.shape_cast %131 : vector<1x1x64xf32> to vector<1x64xf32>
    %133 = vector.broadcast %132 : vector<1x64xf32> to vector<16x64xf32>
    %134 = arith.addf %130, %133 : vector<16x64xf32>
    %135 = vector.extract_strided_slice %134 {offsets = [0, 0], sizes = [16, 32], strides = [1, 1]} : vector<16x64xf32> to vector<16x32xf32>
    %136 = vector.extract_strided_slice %134 {offsets = [0, 32], sizes = [16, 32], strides = [1, 1]} : vector<16x64xf32> to vector<16x32xf32>
    %c0_64 = arith.constant 0 : index
    %c0_65 = arith.constant 0 : index
    %c0_66 = arith.constant 0 : index
    %137 = vector.load %arg11[%c0_64, %c0_65, %c0_66] : memref<2x32x32xf32, #tpu.memory_space<vmem>>, vector<1x32x32xf32>
    %138 = vector.shape_cast %137 : vector<1x32x32xf32> to vector<32x32xf32>
    %c0_67 = arith.constant 0 : index
    %c0_68 = arith.constant 0 : index
    %c0_69 = arith.constant 0 : index
    %139 = vector.load %arg12[%c0_67, %c0_68, %c0_69] : memref<2x1x32xf32, #tpu.memory_space<vmem>>, vector<1x1x32xf32>
    %140 = vector.shape_cast %139 : vector<1x1x32xf32> to vector<1x32xf32>
    %141 = vector.shape_cast %127 : vector<16x32xf32> to vector<2x8x32xf32>
    %142 = vector.shape_cast %135 : vector<16x32xf32> to vector<2x8x32xf32>
    %143 = vector.shape_cast %136 : vector<16x32xf32> to vector<2x8x32xf32>
    %144 = vector.extract_strided_slice %141 {offsets = [0, 0, 0], sizes = [2, 8, 8], strides = [1, 1, 1]} : vector<2x8x32xf32> to vector<2x8x8xf32>
    %145 = vector.extract_strided_slice %142 {offsets = [0, 0, 0], sizes = [2, 8, 8], strides = [1, 1, 1]} : vector<2x8x32xf32> to vector<2x8x8xf32>
    "tpu.trace_start"() <{level = 10 : i32, message = "bqd,bkd->bqk"}> : () -> ()
    %cst_70 = arith.constant dense<0.000000e+00> : vector<2x8x8xf32>
    %146 = tpu.matmul %144, %145, %cst_70 {dimension_numbers = #tpu.dot_dimension_numbers<[2], [2], [1], [1], [0, 0, 0, 1, 1, 1], [0], [0]>} : vector<2x8x8xf32>, vector<2x8x8xf32>, vector<2x8x8xf32> -> vector<2x8x8xf32>
    "tpu.trace_stop"() : () -> ()
    %cst_71 = arith.constant 0.353553385 : f32
    %147 = vector.broadcast %cst_71 : f32 to vector<2x8x8xf32>
    %148 = arith.mulf %146, %147 : vector<2x8x8xf32>
    %cst_72 = arith.constant dense<0xFF800000> : vector<2x8xf32>
    %149 = vector.multi_reduction <maximumf>, %148, %cst_72 [2] : vector<2x8x8xf32> to vector<2x8xf32>
    %150 = vector.shape_cast %149 : vector<2x8xf32> to vector<2x8x1xf32>
    %151 = vector.broadcast %150 : vector<2x8x1xf32> to vector<2x8x8xf32>
    %152 = arith.subf %148, %151 : vector<2x8x8xf32>
    %153 = math.exp %152 : vector<2x8x8xf32>
    %cst_73 = arith.constant dense<0.000000e+00> : vector<2x8xf32>
    %154 = vector.multi_reduction <add>, %153, %cst_73 [2] : vector<2x8x8xf32> to vector<2x8xf32>
    %155 = vector.shape_cast %154 : vector<2x8xf32> to vector<2x8x1xf32>
    %156 = tpu.reciprocal %155 {approx = true} : vector<2x8x1xf32> -> vector<2x8x1xf32>
    %157 = vector.broadcast %156 : vector<2x8x1xf32> to vector<2x8x8xf32>
    %158 = arith.mulf %153, %157 : vector<2x8x8xf32>
    %159 = vector.extract_strided_slice %143 {offsets = [0, 0, 0], sizes = [2, 8, 8], strides = [1, 1, 1]} : vector<2x8x32xf32> to vector<2x8x8xf32>
    "tpu.trace_start"() <{level = 10 : i32, message = "bqk,bkd->bqd"}> : () -> ()
    %cst_74 = arith.constant dense<0.000000e+00> : vector<2x8x8xf32>
    %160 = tpu.matmul %158, %159, %cst_74 {dimension_numbers = #tpu.dot_dimension_numbers<[2], [1], [1], [2], [0, 0, 0, 1, 1, 2], [0], [0]>} : vector<2x8x8xf32>, vector<2x8x8xf32>, vector<2x8x8xf32> -> vector<2x8x8xf32>
    "tpu.trace_stop"() : () -> ()
    %161 = vector.extract_strided_slice %141 {offsets = [0, 0, 8], sizes = [2, 8, 8], strides = [1, 1, 1]} : vector<2x8x32xf32> to vector<2x8x8xf32>
    %162 = vector.extract_strided_slice %142 {offsets = [0, 0, 8], sizes = [2, 8, 8], strides = [1, 1, 1]} : vector<2x8x32xf32> to vector<2x8x8xf32>
    "tpu.trace_start"() <{level = 10 : i32, message = "bqd,bkd->bqk"}> : () -> ()
    %cst_75 = arith.constant dense<0.000000e+00> : vector<2x8x8xf32>
    %163 = tpu.matmul %161, %162, %cst_75 {dimension_numbers = #tpu.dot_dimension_numbers<[2], [2], [1], [1], [0, 0, 0, 1, 1, 1], [0], [0]>} : vector<2x8x8xf32>, vector<2x8x8xf32>, vector<2x8x8xf32> -> vector<2x8x8xf32>
    "tpu.trace_stop"() : () -> ()
    %cst_76 = arith.constant 0.353553385 : f32
    %164 = vector.broadcast %cst_76 : f32 to vector<2x8x8xf32>
    %165 = arith.mulf %163, %164 : vector<2x8x8xf32>
    %cst_77 = arith.constant dense<0xFF800000> : vector<2x8xf32>
    %166 = vector.multi_reduction <maximumf>, %165, %cst_77 [2] : vector<2x8x8xf32> to vector<2x8xf32>
    %167 = vector.shape_cast %166 : vector<2x8xf32> to vector<2x8x1xf32>
    %168 = vector.broadcast %167 : vector<2x8x1xf32> to vector<2x8x8xf32>
    %169 = arith.subf %165, %168 : vector<2x8x8xf32>
    %170 = math.exp %169 : vector<2x8x8xf32>
    %cst_78 = arith.constant dense<0.000000e+00> : vector<2x8xf32>
    %171 = vector.multi_reduction <add>, %170, %cst_78 [2] : vector<2x8x8xf32> to vector<2x8xf32>
    %172 = vector.shape_cast %171 : vector<2x8xf32> to vector<2x8x1xf32>
    %173 = tpu.reciprocal %172 {approx = true} : vector<2x8x1xf32> -> vector<2x8x1xf32>
    %174 = vector.broadcast %173 : vector<2x8x1xf32> to vector<2x8x8xf32>
    %175 = arith.mulf %170, %174 : vector<2x8x8xf32>
    %176 = vector.extract_strided_slice %143 {offsets = [0, 0, 8], sizes = [2, 8, 8], strides = [1, 1, 1]} : vector<2x8x32xf32> to vector<2x8x8xf32>
    "tpu.trace_start"() <{level = 10 : i32, message = "bqk,bkd->bqd"}> : () -> ()
    %cst_79 = arith.constant dense<0.000000e+00> : vector<2x8x8xf32>
    %177 = tpu.matmul %175, %176, %cst_79 {dimension_numbers = #tpu.dot_dimension_numbers<[2], [1], [1], [2], [0, 0, 0, 1, 1, 2], [0], [0]>} : vector<2x8x8xf32>, vector<2x8x8xf32>, vector<2x8x8xf32> -> vector<2x8x8xf32>
    "tpu.trace_stop"() : () -> ()
    %178 = vector.extract_strided_slice %141 {offsets = [0, 0, 16], sizes = [2, 8, 8], strides = [1, 1, 1]} : vector<2x8x32xf32> to vector<2x8x8xf32>
    %179 = vector.extract_strided_slice %142 {offsets = [0, 0, 16], sizes = [2, 8, 8], strides = [1, 1, 1]} : vector<2x8x32xf32> to vector<2x8x8xf32>
    "tpu.trace_start"() <{level = 10 : i32, message = "bqd,bkd->bqk"}> : () -> ()
    %cst_80 = arith.constant dense<0.000000e+00> : vector<2x8x8xf32>
    %180 = tpu.matmul %178, %179, %cst_80 {dimension_numbers = #tpu.dot_dimension_numbers<[2], [2], [1], [1], [0, 0, 0, 1, 1, 1], [0], [0]>} : vector<2x8x8xf32>, vector<2x8x8xf32>, vector<2x8x8xf32> -> vector<2x8x8xf32>
    "tpu.trace_stop"() : () -> ()
    %cst_81 = arith.constant 0.353553385 : f32
    %181 = vector.broadcast %cst_81 : f32 to vector<2x8x8xf32>
    %182 = arith.mulf %180, %181 : vector<2x8x8xf32>
    %cst_82 = arith.constant dense<0xFF800000> : vector<2x8xf32>
    %183 = vector.multi_reduction <maximumf>, %182, %cst_82 [2] : vector<2x8x8xf32> to vector<2x8xf32>
    %184 = vector.shape_cast %183 : vector<2x8xf32> to vector<2x8x1xf32>
    %185 = vector.broadcast %184 : vector<2x8x1xf32> to vector<2x8x8xf32>
    %186 = arith.subf %182, %185 : vector<2x8x8xf32>
    %187 = math.exp %186 : vector<2x8x8xf32>
    %cst_83 = arith.constant dense<0.000000e+00> : vector<2x8xf32>
    %188 = vector.multi_reduction <add>, %187, %cst_83 [2] : vector<2x8x8xf32> to vector<2x8xf32>
    %189 = vector.shape_cast %188 : vector<2x8xf32> to vector<2x8x1xf32>
    %190 = tpu.reciprocal %189 {approx = true} : vector<2x8x1xf32> -> vector<2x8x1xf32>
    %191 = vector.broadcast %190 : vector<2x8x1xf32> to vector<2x8x8xf32>
    %192 = arith.mulf %187, %191 : vector<2x8x8xf32>
    %193 = vector.extract_strided_slice %143 {offsets = [0, 0, 16], sizes = [2, 8, 8], strides = [1, 1, 1]} : vector<2x8x32xf32> to vector<2x8x8xf32>
    "tpu.trace_start"() <{level = 10 : i32, message = "bqk,bkd->bqd"}> : () -> ()
    %cst_84 = arith.constant dense<0.000000e+00> : vector<2x8x8xf32>
    %194 = tpu.matmul %192, %193, %cst_84 {dimension_numbers = #tpu.dot_dimension_numbers<[2], [1], [1], [2], [0, 0, 0, 1, 1, 2], [0], [0]>} : vector<2x8x8xf32>, vector<2x8x8xf32>, vector<2x8x8xf32> -> vector<2x8x8xf32>
    "tpu.trace_stop"() : () -> ()
    %195 = vector.extract_strided_slice %141 {offsets = [0, 0, 24], sizes = [2, 8, 8], strides = [1, 1, 1]} : vector<2x8x32xf32> to vector<2x8x8xf32>
    %196 = vector.extract_strided_slice %142 {offsets = [0, 0, 24], sizes = [2, 8, 8], strides = [1, 1, 1]} : vector<2x8x32xf32> to vector<2x8x8xf32>
    "tpu.trace_start"() <{level = 10 : i32, message = "bqd,bkd->bqk"}> : () -> ()
    %cst_85 = arith.constant dense<0.000000e+00> : vector<2x8x8xf32>
    %197 = tpu.matmul %195, %196, %cst_85 {dimension_numbers = #tpu.dot_dimension_numbers<[2], [2], [1], [1], [0, 0, 0, 1, 1, 1], [0], [0]>} : vector<2x8x8xf32>, vector<2x8x8xf32>, vector<2x8x8xf32> -> vector<2x8x8xf32>
    "tpu.trace_stop"() : () -> ()
    %cst_86 = arith.constant 0.353553385 : f32
    %198 = vector.broadcast %cst_86 : f32 to vector<2x8x8xf32>
    %199 = arith.mulf %197, %198 : vector<2x8x8xf32>
    %cst_87 = arith.constant dense<0xFF800000> : vector<2x8xf32>
    %200 = vector.multi_reduction <maximumf>, %199, %cst_87 [2] : vector<2x8x8xf32> to vector<2x8xf32>
    %201 = vector.shape_cast %200 : vector<2x8xf32> to vector<2x8x1xf32>
    %202 = vector.broadcast %201 : vector<2x8x1xf32> to vector<2x8x8xf32>
    %203 = arith.subf %199, %202 : vector<2x8x8xf32>
    %204 = math.exp %203 : vector<2x8x8xf32>
    %cst_88 = arith.constant dense<0.000000e+00> : vector<2x8xf32>
    %205 = vector.multi_reduction <add>, %204, %cst_88 [2] : vector<2x8x8xf32> to vector<2x8xf32>
    %206 = vector.shape_cast %205 : vector<2x8xf32> to vector<2x8x1xf32>
    %207 = tpu.reciprocal %206 {approx = true} : vector<2x8x1xf32> -> vector<2x8x1xf32>
    %208 = vector.broadcast %207 : vector<2x8x1xf32> to vector<2x8x8xf32>
    %209 = arith.mulf %204, %208 : vector<2x8x8xf32>
    %210 = vector.extract_strided_slice %143 {offsets = [0, 0, 24], sizes = [2, 8, 8], strides = [1, 1, 1]} : vector<2x8x32xf32> to vector<2x8x8xf32>
    "tpu.trace_start"() <{level = 10 : i32, message = "bqk,bkd->bqd"}> : () -> ()
    %cst_89 = arith.constant dense<0.000000e+00> : vector<2x8x8xf32>
    %211 = tpu.matmul %209, %210, %cst_89 {dimension_numbers = #tpu.dot_dimension_numbers<[2], [1], [1], [2], [0, 0, 0, 1, 1, 2], [0], [0]>} : vector<2x8x8xf32>, vector<2x8x8xf32>, vector<2x8x8xf32> -> vector<2x8x8xf32>
    "tpu.trace_stop"() : () -> ()
    %212 = tpu.concatenate %160, %177, %194, %211 in 2 : vector<2x8x8xf32>, vector<2x8x8xf32>, vector<2x8x8xf32>, vector<2x8x8xf32> -> vector<2x8x32xf32>
    %213 = vector.shape_cast %212 : vector<2x8x32xf32> to vector<16x32xf32>
    %cst_90 = arith.constant dense<0.000000e+00> : vector<16x32xf32>
    %214 = tpu.matmul %213, %138, %cst_90 {dimension_numbers = #tpu.dot_dimension_numbers<[1], [0], [0], [1], [0, 0, 1, 1], [], []>} : vector<16x32xf32>, vector<32x32xf32>, vector<16x32xf32> -> vector<16x32xf32>
    %215 = vector.broadcast %140 : vector<1x32xf32> to vector<16x32xf32>
    %216 = arith.addf %214, %215 : vector<16x32xf32>
    %217 = arith.addf %216, %120 : vector<16x32xf32>
    %c0_91 = arith.constant 0 : index
    %c0_92 = arith.constant 0 : index
    %c0_93 = arith.constant 0 : index
    %218 = vector.load %arg15[%c0_91, %c0_92, %c0_93] : memref<2x1x32xf32, #tpu.memory_space<vmem>>, vector<1x1x32xf32>
    %219 = vector.shape_cast %218 : vector<1x1x32xf32> to vector<1x32xf32>
    %c0_94 = arith.constant 0 : index
    %c0_95 = arith.constant 0 : index
    %c0_96 = arith.constant 0 : index
    %220 = vector.load %arg16[%c0_94, %c0_95, %c0_96] : memref<2x1x32xf32, #tpu.memory_space<vmem>>, vector<1x1x32xf32>
    %221 = vector.shape_cast %220 : vector<1x1x32xf32> to vector<1x32xf32>
    %cst_97 = arith.constant dense<0.000000e+00> : vector<16xf32>
    %222 = vector.multi_reduction <add>, %217, %cst_97 [1] : vector<16x32xf32> to vector<16xf32>
    %223 = vector.shape_cast %222 : vector<16xf32> to vector<16x1xf32>
    %cst_98 = arith.constant 3.200000e+01 : f32
    %224 = vector.broadcast %cst_98 : f32 to vector<16x1xf32>
    %225 = arith.divf %223, %224 : vector<16x1xf32>
    %226 = vector.broadcast %225 : vector<16x1xf32> to vector<16x32xf32>
    %227 = arith.subf %217, %226 : vector<16x32xf32>
    %228 = arith.mulf %227, %227 : vector<16x32xf32>
    %cst_99 = arith.constant dense<0.000000e+00> : vector<16xf32>
    %229 = vector.multi_reduction <add>, %228, %cst_99 [1] : vector<16x32xf32> to vector<16xf32>
    %230 = vector.shape_cast %229 : vector<16xf32> to vector<16x1xf32>
    %cst_100 = arith.constant 3.200000e+01 : f32
    %231 = vector.broadcast %cst_100 : f32 to vector<16x1xf32>
    %232 = arith.divf %230, %231 : vector<16x1xf32>
    %cst_101 = arith.constant 9.99999974E-6 : f32
    %233 = vector.broadcast %cst_101 : f32 to vector<16x1xf32>
    %234 = arith.addf %232, %233 : vector<16x1xf32>
    %235 = math.rsqrt %234 : vector<16x1xf32>
    %236 = vector.broadcast %235 : vector<16x1xf32> to vector<16x32xf32>
    %237 = arith.mulf %227, %236 : vector<16x32xf32>
    %238 = vector.broadcast %219 : vector<1x32xf32> to vector<16x32xf32>
    %239 = arith.mulf %237, %238 : vector<16x32xf32>
    %240 = vector.broadcast %221 : vector<1x32xf32> to vector<16x32xf32>
    %241 = arith.addf %239, %240 : vector<16x32xf32>
    %242 = math.absf %241 : vector<16x32xf32>
    %cst_102 = arith.constant dense<0xFF800000> : vector<16xf32>
    %243 = vector.multi_reduction <maximumf>, %242, %cst_102 [1] : vector<16x32xf32> to vector<16xf32>
    %244 = vector.shape_cast %243 : vector<16xf32> to vector<16x1xf32>
    %cst_103 = arith.constant 9.99999974E-6 : f32
    %245 = vector.broadcast %cst_103 : f32 to vector<16x1xf32>
    %246 = arith.maximumf %244, %245 : vector<16x1xf32>
    %247 = tpu.reciprocal %246 {approx = true} : vector<16x1xf32> -> vector<16x1xf32>
    %cst_104 = arith.constant 1.270000e+02 : f32
    %248 = vector.broadcast %cst_104 : f32 to vector<16x1xf32>
    %249 = arith.mulf %248, %247 : vector<16x1xf32>
    %250 = vector.broadcast %249 : vector<16x1xf32> to vector<16x32xf32>
    %251 = arith.mulf %241, %250 : vector<16x32xf32>
    %252 = math.roundeven %251 : vector<16x32xf32>
    %cst_105 = arith.constant -1.280000e+02 : f32
    %cst_106 = arith.constant 1.270000e+02 : f32
    %253 = vector.broadcast %cst_105 : f32 to vector<16x32xf32>
    %254 = arith.maximumf %253, %252 : vector<16x32xf32>
    %255 = vector.broadcast %cst_106 : f32 to vector<16x32xf32>
    %256 = arith.minimumf %255, %254 : vector<16x32xf32>
    %cst_107 = arith.constant 0.00787401571 : f32
    %257 = vector.broadcast %cst_107 : f32 to vector<16x1xf32>
    %258 = arith.mulf %246, %257 : vector<16x1xf32>
    %259 = vector.broadcast %258 : vector<16x1xf32> to vector<16x32xf32>
    %260 = arith.mulf %256, %259 : vector<16x32xf32>
    %c0_108 = arith.constant 0 : index
    %c0_109 = arith.constant 0 : index
    %c0_110 = arith.constant 0 : index
    %261 = vector.load %arg19[%c0_108, %c0_109, %c0_110] : memref<2x32x64xf32, #tpu.memory_space<vmem>>, vector<1x32x64xf32>
    %262 = vector.shape_cast %261 : vector<1x32x64xf32> to vector<32x64xf32>
    %cst_111 = arith.constant dense<0.000000e+00> : vector<16x64xf32>
    %263 = tpu.matmul %260, %262, %cst_111 {dimension_numbers = #tpu.dot_dimension_numbers<[1], [0], [0], [1], [0, 0, 1, 1], [], []>} : vector<16x32xf32>, vector<32x64xf32>, vector<16x64xf32> -> vector<16x64xf32>
    %cst_112 = arith.constant 5.000000e-01 : f32
    %264 = vector.broadcast %cst_112 : f32 to vector<16x64xf32>
    %265 = arith.mulf %263, %264 : vector<16x64xf32>
    %cst_113 = arith.constant 0.707106769 : f32
    %266 = vector.broadcast %cst_113 : f32 to vector<16x64xf32>
    %267 = arith.mulf %263, %266 : vector<16x64xf32>
    %268 = math.absf %267 : vector<16x64xf32>
    %cst_114 = arith.constant 0.327591091 : f32
    %269 = vector.broadcast %cst_114 : f32 to vector<16x64xf32>
    %270 = arith.mulf %269, %268 : vector<16x64xf32>
    %cst_115 = arith.constant 1.000000e+00 : f32
    %271 = vector.broadcast %cst_115 : f32 to vector<16x64xf32>
    %272 = arith.addf %271, %270 : vector<16x64xf32>
    %cst_116 = arith.constant 1.000000e+00 : f32
    %273 = vector.broadcast %cst_116 : f32 to vector<16x64xf32>
    %274 = arith.divf %273, %272 : vector<16x64xf32>
    %cst_117 = arith.constant 1.06140542 : f32
    %275 = vector.broadcast %cst_117 : f32 to vector<16x64xf32>
    %276 = arith.mulf %275, %274 : vector<16x64xf32>
    %cst_118 = arith.constant -1.45315206 : f32
    %277 = vector.broadcast %cst_118 : f32 to vector<16x64xf32>
    %278 = arith.addf %276, %277 : vector<16x64xf32>
    %279 = arith.mulf %278, %274 : vector<16x64xf32>
    %cst_119 = arith.constant 1.42141378 : f32
    %280 = vector.broadcast %cst_119 : f32 to vector<16x64xf32>
    %281 = arith.addf %279, %280 : vector<16x64xf32>
    %282 = arith.mulf %281, %274 : vector<16x64xf32>
    %cst_120 = arith.constant -0.284496725 : f32
    %283 = vector.broadcast %cst_120 : f32 to vector<16x64xf32>
    %284 = arith.addf %282, %283 : vector<16x64xf32>
    %285 = arith.mulf %284, %274 : vector<16x64xf32>
    %cst_121 = arith.constant 0.254829586 : f32
    %286 = vector.broadcast %cst_121 : f32 to vector<16x64xf32>
    %287 = arith.addf %285, %286 : vector<16x64xf32>
    %288 = arith.mulf %287, %274 : vector<16x64xf32>
    %cst_122 = arith.constant 0.000000e+00 : f32
    %289 = vector.broadcast %cst_122 : f32 to vector<16x64xf32>
    %290 = arith.subf %289, %268 : vector<16x64xf32>
    %291 = arith.mulf %290, %268 : vector<16x64xf32>
    %292 = math.exp %291 : vector<16x64xf32>
    %293 = arith.mulf %288, %292 : vector<16x64xf32>
    %cst_123 = arith.constant 1.000000e+00 : f32
    %294 = vector.broadcast %cst_123 : f32 to vector<16x64xf32>
    %295 = arith.subf %294, %293 : vector<16x64xf32>
    %cst_124 = arith.constant 0.000000e+00 : f32
    %296 = vector.broadcast %cst_124 : f32 to vector<16x64xf32>
    %297 = arith.cmpf olt, %267, %296 : vector<16x64xf32>
    %cst_125 = arith.constant 0.000000e+00 : f32
    %298 = vector.broadcast %cst_125 : f32 to vector<16x64xf32>
    %299 = arith.subf %298, %295 : vector<16x64xf32>
    %300 = arith.select %297, %299, %295 : vector<16x64xi1>, vector<16x64xf32>
    %cst_126 = arith.constant 1.000000e+00 : f32
    %301 = vector.broadcast %cst_126 : f32 to vector<16x64xf32>
    %302 = arith.addf %301, %300 : vector<16x64xf32>
    %303 = arith.mulf %265, %302 : vector<16x64xf32>
    %304 = math.absf %303 : vector<16x64xf32>
    %cst_127 = arith.constant dense<0xFF800000> : vector<16xf32>
    %305 = vector.multi_reduction <maximumf>, %304, %cst_127 [1] : vector<16x64xf32> to vector<16xf32>
    %306 = vector.shape_cast %305 : vector<16xf32> to vector<16x1xf32>
    %cst_128 = arith.constant 9.99999974E-6 : f32
    %307 = vector.broadcast %cst_128 : f32 to vector<16x1xf32>
    %308 = arith.maximumf %306, %307 : vector<16x1xf32>
    %309 = tpu.reciprocal %308 {approx = true} : vector<16x1xf32> -> vector<16x1xf32>
    %cst_129 = arith.constant 1.270000e+02 : f32
    %310 = vector.broadcast %cst_129 : f32 to vector<16x1xf32>
    %311 = arith.mulf %310, %309 : vector<16x1xf32>
    %312 = vector.broadcast %311 : vector<16x1xf32> to vector<16x64xf32>
    %313 = arith.mulf %303, %312 : vector<16x64xf32>
    %314 = math.roundeven %313 : vector<16x64xf32>
    %cst_130 = arith.constant -1.280000e+02 : f32
    %cst_131 = arith.constant 1.270000e+02 : f32
    %315 = vector.broadcast %cst_130 : f32 to vector<16x64xf32>
    %316 = arith.maximumf %315, %314 : vector<16x64xf32>
    %317 = vector.broadcast %cst_131 : f32 to vector<16x64xf32>
    %318 = arith.minimumf %317, %316 : vector<16x64xf32>
    %cst_132 = arith.constant 0.00787401571 : f32
    %319 = vector.broadcast %cst_132 : f32 to vector<16x1xf32>
    %320 = arith.mulf %308, %319 : vector<16x1xf32>
    %321 = vector.broadcast %320 : vector<16x1xf32> to vector<16x64xf32>
    %322 = arith.mulf %318, %321 : vector<16x64xf32>
    %c0_133 = arith.constant 0 : index
    %c0_134 = arith.constant 0 : index
    %c0_135 = arith.constant 0 : index
    %323 = vector.load %arg20[%c0_133, %c0_134, %c0_135] : memref<2x64x32xf32, #tpu.memory_space<vmem>>, vector<1x64x32xf32>
    %324 = vector.shape_cast %323 : vector<1x64x32xf32> to vector<64x32xf32>
    %cst_136 = arith.constant dense<0.000000e+00> : vector<16x32xf32>
    %325 = tpu.matmul %322, %324, %cst_136 {dimension_numbers = #tpu.dot_dimension_numbers<[1], [0], [0], [1], [0, 0, 1, 1], [], []>} : vector<16x64xf32>, vector<64x32xf32>, vector<16x32xf32> -> vector<16x32xf32>
    %326 = arith.addf %325, %241 : vector<16x32xf32>
    %c0_137 = arith.constant 0 : index
    %c0_138 = arith.constant 0 : index
    %c0_139 = arith.constant 0 : index
    %327 = vector.load %arg17[%c0_137, %c0_138, %c0_139] : memref<2x1x32xf32, #tpu.memory_space<vmem>>, vector<1x1x32xf32>
    %328 = vector.shape_cast %327 : vector<1x1x32xf32> to vector<1x32xf32>
    %c0_140 = arith.constant 0 : index
    %c0_141 = arith.constant 0 : index
    %c0_142 = arith.constant 0 : index
    %329 = vector.load %arg18[%c0_140, %c0_141, %c0_142] : memref<2x1x32xf32, #tpu.memory_space<vmem>>, vector<1x1x32xf32>
    %330 = vector.shape_cast %329 : vector<1x1x32xf32> to vector<1x32xf32>
    %cst_143 = arith.constant dense<0.000000e+00> : vector<16xf32>
    %331 = vector.multi_reduction <add>, %326, %cst_143 [1] : vector<16x32xf32> to vector<16xf32>
    %332 = vector.shape_cast %331 : vector<16xf32> to vector<16x1xf32>
    %cst_144 = arith.constant 3.200000e+01 : f32
    %333 = vector.broadcast %cst_144 : f32 to vector<16x1xf32>
    %334 = arith.divf %332, %333 : vector<16x1xf32>
    %335 = vector.broadcast %334 : vector<16x1xf32> to vector<16x32xf32>
    %336 = arith.subf %326, %335 : vector<16x32xf32>
    %337 = arith.mulf %336, %336 : vector<16x32xf32>
    %cst_145 = arith.constant dense<0.000000e+00> : vector<16xf32>
    %338 = vector.multi_reduction <add>, %337, %cst_145 [1] : vector<16x32xf32> to vector<16xf32>
    %339 = vector.shape_cast %338 : vector<16xf32> to vector<16x1xf32>
    %cst_146 = arith.constant 3.200000e+01 : f32
    %340 = vector.broadcast %cst_146 : f32 to vector<16x1xf32>
    %341 = arith.divf %339, %340 : vector<16x1xf32>
    %cst_147 = arith.constant 9.99999974E-6 : f32
    %342 = vector.broadcast %cst_147 : f32 to vector<16x1xf32>
    %343 = arith.addf %341, %342 : vector<16x1xf32>
    %344 = math.rsqrt %343 : vector<16x1xf32>
    %345 = vector.broadcast %344 : vector<16x1xf32> to vector<16x32xf32>
    %346 = arith.mulf %336, %345 : vector<16x32xf32>
    %347 = vector.broadcast %328 : vector<1x32xf32> to vector<16x32xf32>
    %348 = arith.mulf %346, %347 : vector<16x32xf32>
    %349 = vector.broadcast %330 : vector<1x32xf32> to vector<16x32xf32>
    %350 = arith.addf %348, %349 : vector<16x32xf32>
    %c1 = arith.constant 1 : index
    %c0_148 = arith.constant 0 : index
    %c0_149 = arith.constant 0 : index
    %351 = vector.load %arg3[%c1, %c0_148, %c0_149] : memref<2x32x96xf32, #tpu.memory_space<vmem>>, vector<1x32x96xf32>
    %352 = vector.shape_cast %351 : vector<1x32x96xf32> to vector<32x96xf32>
    %cst_150 = arith.constant dense<0.000000e+00> : vector<16x96xf32>
    %353 = tpu.matmul %350, %352, %cst_150 {dimension_numbers = #tpu.dot_dimension_numbers<[1], [0], [0], [1], [0, 0, 1, 1], [], []>} : vector<16x32xf32>, vector<32x96xf32>, vector<16x96xf32> -> vector<16x96xf32>
    %c1_151 = arith.constant 1 : index
    %c0_152 = arith.constant 0 : index
    %c0_153 = arith.constant 0 : index
    %354 = vector.load %arg4[%c1_151, %c0_152, %c0_153] : memref<2x1x96xf32, #tpu.memory_space<vmem>>, vector<1x1x96xf32>
    %355 = vector.shape_cast %354 : vector<1x1x96xf32> to vector<1x96xf32>
    %356 = vector.broadcast %355 : vector<1x96xf32> to vector<16x96xf32>
    %357 = arith.addf %353, %356 : vector<16x96xf32>
    %358 = vector.extract_strided_slice %357 {offsets = [0, 0], sizes = [16, 32], strides = [1, 1]} : vector<16x96xf32> to vector<16x32xf32>
    %359 = vector.extract_strided_slice %357 {offsets = [0, 32], sizes = [16, 32], strides = [1, 1]} : vector<16x96xf32> to vector<16x32xf32>
    %360 = vector.extract_strided_slice %357 {offsets = [0, 64], sizes = [16, 32], strides = [1, 1]} : vector<16x96xf32> to vector<16x32xf32>
    %c1_154 = arith.constant 1 : index
    %c0_155 = arith.constant 0 : index
    %c0_156 = arith.constant 0 : index
    %361 = vector.load %arg5[%c1_154, %c0_155, %c0_156] : memref<2x32x32xf32, #tpu.memory_space<vmem>>, vector<1x32x32xf32>
    %362 = vector.shape_cast %361 : vector<1x32x32xf32> to vector<32x32xf32>
    %c1_157 = arith.constant 1 : index
    %c0_158 = arith.constant 0 : index
    %c0_159 = arith.constant 0 : index
    %363 = vector.load %arg6[%c1_157, %c0_158, %c0_159] : memref<2x1x32xf32, #tpu.memory_space<vmem>>, vector<1x1x32xf32>
    %364 = vector.shape_cast %363 : vector<1x1x32xf32> to vector<1x32xf32>
    %365 = vector.shape_cast %358 : vector<16x32xf32> to vector<2x8x32xf32>
    %366 = vector.shape_cast %359 : vector<16x32xf32> to vector<2x8x32xf32>
    %367 = vector.shape_cast %360 : vector<16x32xf32> to vector<2x8x32xf32>
    %368 = vector.extract_strided_slice %365 {offsets = [0, 0, 0], sizes = [2, 8, 8], strides = [1, 1, 1]} : vector<2x8x32xf32> to vector<2x8x8xf32>
    %369 = vector.extract_strided_slice %366 {offsets = [0, 0, 0], sizes = [2, 8, 8], strides = [1, 1, 1]} : vector<2x8x32xf32> to vector<2x8x8xf32>
    "tpu.trace_start"() <{level = 10 : i32, message = "bqd,bkd->bqk"}> : () -> ()
    %cst_160 = arith.constant dense<0.000000e+00> : vector<2x8x8xf32>
    %370 = tpu.matmul %368, %369, %cst_160 {dimension_numbers = #tpu.dot_dimension_numbers<[2], [2], [1], [1], [0, 0, 0, 1, 1, 1], [0], [0]>} : vector<2x8x8xf32>, vector<2x8x8xf32>, vector<2x8x8xf32> -> vector<2x8x8xf32>
    "tpu.trace_stop"() : () -> ()
    %cst_161 = arith.constant 0.353553385 : f32
    %371 = vector.broadcast %cst_161 : f32 to vector<2x8x8xf32>
    %372 = arith.mulf %370, %371 : vector<2x8x8xf32>
    %cst_162 = arith.constant dense<0xFF800000> : vector<2x8xf32>
    %373 = vector.multi_reduction <maximumf>, %372, %cst_162 [2] : vector<2x8x8xf32> to vector<2x8xf32>
    %374 = vector.shape_cast %373 : vector<2x8xf32> to vector<2x8x1xf32>
    %375 = vector.broadcast %374 : vector<2x8x1xf32> to vector<2x8x8xf32>
    %376 = arith.subf %372, %375 : vector<2x8x8xf32>
    %377 = math.exp %376 : vector<2x8x8xf32>
    %cst_163 = arith.constant dense<0.000000e+00> : vector<2x8xf32>
    %378 = vector.multi_reduction <add>, %377, %cst_163 [2] : vector<2x8x8xf32> to vector<2x8xf32>
    %379 = vector.shape_cast %378 : vector<2x8xf32> to vector<2x8x1xf32>
    %380 = tpu.reciprocal %379 {approx = true} : vector<2x8x1xf32> -> vector<2x8x1xf32>
    %381 = vector.broadcast %380 : vector<2x8x1xf32> to vector<2x8x8xf32>
    %382 = arith.mulf %377, %381 : vector<2x8x8xf32>
    %383 = vector.extract_strided_slice %367 {offsets = [0, 0, 0], sizes = [2, 8, 8], strides = [1, 1, 1]} : vector<2x8x32xf32> to vector<2x8x8xf32>
    "tpu.trace_start"() <{level = 10 : i32, message = "bqk,bkd->bqd"}> : () -> ()
    %cst_164 = arith.constant dense<0.000000e+00> : vector<2x8x8xf32>
    %384 = tpu.matmul %382, %383, %cst_164 {dimension_numbers = #tpu.dot_dimension_numbers<[2], [1], [1], [2], [0, 0, 0, 1, 1, 2], [0], [0]>} : vector<2x8x8xf32>, vector<2x8x8xf32>, vector<2x8x8xf32> -> vector<2x8x8xf32>
    "tpu.trace_stop"() : () -> ()
    %385 = vector.extract_strided_slice %365 {offsets = [0, 0, 8], sizes = [2, 8, 8], strides = [1, 1, 1]} : vector<2x8x32xf32> to vector<2x8x8xf32>
    %386 = vector.extract_strided_slice %366 {offsets = [0, 0, 8], sizes = [2, 8, 8], strides = [1, 1, 1]} : vector<2x8x32xf32> to vector<2x8x8xf32>
    "tpu.trace_start"() <{level = 10 : i32, message = "bqd,bkd->bqk"}> : () -> ()
    %cst_165 = arith.constant dense<0.000000e+00> : vector<2x8x8xf32>
    %387 = tpu.matmul %385, %386, %cst_165 {dimension_numbers = #tpu.dot_dimension_numbers<[2], [2], [1], [1], [0, 0, 0, 1, 1, 1], [0], [0]>} : vector<2x8x8xf32>, vector<2x8x8xf32>, vector<2x8x8xf32> -> vector<2x8x8xf32>
    "tpu.trace_stop"() : () -> ()
    %cst_166 = arith.constant 0.353553385 : f32
    %388 = vector.broadcast %cst_166 : f32 to vector<2x8x8xf32>
    %389 = arith.mulf %387, %388 : vector<2x8x8xf32>
    %cst_167 = arith.constant dense<0xFF800000> : vector<2x8xf32>
    %390 = vector.multi_reduction <maximumf>, %389, %cst_167 [2] : vector<2x8x8xf32> to vector<2x8xf32>
    %391 = vector.shape_cast %390 : vector<2x8xf32> to vector<2x8x1xf32>
    %392 = vector.broadcast %391 : vector<2x8x1xf32> to vector<2x8x8xf32>
    %393 = arith.subf %389, %392 : vector<2x8x8xf32>
    %394 = math.exp %393 : vector<2x8x8xf32>
    %cst_168 = arith.constant dense<0.000000e+00> : vector<2x8xf32>
    %395 = vector.multi_reduction <add>, %394, %cst_168 [2] : vector<2x8x8xf32> to vector<2x8xf32>
    %396 = vector.shape_cast %395 : vector<2x8xf32> to vector<2x8x1xf32>
    %397 = tpu.reciprocal %396 {approx = true} : vector<2x8x1xf32> -> vector<2x8x1xf32>
    %398 = vector.broadcast %397 : vector<2x8x1xf32> to vector<2x8x8xf32>
    %399 = arith.mulf %394, %398 : vector<2x8x8xf32>
    %400 = vector.extract_strided_slice %367 {offsets = [0, 0, 8], sizes = [2, 8, 8], strides = [1, 1, 1]} : vector<2x8x32xf32> to vector<2x8x8xf32>
    "tpu.trace_start"() <{level = 10 : i32, message = "bqk,bkd->bqd"}> : () -> ()
    %cst_169 = arith.constant dense<0.000000e+00> : vector<2x8x8xf32>
    %401 = tpu.matmul %399, %400, %cst_169 {dimension_numbers = #tpu.dot_dimension_numbers<[2], [1], [1], [2], [0, 0, 0, 1, 1, 2], [0], [0]>} : vector<2x8x8xf32>, vector<2x8x8xf32>, vector<2x8x8xf32> -> vector<2x8x8xf32>
    "tpu.trace_stop"() : () -> ()
    %402 = vector.extract_strided_slice %365 {offsets = [0, 0, 16], sizes = [2, 8, 8], strides = [1, 1, 1]} : vector<2x8x32xf32> to vector<2x8x8xf32>
    %403 = vector.extract_strided_slice %366 {offsets = [0, 0, 16], sizes = [2, 8, 8], strides = [1, 1, 1]} : vector<2x8x32xf32> to vector<2x8x8xf32>
    "tpu.trace_start"() <{level = 10 : i32, message = "bqd,bkd->bqk"}> : () -> ()
    %cst_170 = arith.constant dense<0.000000e+00> : vector<2x8x8xf32>
    %404 = tpu.matmul %402, %403, %cst_170 {dimension_numbers = #tpu.dot_dimension_numbers<[2], [2], [1], [1], [0, 0, 0, 1, 1, 1], [0], [0]>} : vector<2x8x8xf32>, vector<2x8x8xf32>, vector<2x8x8xf32> -> vector<2x8x8xf32>
    "tpu.trace_stop"() : () -> ()
    %cst_171 = arith.constant 0.353553385 : f32
    %405 = vector.broadcast %cst_171 : f32 to vector<2x8x8xf32>
    %406 = arith.mulf %404, %405 : vector<2x8x8xf32>
    %cst_172 = arith.constant dense<0xFF800000> : vector<2x8xf32>
    %407 = vector.multi_reduction <maximumf>, %406, %cst_172 [2] : vector<2x8x8xf32> to vector<2x8xf32>
    %408 = vector.shape_cast %407 : vector<2x8xf32> to vector<2x8x1xf32>
    %409 = vector.broadcast %408 : vector<2x8x1xf32> to vector<2x8x8xf32>
    %410 = arith.subf %406, %409 : vector<2x8x8xf32>
    %411 = math.exp %410 : vector<2x8x8xf32>
    %cst_173 = arith.constant dense<0.000000e+00> : vector<2x8xf32>
    %412 = vector.multi_reduction <add>, %411, %cst_173 [2] : vector<2x8x8xf32> to vector<2x8xf32>
    %413 = vector.shape_cast %412 : vector<2x8xf32> to vector<2x8x1xf32>
    %414 = tpu.reciprocal %413 {approx = true} : vector<2x8x1xf32> -> vector<2x8x1xf32>
    %415 = vector.broadcast %414 : vector<2x8x1xf32> to vector<2x8x8xf32>
    %416 = arith.mulf %411, %415 : vector<2x8x8xf32>
    %417 = vector.extract_strided_slice %367 {offsets = [0, 0, 16], sizes = [2, 8, 8], strides = [1, 1, 1]} : vector<2x8x32xf32> to vector<2x8x8xf32>
    "tpu.trace_start"() <{level = 10 : i32, message = "bqk,bkd->bqd"}> : () -> ()
    %cst_174 = arith.constant dense<0.000000e+00> : vector<2x8x8xf32>
    %418 = tpu.matmul %416, %417, %cst_174 {dimension_numbers = #tpu.dot_dimension_numbers<[2], [1], [1], [2], [0, 0, 0, 1, 1, 2], [0], [0]>} : vector<2x8x8xf32>, vector<2x8x8xf32>, vector<2x8x8xf32> -> vector<2x8x8xf32>
    "tpu.trace_stop"() : () -> ()
    %419 = vector.extract_strided_slice %365 {offsets = [0, 0, 24], sizes = [2, 8, 8], strides = [1, 1, 1]} : vector<2x8x32xf32> to vector<2x8x8xf32>
    %420 = vector.extract_strided_slice %366 {offsets = [0, 0, 24], sizes = [2, 8, 8], strides = [1, 1, 1]} : vector<2x8x32xf32> to vector<2x8x8xf32>
    "tpu.trace_start"() <{level = 10 : i32, message = "bqd,bkd->bqk"}> : () -> ()
    %cst_175 = arith.constant dense<0.000000e+00> : vector<2x8x8xf32>
    %421 = tpu.matmul %419, %420, %cst_175 {dimension_numbers = #tpu.dot_dimension_numbers<[2], [2], [1], [1], [0, 0, 0, 1, 1, 1], [0], [0]>} : vector<2x8x8xf32>, vector<2x8x8xf32>, vector<2x8x8xf32> -> vector<2x8x8xf32>
    "tpu.trace_stop"() : () -> ()
    %cst_176 = arith.constant 0.353553385 : f32
    %422 = vector.broadcast %cst_176 : f32 to vector<2x8x8xf32>
    %423 = arith.mulf %421, %422 : vector<2x8x8xf32>
    %cst_177 = arith.constant dense<0xFF800000> : vector<2x8xf32>
    %424 = vector.multi_reduction <maximumf>, %423, %cst_177 [2] : vector<2x8x8xf32> to vector<2x8xf32>
    %425 = vector.shape_cast %424 : vector<2x8xf32> to vector<2x8x1xf32>
    %426 = vector.broadcast %425 : vector<2x8x1xf32> to vector<2x8x8xf32>
    %427 = arith.subf %423, %426 : vector<2x8x8xf32>
    %428 = math.exp %427 : vector<2x8x8xf32>
    %cst_178 = arith.constant dense<0.000000e+00> : vector<2x8xf32>
    %429 = vector.multi_reduction <add>, %428, %cst_178 [2] : vector<2x8x8xf32> to vector<2x8xf32>
    %430 = vector.shape_cast %429 : vector<2x8xf32> to vector<2x8x1xf32>
    %431 = tpu.reciprocal %430 {approx = true} : vector<2x8x1xf32> -> vector<2x8x1xf32>
    %432 = vector.broadcast %431 : vector<2x8x1xf32> to vector<2x8x8xf32>
    %433 = arith.mulf %428, %432 : vector<2x8x8xf32>
    %434 = vector.extract_strided_slice %367 {offsets = [0, 0, 24], sizes = [2, 8, 8], strides = [1, 1, 1]} : vector<2x8x32xf32> to vector<2x8x8xf32>
    "tpu.trace_start"() <{level = 10 : i32, message = "bqk,bkd->bqd"}> : () -> ()
    %cst_179 = arith.constant dense<0.000000e+00> : vector<2x8x8xf32>
    %435 = tpu.matmul %433, %434, %cst_179 {dimension_numbers = #tpu.dot_dimension_numbers<[2], [1], [1], [2], [0, 0, 0, 1, 1, 2], [0], [0]>} : vector<2x8x8xf32>, vector<2x8x8xf32>, vector<2x8x8xf32> -> vector<2x8x8xf32>
    "tpu.trace_stop"() : () -> ()
    %436 = tpu.concatenate %384, %401, %418, %435 in 2 : vector<2x8x8xf32>, vector<2x8x8xf32>, vector<2x8x8xf32>, vector<2x8x8xf32> -> vector<2x8x32xf32>
    %437 = vector.shape_cast %436 : vector<2x8x32xf32> to vector<16x32xf32>
    %cst_180 = arith.constant dense<0.000000e+00> : vector<16x32xf32>
    %438 = tpu.matmul %437, %362, %cst_180 {dimension_numbers = #tpu.dot_dimension_numbers<[1], [0], [0], [1], [0, 0, 1, 1], [], []>} : vector<16x32xf32>, vector<32x32xf32>, vector<16x32xf32> -> vector<16x32xf32>
    %439 = vector.broadcast %364 : vector<1x32xf32> to vector<16x32xf32>
    %440 = arith.addf %438, %439 : vector<16x32xf32>
    %441 = arith.addf %440, %350 : vector<16x32xf32>
    %c1_181 = arith.constant 1 : index
    %c0_182 = arith.constant 0 : index
    %c0_183 = arith.constant 0 : index
    %442 = vector.load %arg13[%c1_181, %c0_182, %c0_183] : memref<2x1x32xf32, #tpu.memory_space<vmem>>, vector<1x1x32xf32>
    %443 = vector.shape_cast %442 : vector<1x1x32xf32> to vector<1x32xf32>
    %c1_184 = arith.constant 1 : index
    %c0_185 = arith.constant 0 : index
    %c0_186 = arith.constant 0 : index
    %444 = vector.load %arg14[%c1_184, %c0_185, %c0_186] : memref<2x1x32xf32, #tpu.memory_space<vmem>>, vector<1x1x32xf32>
    %445 = vector.shape_cast %444 : vector<1x1x32xf32> to vector<1x32xf32>
    %cst_187 = arith.constant dense<0.000000e+00> : vector<16xf32>
    %446 = vector.multi_reduction <add>, %441, %cst_187 [1] : vector<16x32xf32> to vector<16xf32>
    %447 = vector.shape_cast %446 : vector<16xf32> to vector<16x1xf32>
    %cst_188 = arith.constant 3.200000e+01 : f32
    %448 = vector.broadcast %cst_188 : f32 to vector<16x1xf32>
    %449 = arith.divf %447, %448 : vector<16x1xf32>
    %450 = vector.broadcast %449 : vector<16x1xf32> to vector<16x32xf32>
    %451 = arith.subf %441, %450 : vector<16x32xf32>
    %452 = arith.mulf %451, %451 : vector<16x32xf32>
    %cst_189 = arith.constant dense<0.000000e+00> : vector<16xf32>
    %453 = vector.multi_reduction <add>, %452, %cst_189 [1] : vector<16x32xf32> to vector<16xf32>
    %454 = vector.shape_cast %453 : vector<16xf32> to vector<16x1xf32>
    %cst_190 = arith.constant 3.200000e+01 : f32
    %455 = vector.broadcast %cst_190 : f32 to vector<16x1xf32>
    %456 = arith.divf %454, %455 : vector<16x1xf32>
    %cst_191 = arith.constant 9.99999974E-6 : f32
    %457 = vector.broadcast %cst_191 : f32 to vector<16x1xf32>
    %458 = arith.addf %456, %457 : vector<16x1xf32>
    %459 = math.rsqrt %458 : vector<16x1xf32>
    %460 = vector.broadcast %459 : vector<16x1xf32> to vector<16x32xf32>
    %461 = arith.mulf %451, %460 : vector<16x32xf32>
    %462 = vector.broadcast %443 : vector<1x32xf32> to vector<16x32xf32>
    %463 = arith.mulf %461, %462 : vector<16x32xf32>
    %464 = vector.broadcast %445 : vector<1x32xf32> to vector<16x32xf32>
    %465 = arith.addf %463, %464 : vector<16x32xf32>
    %c1_192 = arith.constant 1 : index
    %c0_193 = arith.constant 0 : index
    %c0_194 = arith.constant 0 : index
    %466 = vector.load %arg7[%c1_192, %c0_193, %c0_194] : memref<2x32x32xf32, #tpu.memory_space<vmem>>, vector<1x32x32xf32>
    %467 = vector.shape_cast %466 : vector<1x32x32xf32> to vector<32x32xf32>
    %cst_195 = arith.constant dense<0.000000e+00> : vector<16x32xf32>
    %468 = tpu.matmul %465, %467, %cst_195 {dimension_numbers = #tpu.dot_dimension_numbers<[1], [0], [0], [1], [0, 0, 1, 1], [], []>} : vector<16x32xf32>, vector<32x32xf32>, vector<16x32xf32> -> vector<16x32xf32>
    %c1_196 = arith.constant 1 : index
    %c0_197 = arith.constant 0 : index
    %c0_198 = arith.constant 0 : index
    %469 = vector.load %arg8[%c1_196, %c0_197, %c0_198] : memref<2x1x32xf32, #tpu.memory_space<vmem>>, vector<1x1x32xf32>
    %470 = vector.shape_cast %469 : vector<1x1x32xf32> to vector<1x32xf32>
    %471 = vector.broadcast %470 : vector<1x32xf32> to vector<16x32xf32>
    %472 = arith.addf %468, %471 : vector<16x32xf32>
    %c1_199 = arith.constant 1 : index
    %c0_200 = arith.constant 0 : index
    %c0_201 = arith.constant 0 : index
    %473 = vector.load %arg9[%c1_199, %c0_200, %c0_201] : memref<2x32x64xf32, #tpu.memory_space<vmem>>, vector<1x32x64xf32>
    %474 = vector.shape_cast %473 : vector<1x32x64xf32> to vector<32x64xf32>
    %cst_202 = arith.constant dense<0.000000e+00> : vector<16x64xf32>
    %475 = tpu.matmul %5, %474, %cst_202 {dimension_numbers = #tpu.dot_dimension_numbers<[1], [0], [0], [1], [0, 0, 1, 1], [], []>} : vector<16x32xf32>, vector<32x64xf32>, vector<16x64xf32> -> vector<16x64xf32>
    %c1_203 = arith.constant 1 : index
    %c0_204 = arith.constant 0 : index
    %c0_205 = arith.constant 0 : index
    %476 = vector.load %arg10[%c1_203, %c0_204, %c0_205] : memref<2x1x64xf32, #tpu.memory_space<vmem>>, vector<1x1x64xf32>
    %477 = vector.shape_cast %476 : vector<1x1x64xf32> to vector<1x64xf32>
    %478 = vector.broadcast %477 : vector<1x64xf32> to vector<16x64xf32>
    %479 = arith.addf %475, %478 : vector<16x64xf32>
    %480 = vector.extract_strided_slice %479 {offsets = [0, 0], sizes = [16, 32], strides = [1, 1]} : vector<16x64xf32> to vector<16x32xf32>
    %481 = vector.extract_strided_slice %479 {offsets = [0, 32], sizes = [16, 32], strides = [1, 1]} : vector<16x64xf32> to vector<16x32xf32>
    %c1_206 = arith.constant 1 : index
    %c0_207 = arith.constant 0 : index
    %c0_208 = arith.constant 0 : index
    %482 = vector.load %arg11[%c1_206, %c0_207, %c0_208] : memref<2x32x32xf32, #tpu.memory_space<vmem>>, vector<1x32x32xf32>
    %483 = vector.shape_cast %482 : vector<1x32x32xf32> to vector<32x32xf32>
    %c1_209 = arith.constant 1 : index
    %c0_210 = arith.constant 0 : index
    %c0_211 = arith.constant 0 : index
    %484 = vector.load %arg12[%c1_209, %c0_210, %c0_211] : memref<2x1x32xf32, #tpu.memory_space<vmem>>, vector<1x1x32xf32>
    %485 = vector.shape_cast %484 : vector<1x1x32xf32> to vector<1x32xf32>
    %486 = vector.shape_cast %472 : vector<16x32xf32> to vector<2x8x32xf32>
    %487 = vector.shape_cast %480 : vector<16x32xf32> to vector<2x8x32xf32>
    %488 = vector.shape_cast %481 : vector<16x32xf32> to vector<2x8x32xf32>
    %489 = vector.extract_strided_slice %486 {offsets = [0, 0, 0], sizes = [2, 8, 8], strides = [1, 1, 1]} : vector<2x8x32xf32> to vector<2x8x8xf32>
    %490 = vector.extract_strided_slice %487 {offsets = [0, 0, 0], sizes = [2, 8, 8], strides = [1, 1, 1]} : vector<2x8x32xf32> to vector<2x8x8xf32>
    "tpu.trace_start"() <{level = 10 : i32, message = "bqd,bkd->bqk"}> : () -> ()
    %cst_212 = arith.constant dense<0.000000e+00> : vector<2x8x8xf32>
    %491 = tpu.matmul %489, %490, %cst_212 {dimension_numbers = #tpu.dot_dimension_numbers<[2], [2], [1], [1], [0, 0, 0, 1, 1, 1], [0], [0]>} : vector<2x8x8xf32>, vector<2x8x8xf32>, vector<2x8x8xf32> -> vector<2x8x8xf32>
    "tpu.trace_stop"() : () -> ()
    %cst_213 = arith.constant 0.353553385 : f32
    %492 = vector.broadcast %cst_213 : f32 to vector<2x8x8xf32>
    %493 = arith.mulf %491, %492 : vector<2x8x8xf32>
    %cst_214 = arith.constant dense<0xFF800000> : vector<2x8xf32>
    %494 = vector.multi_reduction <maximumf>, %493, %cst_214 [2] : vector<2x8x8xf32> to vector<2x8xf32>
    %495 = vector.shape_cast %494 : vector<2x8xf32> to vector<2x8x1xf32>
    %496 = vector.broadcast %495 : vector<2x8x1xf32> to vector<2x8x8xf32>
    %497 = arith.subf %493, %496 : vector<2x8x8xf32>
    %498 = math.exp %497 : vector<2x8x8xf32>
    %cst_215 = arith.constant dense<0.000000e+00> : vector<2x8xf32>
    %499 = vector.multi_reduction <add>, %498, %cst_215 [2] : vector<2x8x8xf32> to vector<2x8xf32>
    %500 = vector.shape_cast %499 : vector<2x8xf32> to vector<2x8x1xf32>
    %501 = tpu.reciprocal %500 {approx = true} : vector<2x8x1xf32> -> vector<2x8x1xf32>
    %502 = vector.broadcast %501 : vector<2x8x1xf32> to vector<2x8x8xf32>
    %503 = arith.mulf %498, %502 : vector<2x8x8xf32>
    %504 = vector.extract_strided_slice %488 {offsets = [0, 0, 0], sizes = [2, 8, 8], strides = [1, 1, 1]} : vector<2x8x32xf32> to vector<2x8x8xf32>
    "tpu.trace_start"() <{level = 10 : i32, message = "bqk,bkd->bqd"}> : () -> ()
    %cst_216 = arith.constant dense<0.000000e+00> : vector<2x8x8xf32>
    %505 = tpu.matmul %503, %504, %cst_216 {dimension_numbers = #tpu.dot_dimension_numbers<[2], [1], [1], [2], [0, 0, 0, 1, 1, 2], [0], [0]>} : vector<2x8x8xf32>, vector<2x8x8xf32>, vector<2x8x8xf32> -> vector<2x8x8xf32>
    "tpu.trace_stop"() : () -> ()
    %506 = vector.extract_strided_slice %486 {offsets = [0, 0, 8], sizes = [2, 8, 8], strides = [1, 1, 1]} : vector<2x8x32xf32> to vector<2x8x8xf32>
    %507 = vector.extract_strided_slice %487 {offsets = [0, 0, 8], sizes = [2, 8, 8], strides = [1, 1, 1]} : vector<2x8x32xf32> to vector<2x8x8xf32>
    "tpu.trace_start"() <{level = 10 : i32, message = "bqd,bkd->bqk"}> : () -> ()
    %cst_217 = arith.constant dense<0.000000e+00> : vector<2x8x8xf32>
    %508 = tpu.matmul %506, %507, %cst_217 {dimension_numbers = #tpu.dot_dimension_numbers<[2], [2], [1], [1], [0, 0, 0, 1, 1, 1], [0], [0]>} : vector<2x8x8xf32>, vector<2x8x8xf32>, vector<2x8x8xf32> -> vector<2x8x8xf32>
    "tpu.trace_stop"() : () -> ()
    %cst_218 = arith.constant 0.353553385 : f32
    %509 = vector.broadcast %cst_218 : f32 to vector<2x8x8xf32>
    %510 = arith.mulf %508, %509 : vector<2x8x8xf32>
    %cst_219 = arith.constant dense<0xFF800000> : vector<2x8xf32>
    %511 = vector.multi_reduction <maximumf>, %510, %cst_219 [2] : vector<2x8x8xf32> to vector<2x8xf32>
    %512 = vector.shape_cast %511 : vector<2x8xf32> to vector<2x8x1xf32>
    %513 = vector.broadcast %512 : vector<2x8x1xf32> to vector<2x8x8xf32>
    %514 = arith.subf %510, %513 : vector<2x8x8xf32>
    %515 = math.exp %514 : vector<2x8x8xf32>
    %cst_220 = arith.constant dense<0.000000e+00> : vector<2x8xf32>
    %516 = vector.multi_reduction <add>, %515, %cst_220 [2] : vector<2x8x8xf32> to vector<2x8xf32>
    %517 = vector.shape_cast %516 : vector<2x8xf32> to vector<2x8x1xf32>
    %518 = tpu.reciprocal %517 {approx = true} : vector<2x8x1xf32> -> vector<2x8x1xf32>
    %519 = vector.broadcast %518 : vector<2x8x1xf32> to vector<2x8x8xf32>
    %520 = arith.mulf %515, %519 : vector<2x8x8xf32>
    %521 = vector.extract_strided_slice %488 {offsets = [0, 0, 8], sizes = [2, 8, 8], strides = [1, 1, 1]} : vector<2x8x32xf32> to vector<2x8x8xf32>
    "tpu.trace_start"() <{level = 10 : i32, message = "bqk,bkd->bqd"}> : () -> ()
    %cst_221 = arith.constant dense<0.000000e+00> : vector<2x8x8xf32>
    %522 = tpu.matmul %520, %521, %cst_221 {dimension_numbers = #tpu.dot_dimension_numbers<[2], [1], [1], [2], [0, 0, 0, 1, 1, 2], [0], [0]>} : vector<2x8x8xf32>, vector<2x8x8xf32>, vector<2x8x8xf32> -> vector<2x8x8xf32>
    "tpu.trace_stop"() : () -> ()
    %523 = vector.extract_strided_slice %486 {offsets = [0, 0, 16], sizes = [2, 8, 8], strides = [1, 1, 1]} : vector<2x8x32xf32> to vector<2x8x8xf32>
    %524 = vector.extract_strided_slice %487 {offsets = [0, 0, 16], sizes = [2, 8, 8], strides = [1, 1, 1]} : vector<2x8x32xf32> to vector<2x8x8xf32>
    "tpu.trace_start"() <{level = 10 : i32, message = "bqd,bkd->bqk"}> : () -> ()
    %cst_222 = arith.constant dense<0.000000e+00> : vector<2x8x8xf32>
    %525 = tpu.matmul %523, %524, %cst_222 {dimension_numbers = #tpu.dot_dimension_numbers<[2], [2], [1], [1], [0, 0, 0, 1, 1, 1], [0], [0]>} : vector<2x8x8xf32>, vector<2x8x8xf32>, vector<2x8x8xf32> -> vector<2x8x8xf32>
    "tpu.trace_stop"() : () -> ()
    %cst_223 = arith.constant 0.353553385 : f32
    %526 = vector.broadcast %cst_223 : f32 to vector<2x8x8xf32>
    %527 = arith.mulf %525, %526 : vector<2x8x8xf32>
    %cst_224 = arith.constant dense<0xFF800000> : vector<2x8xf32>
    %528 = vector.multi_reduction <maximumf>, %527, %cst_224 [2] : vector<2x8x8xf32> to vector<2x8xf32>
    %529 = vector.shape_cast %528 : vector<2x8xf32> to vector<2x8x1xf32>
    %530 = vector.broadcast %529 : vector<2x8x1xf32> to vector<2x8x8xf32>
    %531 = arith.subf %527, %530 : vector<2x8x8xf32>
    %532 = math.exp %531 : vector<2x8x8xf32>
    %cst_225 = arith.constant dense<0.000000e+00> : vector<2x8xf32>
    %533 = vector.multi_reduction <add>, %532, %cst_225 [2] : vector<2x8x8xf32> to vector<2x8xf32>
    %534 = vector.shape_cast %533 : vector<2x8xf32> to vector<2x8x1xf32>
    %535 = tpu.reciprocal %534 {approx = true} : vector<2x8x1xf32> -> vector<2x8x1xf32>
    %536 = vector.broadcast %535 : vector<2x8x1xf32> to vector<2x8x8xf32>
    %537 = arith.mulf %532, %536 : vector<2x8x8xf32>
    %538 = vector.extract_strided_slice %488 {offsets = [0, 0, 16], sizes = [2, 8, 8], strides = [1, 1, 1]} : vector<2x8x32xf32> to vector<2x8x8xf32>
    "tpu.trace_start"() <{level = 10 : i32, message = "bqk,bkd->bqd"}> : () -> ()
    %cst_226 = arith.constant dense<0.000000e+00> : vector<2x8x8xf32>
    %539 = tpu.matmul %537, %538, %cst_226 {dimension_numbers = #tpu.dot_dimension_numbers<[2], [1], [1], [2], [0, 0, 0, 1, 1, 2], [0], [0]>} : vector<2x8x8xf32>, vector<2x8x8xf32>, vector<2x8x8xf32> -> vector<2x8x8xf32>
    "tpu.trace_stop"() : () -> ()
    %540 = vector.extract_strided_slice %486 {offsets = [0, 0, 24], sizes = [2, 8, 8], strides = [1, 1, 1]} : vector<2x8x32xf32> to vector<2x8x8xf32>
    %541 = vector.extract_strided_slice %487 {offsets = [0, 0, 24], sizes = [2, 8, 8], strides = [1, 1, 1]} : vector<2x8x32xf32> to vector<2x8x8xf32>
    "tpu.trace_start"() <{level = 10 : i32, message = "bqd,bkd->bqk"}> : () -> ()
    %cst_227 = arith.constant dense<0.000000e+00> : vector<2x8x8xf32>
    %542 = tpu.matmul %540, %541, %cst_227 {dimension_numbers = #tpu.dot_dimension_numbers<[2], [2], [1], [1], [0, 0, 0, 1, 1, 1], [0], [0]>} : vector<2x8x8xf32>, vector<2x8x8xf32>, vector<2x8x8xf32> -> vector<2x8x8xf32>
    "tpu.trace_stop"() : () -> ()
    %cst_228 = arith.constant 0.353553385 : f32
    %543 = vector.broadcast %cst_228 : f32 to vector<2x8x8xf32>
    %544 = arith.mulf %542, %543 : vector<2x8x8xf32>
    %cst_229 = arith.constant dense<0xFF800000> : vector<2x8xf32>
    %545 = vector.multi_reduction <maximumf>, %544, %cst_229 [2] : vector<2x8x8xf32> to vector<2x8xf32>
    %546 = vector.shape_cast %545 : vector<2x8xf32> to vector<2x8x1xf32>
    %547 = vector.broadcast %546 : vector<2x8x1xf32> to vector<2x8x8xf32>
    %548 = arith.subf %544, %547 : vector<2x8x8xf32>
    %549 = math.exp %548 : vector<2x8x8xf32>
    %cst_230 = arith.constant dense<0.000000e+00> : vector<2x8xf32>
    %550 = vector.multi_reduction <add>, %549, %cst_230 [2] : vector<2x8x8xf32> to vector<2x8xf32>
    %551 = vector.shape_cast %550 : vector<2x8xf32> to vector<2x8x1xf32>
    %552 = tpu.reciprocal %551 {approx = true} : vector<2x8x1xf32> -> vector<2x8x1xf32>
    %553 = vector.broadcast %552 : vector<2x8x1xf32> to vector<2x8x8xf32>
    %554 = arith.mulf %549, %553 : vector<2x8x8xf32>
    %555 = vector.extract_strided_slice %488 {offsets = [0, 0, 24], sizes = [2, 8, 8], strides = [1, 1, 1]} : vector<2x8x32xf32> to vector<2x8x8xf32>
    "tpu.trace_start"() <{level = 10 : i32, message = "bqk,bkd->bqd"}> : () -> ()
    %cst_231 = arith.constant dense<0.000000e+00> : vector<2x8x8xf32>
    %556 = tpu.matmul %554, %555, %cst_231 {dimension_numbers = #tpu.dot_dimension_numbers<[2], [1], [1], [2], [0, 0, 0, 1, 1, 2], [0], [0]>} : vector<2x8x8xf32>, vector<2x8x8xf32>, vector<2x8x8xf32> -> vector<2x8x8xf32>
    "tpu.trace_stop"() : () -> ()
    %557 = tpu.concatenate %505, %522, %539, %556 in 2 : vector<2x8x8xf32>, vector<2x8x8xf32>, vector<2x8x8xf32>, vector<2x8x8xf32> -> vector<2x8x32xf32>
    %558 = vector.shape_cast %557 : vector<2x8x32xf32> to vector<16x32xf32>
    %cst_232 = arith.constant dense<0.000000e+00> : vector<16x32xf32>
    %559 = tpu.matmul %558, %483, %cst_232 {dimension_numbers = #tpu.dot_dimension_numbers<[1], [0], [0], [1], [0, 0, 1, 1], [], []>} : vector<16x32xf32>, vector<32x32xf32>, vector<16x32xf32> -> vector<16x32xf32>
    %560 = vector.broadcast %485 : vector<1x32xf32> to vector<16x32xf32>
    %561 = arith.addf %559, %560 : vector<16x32xf32>
    %562 = arith.addf %561, %465 : vector<16x32xf32>
    %c1_233 = arith.constant 1 : index
    %c0_234 = arith.constant 0 : index
    %c0_235 = arith.constant 0 : index
    %563 = vector.load %arg15[%c1_233, %c0_234, %c0_235] : memref<2x1x32xf32, #tpu.memory_space<vmem>>, vector<1x1x32xf32>
    %564 = vector.shape_cast %563 : vector<1x1x32xf32> to vector<1x32xf32>
    %c1_236 = arith.constant 1 : index
    %c0_237 = arith.constant 0 : index
    %c0_238 = arith.constant 0 : index
    %565 = vector.load %arg16[%c1_236, %c0_237, %c0_238] : memref<2x1x32xf32, #tpu.memory_space<vmem>>, vector<1x1x32xf32>
    %566 = vector.shape_cast %565 : vector<1x1x32xf32> to vector<1x32xf32>
    %cst_239 = arith.constant dense<0.000000e+00> : vector<16xf32>
    %567 = vector.multi_reduction <add>, %562, %cst_239 [1] : vector<16x32xf32> to vector<16xf32>
    %568 = vector.shape_cast %567 : vector<16xf32> to vector<16x1xf32>
    %cst_240 = arith.constant 3.200000e+01 : f32
    %569 = vector.broadcast %cst_240 : f32 to vector<16x1xf32>
    %570 = arith.divf %568, %569 : vector<16x1xf32>
    %571 = vector.broadcast %570 : vector<16x1xf32> to vector<16x32xf32>
    %572 = arith.subf %562, %571 : vector<16x32xf32>
    %573 = arith.mulf %572, %572 : vector<16x32xf32>
    %cst_241 = arith.constant dense<0.000000e+00> : vector<16xf32>
    %574 = vector.multi_reduction <add>, %573, %cst_241 [1] : vector<16x32xf32> to vector<16xf32>
    %575 = vector.shape_cast %574 : vector<16xf32> to vector<16x1xf32>
    %cst_242 = arith.constant 3.200000e+01 : f32
    %576 = vector.broadcast %cst_242 : f32 to vector<16x1xf32>
    %577 = arith.divf %575, %576 : vector<16x1xf32>
    %cst_243 = arith.constant 9.99999974E-6 : f32
    %578 = vector.broadcast %cst_243 : f32 to vector<16x1xf32>
    %579 = arith.addf %577, %578 : vector<16x1xf32>
    %580 = math.rsqrt %579 : vector<16x1xf32>
    %581 = vector.broadcast %580 : vector<16x1xf32> to vector<16x32xf32>
    %582 = arith.mulf %572, %581 : vector<16x32xf32>
    %583 = vector.broadcast %564 : vector<1x32xf32> to vector<16x32xf32>
    %584 = arith.mulf %582, %583 : vector<16x32xf32>
    %585 = vector.broadcast %566 : vector<1x32xf32> to vector<16x32xf32>
    %586 = arith.addf %584, %585 : vector<16x32xf32>
    %587 = math.absf %586 : vector<16x32xf32>
    %cst_244 = arith.constant dense<0xFF800000> : vector<16xf32>
    %588 = vector.multi_reduction <maximumf>, %587, %cst_244 [1] : vector<16x32xf32> to vector<16xf32>
    %589 = vector.shape_cast %588 : vector<16xf32> to vector<16x1xf32>
    %cst_245 = arith.constant 9.99999974E-6 : f32
    %590 = vector.broadcast %cst_245 : f32 to vector<16x1xf32>
    %591 = arith.maximumf %589, %590 : vector<16x1xf32>
    %592 = tpu.reciprocal %591 {approx = true} : vector<16x1xf32> -> vector<16x1xf32>
    %cst_246 = arith.constant 1.270000e+02 : f32
    %593 = vector.broadcast %cst_246 : f32 to vector<16x1xf32>
    %594 = arith.mulf %593, %592 : vector<16x1xf32>
    %595 = vector.broadcast %594 : vector<16x1xf32> to vector<16x32xf32>
    %596 = arith.mulf %586, %595 : vector<16x32xf32>
    %597 = math.roundeven %596 : vector<16x32xf32>
    %cst_247 = arith.constant -1.280000e+02 : f32
    %cst_248 = arith.constant 1.270000e+02 : f32
    %598 = vector.broadcast %cst_247 : f32 to vector<16x32xf32>
    %599 = arith.maximumf %598, %597 : vector<16x32xf32>
    %600 = vector.broadcast %cst_248 : f32 to vector<16x32xf32>
    %601 = arith.minimumf %600, %599 : vector<16x32xf32>
    %cst_249 = arith.constant 0.00787401571 : f32
    %602 = vector.broadcast %cst_249 : f32 to vector<16x1xf32>
    %603 = arith.mulf %591, %602 : vector<16x1xf32>
    %604 = vector.broadcast %603 : vector<16x1xf32> to vector<16x32xf32>
    %605 = arith.mulf %601, %604 : vector<16x32xf32>
    %c1_250 = arith.constant 1 : index
    %c0_251 = arith.constant 0 : index
    %c0_252 = arith.constant 0 : index
    %606 = vector.load %arg19[%c1_250, %c0_251, %c0_252] : memref<2x32x64xf32, #tpu.memory_space<vmem>>, vector<1x32x64xf32>
    %607 = vector.shape_cast %606 : vector<1x32x64xf32> to vector<32x64xf32>
    %cst_253 = arith.constant dense<0.000000e+00> : vector<16x64xf32>
    %608 = tpu.matmul %605, %607, %cst_253 {dimension_numbers = #tpu.dot_dimension_numbers<[1], [0], [0], [1], [0, 0, 1, 1], [], []>} : vector<16x32xf32>, vector<32x64xf32>, vector<16x64xf32> -> vector<16x64xf32>
    %cst_254 = arith.constant 5.000000e-01 : f32
    %609 = vector.broadcast %cst_254 : f32 to vector<16x64xf32>
    %610 = arith.mulf %608, %609 : vector<16x64xf32>
    %cst_255 = arith.constant 0.707106769 : f32
    %611 = vector.broadcast %cst_255 : f32 to vector<16x64xf32>
    %612 = arith.mulf %608, %611 : vector<16x64xf32>
    %613 = math.absf %612 : vector<16x64xf32>
    %cst_256 = arith.constant 0.327591091 : f32
    %614 = vector.broadcast %cst_256 : f32 to vector<16x64xf32>
    %615 = arith.mulf %614, %613 : vector<16x64xf32>
    %cst_257 = arith.constant 1.000000e+00 : f32
    %616 = vector.broadcast %cst_257 : f32 to vector<16x64xf32>
    %617 = arith.addf %616, %615 : vector<16x64xf32>
    %cst_258 = arith.constant 1.000000e+00 : f32
    %618 = vector.broadcast %cst_258 : f32 to vector<16x64xf32>
    %619 = arith.divf %618, %617 : vector<16x64xf32>
    %cst_259 = arith.constant 1.06140542 : f32
    %620 = vector.broadcast %cst_259 : f32 to vector<16x64xf32>
    %621 = arith.mulf %620, %619 : vector<16x64xf32>
    %cst_260 = arith.constant -1.45315206 : f32
    %622 = vector.broadcast %cst_260 : f32 to vector<16x64xf32>
    %623 = arith.addf %621, %622 : vector<16x64xf32>
    %624 = arith.mulf %623, %619 : vector<16x64xf32>
    %cst_261 = arith.constant 1.42141378 : f32
    %625 = vector.broadcast %cst_261 : f32 to vector<16x64xf32>
    %626 = arith.addf %624, %625 : vector<16x64xf32>
    %627 = arith.mulf %626, %619 : vector<16x64xf32>
    %cst_262 = arith.constant -0.284496725 : f32
    %628 = vector.broadcast %cst_262 : f32 to vector<16x64xf32>
    %629 = arith.addf %627, %628 : vector<16x64xf32>
    %630 = arith.mulf %629, %619 : vector<16x64xf32>
    %cst_263 = arith.constant 0.254829586 : f32
    %631 = vector.broadcast %cst_263 : f32 to vector<16x64xf32>
    %632 = arith.addf %630, %631 : vector<16x64xf32>
    %633 = arith.mulf %632, %619 : vector<16x64xf32>
    %cst_264 = arith.constant 0.000000e+00 : f32
    %634 = vector.broadcast %cst_264 : f32 to vector<16x64xf32>
    %635 = arith.subf %634, %613 : vector<16x64xf32>
    %636 = arith.mulf %635, %613 : vector<16x64xf32>
    %637 = math.exp %636 : vector<16x64xf32>
    %638 = arith.mulf %633, %637 : vector<16x64xf32>
    %cst_265 = arith.constant 1.000000e+00 : f32
    %639 = vector.broadcast %cst_265 : f32 to vector<16x64xf32>
    %640 = arith.subf %639, %638 : vector<16x64xf32>
    %cst_266 = arith.constant 0.000000e+00 : f32
    %641 = vector.broadcast %cst_266 : f32 to vector<16x64xf32>
    %642 = arith.cmpf olt, %612, %641 : vector<16x64xf32>
    %cst_267 = arith.constant 0.000000e+00 : f32
    %643 = vector.broadcast %cst_267 : f32 to vector<16x64xf32>
    %644 = arith.subf %643, %640 : vector<16x64xf32>
    %645 = arith.select %642, %644, %640 : vector<16x64xi1>, vector<16x64xf32>
    %cst_268 = arith.constant 1.000000e+00 : f32
    %646 = vector.broadcast %cst_268 : f32 to vector<16x64xf32>
    %647 = arith.addf %646, %645 : vector<16x64xf32>
    %648 = arith.mulf %610, %647 : vector<16x64xf32>
    %649 = math.absf %648 : vector<16x64xf32>
    %cst_269 = arith.constant dense<0xFF800000> : vector<16xf32>
    %650 = vector.multi_reduction <maximumf>, %649, %cst_269 [1] : vector<16x64xf32> to vector<16xf32>
    %651 = vector.shape_cast %650 : vector<16xf32> to vector<16x1xf32>
    %cst_270 = arith.constant 9.99999974E-6 : f32
    %652 = vector.broadcast %cst_270 : f32 to vector<16x1xf32>
    %653 = arith.maximumf %651, %652 : vector<16x1xf32>
    %654 = tpu.reciprocal %653 {approx = true} : vector<16x1xf32> -> vector<16x1xf32>
    %cst_271 = arith.constant 1.270000e+02 : f32
    %655 = vector.broadcast %cst_271 : f32 to vector<16x1xf32>
    %656 = arith.mulf %655, %654 : vector<16x1xf32>
    %657 = vector.broadcast %656 : vector<16x1xf32> to vector<16x64xf32>
    %658 = arith.mulf %648, %657 : vector<16x64xf32>
    %659 = math.roundeven %658 : vector<16x64xf32>
    %cst_272 = arith.constant -1.280000e+02 : f32
    %cst_273 = arith.constant 1.270000e+02 : f32
    %660 = vector.broadcast %cst_272 : f32 to vector<16x64xf32>
    %661 = arith.maximumf %660, %659 : vector<16x64xf32>
    %662 = vector.broadcast %cst_273 : f32 to vector<16x64xf32>
    %663 = arith.minimumf %662, %661 : vector<16x64xf32>
    %cst_274 = arith.constant 0.00787401571 : f32
    %664 = vector.broadcast %cst_274 : f32 to vector<16x1xf32>
    %665 = arith.mulf %653, %664 : vector<16x1xf32>
    %666 = vector.broadcast %665 : vector<16x1xf32> to vector<16x64xf32>
    %667 = arith.mulf %663, %666 : vector<16x64xf32>
    %c1_275 = arith.constant 1 : index
    %c0_276 = arith.constant 0 : index
    %c0_277 = arith.constant 0 : index
    %668 = vector.load %arg20[%c1_275, %c0_276, %c0_277] : memref<2x64x32xf32, #tpu.memory_space<vmem>>, vector<1x64x32xf32>
    %669 = vector.shape_cast %668 : vector<1x64x32xf32> to vector<64x32xf32>
    %cst_278 = arith.constant dense<0.000000e+00> : vector<16x32xf32>
    %670 = tpu.matmul %667, %669, %cst_278 {dimension_numbers = #tpu.dot_dimension_numbers<[1], [0], [0], [1], [0, 0, 1, 1], [], []>} : vector<16x64xf32>, vector<64x32xf32>, vector<16x32xf32> -> vector<16x32xf32>
    %671 = arith.addf %670, %586 : vector<16x32xf32>
    %c1_279 = arith.constant 1 : index
    %c0_280 = arith.constant 0 : index
    %c0_281 = arith.constant 0 : index
    %672 = vector.load %arg17[%c1_279, %c0_280, %c0_281] : memref<2x1x32xf32, #tpu.memory_space<vmem>>, vector<1x1x32xf32>
    %673 = vector.shape_cast %672 : vector<1x1x32xf32> to vector<1x32xf32>
    %c1_282 = arith.constant 1 : index
    %c0_283 = arith.constant 0 : index
    %c0_284 = arith.constant 0 : index
    %674 = vector.load %arg18[%c1_282, %c0_283, %c0_284] : memref<2x1x32xf32, #tpu.memory_space<vmem>>, vector<1x1x32xf32>
    %675 = vector.shape_cast %674 : vector<1x1x32xf32> to vector<1x32xf32>
    %cst_285 = arith.constant dense<0.000000e+00> : vector<16xf32>
    %676 = vector.multi_reduction <add>, %671, %cst_285 [1] : vector<16x32xf32> to vector<16xf32>
    %677 = vector.shape_cast %676 : vector<16xf32> to vector<16x1xf32>
    %cst_286 = arith.constant 3.200000e+01 : f32
    %678 = vector.broadcast %cst_286 : f32 to vector<16x1xf32>
    %679 = arith.divf %677, %678 : vector<16x1xf32>
    %680 = vector.broadcast %679 : vector<16x1xf32> to vector<16x32xf32>
    %681 = arith.subf %671, %680 : vector<16x32xf32>
    %682 = arith.mulf %681, %681 : vector<16x32xf32>
    %cst_287 = arith.constant dense<0.000000e+00> : vector<16xf32>
    %683 = vector.multi_reduction <add>, %682, %cst_287 [1] : vector<16x32xf32> to vector<16xf32>
    %684 = vector.shape_cast %683 : vector<16xf32> to vector<16x1xf32>
    %cst_288 = arith.constant 3.200000e+01 : f32
    %685 = vector.broadcast %cst_288 : f32 to vector<16x1xf32>
    %686 = arith.divf %684, %685 : vector<16x1xf32>
    %cst_289 = arith.constant 9.99999974E-6 : f32
    %687 = vector.broadcast %cst_289 : f32 to vector<16x1xf32>
    %688 = arith.addf %686, %687 : vector<16x1xf32>
    %689 = math.rsqrt %688 : vector<16x1xf32>
    %690 = vector.broadcast %689 : vector<16x1xf32> to vector<16x32xf32>
    %691 = arith.mulf %681, %690 : vector<16x32xf32>
    %692 = vector.broadcast %673 : vector<1x32xf32> to vector<16x32xf32>
    %693 = arith.mulf %691, %692 : vector<16x32xf32>
    %694 = vector.broadcast %675 : vector<1x32xf32> to vector<16x32xf32>
    %695 = arith.addf %693, %694 : vector<16x32xf32>
    %c0_290 = arith.constant 0 : index
    %c0_291 = arith.constant 0 : index
    %696 = vector.load %arg21[%c0_290, %c0_291] : memref<16x32xf32, #tpu.memory_space<vmem>>, vector<16x32xf32>
    tpu.vector_store %arg21[%c0_290, %c0_291], %695 {strides = array<i32>} : memref<16x32xf32, #tpu.memory_space<vmem>>, vector<16x32xf32>,
    return
  }
}

</mosaic_0001>

<bundles_post_ra>
// kernel: tpu_custom_call.1
= control target key start
LH: loop header
LB: loop body
LE: loop exit
PB: predicated region body
PF: predicated region fallthrough
CT: control target
= control target key end

     0   :  { %s5314_s0 = inlined_call_operand.hbm [shape: f32[16,32], index: 0, kind: input, shape index: {}]   ;;  %s5315_s1 = inlined_call_operand.hbm [shape: f32[16,32], index: 1, kind: input, shape index: {}]   ;;  %s5316_s2 = inlined_call_operand.hbm [shape: f32[16,32], index: 2, kind: input, shape index: {}]   ;;  %s5317_s3 = inlined_call_operand.vmem [shape: f32[2,32,96], index: 3, kind: input, shape index: {}]   ;;  %s5318_s4 = inlined_call_operand.vmem [shape: f32[2,1,96], index: 4, kind: input, shape index: {}]   ;;  %s5319_s5 = inlined_call_operand.vmem [shape: f32[2,32,32], index: 5, kind: input, shape index: {}]   ;;  %s5320_s6 = inlined_call_operand.vmem [shape: f32[2,1,32], index: 6, kind: input, shape index: {}]   ;;  %s5321_s7 = inlined_call_operand.vmem [shape: f32[2,32,32], index: 7, kind: input, shape index: {}]   ;;  %s5322_s8 = inlined_call_operand.hbm [shape: f32[2,1,32], index: 8, kind: input, shape index: {}]   ;;  %s5323_s9 = inlined_call_operand.hbm [shape: f32[2,32,64], index: 9, kind: input, shape index: {}]   ;;  %s5324_s10 = inlined_call_operand.vmem [shape: f32[2,1,64], index: 10, kind: input, shape index: {}]   ;;  %s5325_s11 = inlined_call_operand.hbm [shape: f32[2,32,32], index: 11, kind: input, shape index: {}]   ;;  %s5326_s12 = inlined_call_operand.vmem [shape: f32[2,1,32], index: 12, kind: input, shape index: {}]   ;;  %s5327_s13 = inlined_call_operand.vmem [shape: f32[2,1,32], index: 13, kind: input, shape index: {}]   ;;  %s5328_s14 = inlined_call_operand.hbm [shape: f32[2,1,32], index: 14, kind: input, shape index: {}]   ;;  %s5329_s15 = inlined_call_operand.vmem [shape: f32[2,1,32], index: 15, kind: input, shape index: {}]   ;;  %s5330_s16 = inlined_call_operand.vmem [shape: f32[2,1,32], index: 16, kind: input, shape index: {}]   ;;  %s5331_s17 = inlined_call_operand.hbm [shape: f32[2,1,32], index: 17, kind: input, shape index: {}]   ;;  %s5332_s18 = inlined_call_operand.vmem [shape: f32[2,1,32], index: 18, kind: input, shape index: {}]   ;;  %s5333_s19 = inlined_call_operand.hbm [shape: f32[2,32,64], index: 19, kind: input, shape index: {}]   ;;  %s5334_s20 = inlined_call_operand.vmem [shape: f32[2,64,32], index: 20, kind: input, shape index: {}]   ;;  %s5335_s21 = inlined_call_operand.hbm [shape: f32[16,32], index: 21, kind: output, shape index: {}]  }
   0x1   :  { %5349 = sst [smem:[#allocation24_spill]] %s5314_s0 }
   0x2   :  { %5350 = sst [smem:[#allocation25_spill]] %s5315_s1 }
   0x3   :  { %5351 = sst [smem:[#allocation26_spill]] %s5316_s2 }
   0x4   :  { %5352 = sst [smem:[#allocation27_spill]] %s5317_s3 }
   0x5   :  { %5353 = sst [smem:[#allocation28_spill]] %s5318_s4 }
   0x6   :  { %5354 = sst [smem:[#allocation29_spill]] %s5319_s5 }
   0x7   :  { %5355 = sst [smem:[#allocation30_spill]] %s5335_s21 }
   0x8   :  { %26 = vsyncpa [#allocation3], 0 }
   0x9   :  { %27 = vsyncpa [#allocation6], 0 }
   0xa   :  { %28 = vsyncpa [#allocation9], 0 }
   0xb   :  { %29 = vsyncpa [#allocation12], 0 }
   0xc   :  { %30 = vsyncpa [#allocation15], 0 }
   0xd   :  { %31 = vsyncpa [#allocation4], 0  ;;  %s5356_s26 = sld [smem:[#allocation25_spill]]  ;;  %s4366_s3 = smov [#allocation5]  }
   0xe   :  { %s51_s28 = sshll.u32 %s4366_s3, 4  ;;  %s85_s4 = sshll.u32 %s5322_s8, 4  ;;  %s52_s28 = int_to_ptr.vmem [resolvable:$true] %s51_s28  ;;  %s86_s4 = int_to_ptr.hbm [resolvable:$true] %s85_s4 }
   0xf   :  { %s5341_s30 = smov 128   ;;  %s5347_s5 = smov 8  }
  0x10   :  { %s4369_s22 = smov [#allocation8]   ;;  %s5339_s1 = smov 16  }
  0x11   :  { %s87_s23 = sshll.u32 %s4369_s22, 4  ;;  %s4371_s24 = smov 1   ;;  %s88_s23 = int_to_ptr.vmem [resolvable:$true] %s87_s23 }
  0x12   :  { %93 = dma.hbm_to_vmem [thread:$0]  %s86_s4, 32, %s88_s23, [#allocation9], %s5339_s1, %s5339_s1, %s4371_s24  }
  0x13   :  { %s49_s27 = sshll.u32 %s5356_s26, 4  ;;  %s113_s8 = sshll.u32 %s5325_s11, 4  ;;  %s50_s27 = int_to_ptr.hbm [resolvable:$true] %s49_s27  ;;  %s114_s8 = int_to_ptr.hbm [resolvable:$true] %s113_s8 }
  0x14   :  { %57 = dma.hbm_to_vmem [thread:$0]  %s50_s27, 256, %s52_s28, [#allocation6], %s5341_s30, %s5341_s30, %s5347_s5  }
  0x15   :  { %s4372_s26 = smov [#allocation11]   ;;  %s147_s28 = sshll.u32 %s5331_s17, 4  ;;  %s148_s28 = int_to_ptr.hbm [resolvable:$true] %s147_s28 }
  0x16   :  { %s115_s3 = sshll.u32 %s4372_s26, 4  ;;  %s4373_s0 = smov [#allocation14]   ;;  %s116_s3 = int_to_ptr.vmem [resolvable:$true] %s115_s3 }
  0x17   :  { %121 = dma.hbm_to_vmem [thread:$0]  %s114_s8, 1024, %s116_s3, [#allocation12], %s5341_s30, %s5341_s30, %s5347_s5  }
  0x18   :  { %s149_s22 = sshll.u32 %s4373_s0, 4  ;;  %s5357_s1 = sld [smem:[#allocation24_spill]]  ;;  %s150_s22 = int_to_ptr.vmem [resolvable:$true] %s149_s22 }
  0x19   :  { %s5358_s11 = smov 16   ;;  %s5359_s17 = sld [smem:[#allocation26_spill]] }
  0x1a   :  { %155 = dma.hbm_to_vmem [thread:$0]  %s148_s28, 32, %s150_s22, [#allocation15], %s5358_s11, %s5358_s11, %s4371_s24  }
  0x1b   :  { %s4374_s27 = smov [#allocation2]   ;;  %s4375_s8 = smov [#allocation7]  }
  0x1c   :  { %s38_s21 = sshll.u32 %s4374_s27, 4  ;;  %s98_s4 = sshll.u32 %s5323_s9, 4  ;;  %s39_s21 = int_to_ptr.vmem [resolvable:$true] %s38_s21  ;;  %s99_s4 = int_to_ptr.hbm [resolvable:$true] %s98_s4 }
  0x1d   :  { %s130_s23 = sshll.u32 %s5328_s14, 4  ;;  %s4376_s25 = smov [#allocation10]   ;;  %s131_s23 = int_to_ptr.hbm [resolvable:$true] %s130_s23 }
  0x1e   :  { %s36_s2 = sshll.u32 %s5357_s1, 4  ;;  %s64_s1 = sshll.u32 %s4375_s8, 4  ;;  %s37_s2 = int_to_ptr.hbm [resolvable:$true] %s36_s2  ;;  %s65_s1 = int_to_ptr.vmem [resolvable:$true] %s64_s1 }
  0x1f   :  { %s62_s29 = sshll.u32 %s5359_s17, 4  ;;  %s100_s26 = sshll.u32 %s4376_s25, 4  ;;  %s63_s29 = int_to_ptr.hbm [resolvable:$true] %s62_s29  ;;  %s101_s26 = int_to_ptr.vmem [resolvable:$true] %s100_s26 }
  0x20   :  { %44 = dma.hbm_to_vmem [thread:$0]  %s37_s2, 256, %s39_s21, [#allocation3], %s5341_s30, %s5341_s30, %s5347_s5  }
  0x21   :  { %70 = dma.hbm_to_vmem [thread:$0]  %s63_s29, 256, %s65_s1, [#allocation6], %s5341_s30, %s5341_s30, %s5347_s5  }
  0x22   :  { %106 = dma.hbm_to_vmem [thread:$0]  %s99_s4, 1024, %s101_s26, [#allocation9], %s5341_s30, %s5341_s30, %s5347_s5  }
  0x23   :  { %s4377_s21 = smov [#allocation13]   ;;  %s162_s27 = sshll.u32 %s5333_s19, 4  ;;  %s163_s27 = int_to_ptr.hbm [resolvable:$true] %s162_s27 }
  0x24   :  { %s132_s9 = sshll.u32 %s4377_s21, 4  ;;  %s4378_s14 = smov [#allocation16]   ;;  %s133_s9 = int_to_ptr.vmem [resolvable:$true] %s132_s9 }
  0x25   :  { %138 = dma.hbm_to_vmem [thread:$0]  %s131_s23, 32, %s133_s9, [#allocation12], %s5358_s11, %s5358_s11, %s4371_s24  }
  0x26   :  { %s164_s29 = sshll.u32 %s4378_s14, 4  ;;  %s165_s29 = int_to_ptr.vmem [resolvable:$true] %s164_s29 }
  0x27   :  { %170 = dma.hbm_to_vmem [thread:$0]  %s163_s27, 1024, %s165_s29, [#allocation15], %s5341_s30, %s5341_s30, %s5347_s5  }
  0x28   :  { %4354 = dma.done.wait [#allocation3], 256  }
  0x29   :  { %4355 = vsyncadd [#allocation3], 4294967040 }
  0x2a   :  { %4356 = dma.done.wait [#allocation6], 512  }
  0x2b   :  { %4357 = vsyncadd [#allocation6], 4294966784 }
  0x2c   :  { %4358 = dma.done.wait [#allocation9], 1056  }
  0x2d   :  { %4359 = vsyncadd [#allocation9], 4294966240 }
  0x2e   :  { %4360 = dma.done.wait [#allocation12], 1056  }
  0x2f   :  { %4361 = vsyncadd [#allocation12], 4294966240 }
  0x30   :  { %4362 = dma.done.wait [#allocation15], 1056  }
  0x31   :  { %4363 = vsyncadd [#allocation15], 4294966240  ;;  %s5360_s8 = sld [smem:[#allocation27_spill]]  ;;  %v209_v2 = vld [vmem:[#allocation2] sm:$0xff]  ;;  %vm227_vm0 = vcmask 261120   ;;  %v212_v7 = vld [vmem:[#allocation7 + $0x8] sm:$0xff] }
  0x32   :  { %v211_v3 = vld [vmem:[#allocation7] sm:$0xff]  ;;  %v210_v9 = vld [vmem:[#allocation2 + $0x8] sm:$0xff]  ;;  %v214_v10 = vmul.f32 0.17677669, %v212_v7  ;;  %s5361_s26 = sld [smem:[#allocation28_spill]]  ;;  %s4379_s21 = smov 88  }
  0x33   :  { %v213_v5 = vmul.f32 0.17677669, %v211_v3  ;;  %s4380_s9 = smov 96   ;;  %s4381_s2 = smov 80   ;;  %vm265_vm1 = vcmask 64512   ;;  %vm815_vm2 = vcmask 130048  }
  0x34   :  { %v4573_v11 = vadd.f32 %v214_v10, %v210_v9  ;;  %s4382_s17 = smov 120   ;;  %s4383_s27 = smov 72   ;;  %vm818_vm3 = vcmask 195584  }
  0x35   :  { %v4569_v8 = vadd.f32 %v213_v5, %v209_v2  ;;  %s4384_s14 = smov 112   ;;  %s4385_s29 = smov 104  }
  0x36   :  { %s4386_s19 = smov 64   ;;  %s5343_s24 = smov 48  }
  0x37   :  { %v222_v0 = vld [vmem:[%s5360_s8 + $0x18] sm:$0xff]  ;;  %v221_v1 = vld [vmem:[%s5360_s8 + $0x10] sm:$0xff]  ;;  %v220_v4 = vld [vmem:[%s5360_s8 + $0x8] sm:$0xff]  ;;  %s5344_s1 = smov 56   ;;  %s5342_s3 = smov 40  }
  0x38   :  { %246 = vmatpush.msra.mxu0 %v222_v0  ;;  %v219_v6 = vld [vmem:[%s5360_s8] sm:$0xff]  ;;  %s5345_s0 = smov 24   ;;  %s5362_s22 = sld [smem:[#allocation29_spill]] }
  0x39   :  { %v3904_v12 = vld [vmem:[%s5361_s26] ss:$0 sm:$0xff] }
  0x3a   :  { %247 = vmatpush.msra.mxu0 %v221_v1 }
  0x3c   :  { %248 = vmatpush.msra.mxu0 %v220_v4 }
  0x3e   :  { %249 = vmatpush.msra.mxu0 %v219_v6 }
  0x3f   :  { %3606 = vmatmul.msk.f32.vlgmr.msra.gmra.mxu0 %vm227_vm0, %v4569_v8 }
  0x47   :  { %3607 = vmatmul.msk.f32.gmra.mxu0 %vm227_vm0, %v4573_v11 }
  0xbc   :  { %v251_v13 = vpop.f32.mrf.mxu0 }
  0xbd   :  { %v4580_v14 = vadd.f32 %v3904_v12, %v251_v13 }
  0xbf   :  { %395 = vrot.lane.b32.xlu2 %v4580_v14, %s4379_s21  ;;  %263 = vrot.lane.b32.xlu0 %v4580_v14, %s4380_s9 }
  0xc4   :  { %v254_v15 = vpop.f32.mrf.mxu0 }
  0xc5   :  { %v4586_v16 = vadd.f32 %v3904_v12, %v254_v15 }
  0xc7   :  { %423 = vrot.lane.b32.xlu1 %v4586_v16, %s4379_s21  ;;  %527 = vrot.lane.b32.xlu2 %v4580_v14, %s4381_s2  ;;  %v3849_v17 = vpack.i.bf16 %v4586_v16, %v4580_v14 }
  0xc8   :  { %291 = vrot.lane.b32.xlu0 %v4586_v16, %s4380_s9 }
  0xcf   :  { %421 = vrot.lane.b32.xlu1 %v4586_v16, %s4382_s17  ;;  %659 = vrot.lane.b32.xlu2 %v4580_v14, %s4383_s27 }
  0xd0   :  { %393 = vrot.lane.b32.xlu0 %v4580_v14, %s4382_s17 }
  0xd7   :  { %525 = vrot.lane.b32.xlu1 %v4580_v14, %s4384_s14  ;;  %553 = vrot.lane.b32.xlu2 %v4586_v16, %s4384_s14 }
  0xd8   :  { %657 = vrot.lane.b32.xlu0 %v4580_v14, %s4385_s29 }
  0xdf   :  { %555 = vrot.lane.b32.xlu1 %v4586_v16, %s4381_s2  ;;  %3850 = vrot.lane.b32.xlu2 %v3849_v17, %s4386_s19 }
  0xe0   :  { %687 = vrot.lane.b32.xlu0 %v4586_v16, %s4383_s27 }
  0xe7   :  { %685 = vrot.lane.b32.xlu1 %v4586_v16, %s4385_s29 }
 0x119   :  { %v396_v18 = vpop.permute.xlu2 %395 }
 0x121   :  { %v528_v19 = vpop.permute.xlu2 %527 }
 0x129   :  { %v660_v20 = vpop.permute.xlu2 %659 }
 0x131   :  { %v554_v21 = vpop.permute.xlu2 %553  ;;  %v264_v22 = vpop.permute.xlu0 %263 }
 0x132   :  { %3608 = vmatpush.xpose.msk.msra.mxu1 %vm265_vm1, %v264_v22 }
 0x135   :  { %3609 = vmatmul.msk.f32.vlgmr.msra.gmra.mxu1 %vm265_vm1, %v4580_v14 }
 0x136   :  { %3614 = vmatpush.xpose.msk.msrb.mxu1 %vm265_vm1, %v396_v18 }
 0x139   :  { %v424_v23 = vpop.permute.xlu1 %423  ;;  %v3851_v24 = vpop.permute.xlu2 %3850 }
 0x13a   :  { %v292_v25 = vpop.permute.xlu0 %291  ;;  %v3852_v26 = vunpack.i.l.bf16 %v3851_v24  ;;  %v3853_v27 = vunpack.i.h.bf16 %v3851_v24 }
 0x13b   :  { %3610 = vmatpush.xpose.msk.msra.mxu2 %vm265_vm1, %v292_v25 }
 0x13c   :  { %362 = vmatpush.msra.mxu3 %v3852_v26 }
 0x13e   :  { %388 = vmatpush.msrb.mxu3 %v3853_v27  ;;  %3611 = vmatmul.msk.f32.vlgmr.msra.gmra.mxu2 %vm265_vm1, %v4586_v16 }
 0x13f   :  { %3616 = vmatpush.xpose.msk.msrb.mxu2 %vm265_vm1, %v424_v23 }
 0x141   :  { %v422_v28 = vpop.permute.xlu1 %421 }
 0x142   :  { %v394_v29 = vpop.permute.xlu0 %393 }
 0x143   :  { %3620 = vmatpush.xpose.msk.msra.mxu2 %vm265_vm1, %v528_v19  ;;  %3615 = vmatmul.msk.f32.vlgmr.msrb.gmra.mxu1 %vm265_vm1, %v394_v29 }
 0x146   :  { %3617 = vmatmul.msk.f32.vlgmr.msrb.gmra.mxu2 %vm265_vm1, %v422_v28 }
 0x147   :  { %3626 = vmatpush.xpose.msk.msrb.mxu2 %vm265_vm1, %v660_v20 }
 0x149   :  { %v526_v30 = vpop.permute.xlu1 %525 }
 0x14a   :  { %v658_v31 = vpop.permute.xlu0 %657 }
 0x14e   :  { %3621 = vmatmul.msk.f32.vlgmr.msra.gmra.mxu2 %vm265_vm1, %v526_v30 }
 0x151   :  { %v556_v32 = vpop.permute.xlu1 %555 }
 0x152   :  { %v688_v33 = vpop.permute.xlu0 %687  ;;  %3622 = vmatpush.xpose.msk.msrb.mxu0 %vm265_vm1, %v556_v32 }
 0x155   :  { %3623 = vmatmul.msk.f32.vlgmr.msrb.gmra.mxu0 %vm265_vm1, %v554_v21 }
 0x156   :  { %3628 = vmatpush.xpose.msk.msra.mxu0 %vm265_vm1, %v688_v33  ;;  %3627 = vmatmul.msk.f32.vlgmr.msrb.gmra.mxu2 %vm265_vm1, %v658_v31 }
 0x159   :  { %v686_v34 = vpop.permute.xlu1 %685 }
 0x15d   :  { %3629 = vmatmul.msk.f32.vlgmr.msra.gmra.mxu0 %vm265_vm1, %v686_v34 }
 0x1b2   :  { %v287_v35 = vpop.f32.mrf.mxu1 }
 0x1b3   :  { %v317_v36 = vmul.f32 0.35355338, %v287_v35 }
 0x1b5   :  { %v319_v37 = vsel %vm265_vm1, %v317_v36, -inf }
 0x1b6   :  { %320 = vmax.xlane.f32.xlu2 %v319_v37 }
 0x1c0   :  { %v418_v38 = vpop.f32.mrf.mxu1 }
 0x1c1   :  { %v449_v39 = vmul.f32 0.35355338, %v418_v38  ;;  %v314_v40 = vpop.f32.mrf.mxu2 }
 0x1c2   :  { %v318_v41 = vmul.f32 0.35355338, %v314_v40 }
 0x1c3   :  { %v451_v42 = vsel %vm265_vm1, %v449_v39, -inf }
 0x1c4   :  { %452 = vmax.xlane.f32.xlu1 %v451_v42  ;;  %v322_v43 = vsel %vm265_vm1, %v318_v41, -inf }
 0x1c5   :  { %323 = vmax.xlane.f32.xlu0 %v322_v43 }
 0x1c9   :  { %v446_v44 = vpop.f32.mrf.mxu2 }
 0x1ca   :  { %v450_v57 = vmul.f32 0.35355338, %v446_v44 }
 0x1cc   :  { %v454_v58 = vsel %vm265_vm1, %v450_v57, -inf }
 0x1d1   :  { %v550_v45 = vpop.f32.mrf.mxu2 }
 0x1d2   :  { %v581_v46 = vmul.f32 0.35355338, %v550_v45  ;;  %v578_v47 = vpop.f32.mrf.mxu0 }
 0x1d3   :  { %v4636_v48 = vmul.f32 0.35355338, %v578_v47 }
 0x1d4   :  { %v583_v49 = vsel %vm265_vm1, %v581_v46, -inf }
 0x1d5   :  { %584 = vmax.xlane.f32.xlu2 %v583_v49  ;;  %v586_v50 = vsel %vm265_vm1, %v4636_v48, -inf }
 0x1d6   :  { %587 = vmax.xlane.f32.xlu1 %v586_v50 }
 0x1d9   :  { %v682_v51 = vpop.f32.mrf.mxu2 }
 0x1da   :  { %v713_v52 = vmul.f32 0.35355338, %v682_v51  ;;  %v710_v53 = vpop.f32.mrf.mxu0 }
 0x1db   :  { %v4641_v54 = vmul.f32 0.35355338, %v710_v53 }
 0x1dc   :  { %v715_v55 = vsel %vm265_vm1, %v713_v52, -inf }
 0x1dd   :  { %716 = vmax.xlane.f32.xlu2 %v715_v55  ;;  %v718_v56 = vsel %vm265_vm1, %v4641_v54, -inf }
 0x1de   :  { %719 = vmax.xlane.f32.xlu0 %v718_v56 }
 0x1e6   :  { %455 = vmax.xlane.f32.xlu0 %v454_v58 }
 0x1ef   :  { %605 = vrot.lane.b32.xlu1 %v4580_v14, %s5343_s24 }
 0x1fa   :  { %473 = vrot.lane.b32.xlu0 %v4580_v14, %s5344_s1 }
 0x229   :  { %v321_v59 = vpop.xlane.xlu2 %320 }
 0x22a   :  { %v325_v60 = vsub.f32 %v317_v36, %v321_v59 }
 0x22c   :  { %v327_v61 = vmul.f32 1.442695, %v325_v60 }
 0x22e   :  { %3926 = vpow2.f32 %v327_v61 }
 0x234   :  { %v3927_v62 = vpop.eup %3926 }
 0x235   :  { %v331_v63 = vsel %vm265_vm1, %v3927_v62, 0.0 }
 0x236   :  { %332 = vadd.xlane.f32.xlu2 %v331_v63 }
 0x237   :  { %v453_v0 = vpop.xlane.xlu1 %452 }
 0x238   :  { %v457_v1 = vsub.f32 %v449_v39, %v453_v0  ;;  %v324_v2 = vpop.xlane.xlu0 %323 }
 0x239   :  { %v326_v3 = vsub.f32 %v318_v41, %v324_v2 }
 0x23a   :  { %v459_v4 = vmul.f32 1.442695, %v457_v1 }
 0x23b   :  { %v329_v5 = vmul.f32 1.442695, %v326_v3 }
 0x23c   :  { %3928 = vpow2.f32 %v459_v4 }
 0x23d   :  { %3930 = vpow2.f32 %v329_v5 }
 0x242   :  { %v4652_v6 = vpop.eup %3928 }
 0x243   :  { %v3931_v7 = vpop.eup %3930  ;;  %v463_v9 = vsel %vm265_vm1, %v4652_v6, 0.0 }
 0x244   :  { %464 = vadd.xlane.f32.xlu0 %v463_v9  ;;  %v334_v10 = vsel %vm265_vm1, %v3931_v7, 0.0 }
 0x245   :  { %335 = vadd.xlane.f32.xlu1 %v334_v10 }
 0x248   :  { %v585_v12 = vpop.xlane.xlu2 %584 }
 0x249   :  { %v589_v13 = vsub.f32 %v581_v46, %v585_v12  ;;  %v588_v28 = vpop.xlane.xlu1 %587 }
 0x24b   :  { %v591_v15 = vmul.f32 1.442695, %v589_v13  ;;  %v260_v13 = vld [vmem:[%s5362_s22 + $0x18] sm:$0xff] }
 0x24c   :  { %842 = vmatpush.msra.mxu2 %v260_v13 }
 0x24d   :  { %3932 = vpow2.f32 %v591_v15  ;;  %v259_v15 = vld [vmem:[%s5362_s22 + $0x10] sm:$0xff] }
 0x24e   :  { %737 = vrot.lane.b32.xlu2 %v4580_v14, %s5342_s3  ;;  %v590_v14 = vsub.f32 %v4636_v48, %v588_v28  ;;  %843 = vmatpush.msra.mxu2 %v259_v15 }
 0x250   :  { %v717_v17 = vpop.xlane.xlu2 %716  ;;  %v593_v31 = vmul.f32 1.442695, %v590_v14 }
 0x251   :  { %v721_v18 = vsub.f32 %v713_v52, %v717_v17  ;;  %v720_v19 = vpop.xlane.xlu0 %719  ;;  %v258_v17 = vld [vmem:[%s5362_s22 + $0x8] sm:$0xff] }
 0x252   :  { %v722_v34 = vsub.f32 %v4641_v54, %v720_v19  ;;  %844 = vmatpush.msra.mxu2 %v258_v17  ;;  %v218_v17 = vld [vmem:[#allocation5 + $0x8] sm:$0xff] }
 0x253   :  { %v3933_v20 = vpop.eup %3932  ;;  %v723_v21 = vmul.f32 1.442695, %v721_v18  ;;  %v257_v18 = vld [vmem:[%s5362_s22] sm:$0xff] }
 0x254   :  { %v595_v22 = vsel %vm265_vm1, %v3933_v20, 0.0  ;;  %v725_v35 = vmul.f32 1.442695, %v722_v34  ;;  %845 = vmatpush.msra.mxu2 %v257_v18 }
 0x255   :  { %3934 = vpow2.f32 %v723_v21  ;;  %596 = vadd.xlane.f32.xlu1 %v595_v22 }
 0x259   :  { %v456_v23 = vpop.xlane.xlu0 %455 }
 0x25a   :  { %v458_v24 = vsub.f32 %v450_v57, %v456_v23 }
 0x25b   :  { %v3935_v25 = vpop.eup %3934 }
 0x25c   :  { %v461_v26 = vmul.f32 1.442695, %v458_v24  ;;  %v727_v27 = vsel %vm265_vm1, %v3935_v25, 0.0 }
 0x25d   :  { %728 = vadd.xlane.f32.xlu1 %v727_v27 }
 0x25e   :  { %3936 = vpow2.f32 %v461_v26 }
 0x25f   :  { %3938 = vpow2.f32 %v593_v31 }
 0x260   :  { %3940 = vpow2.f32 %v725_v35 }
 0x261   :  { %v606_v40 = vpop.permute.xlu1 %605 }
 0x264   :  { %v3937_v29 = vpop.eup %3936 }
 0x265   :  { %v466_v30 = vsel %vm265_vm1, %v3937_v29, 0.0  ;;  %v3939_v32 = vpop.eup %3938 }
 0x266   :  { %467 = vadd.xlane.f32.xlu0 %v466_v30  ;;  %v598_v33 = vsel %vm265_vm1, %v3939_v32, 0.0  ;;  %v3941_v36 = vpop.eup %3940  ;;  %v3905_v30 = vld [vmem:[%s5320_s6] ss:$0 sm:$0xff] }
 0x267   :  { %v730_v37 = vsel %vm265_vm1, %v3941_v36, 0.0 }
 0x26c   :  { %v474_v42 = vpop.permute.xlu0 %473 }
 0x276   :  { %499 = vrot.lane.b32.xlu1 %v4586_v16, %s5344_s1  ;;  %s5366_s1 = smov 8  }
 0x277   :  { %599 = vadd.xlane.f32.xlu2 %v598_v33 }
 0x27a   :  { %631 = vrot.lane.b32.xlu0 %v4586_v16, %s5343_s24 }
 0x28f   :  { %763 = vrot.lane.b32.xlu2 %v4586_v16, %s5342_s3  ;;  %s5367_s3 = smov 24  }
 0x2a0   :  { %731 = vadd.xlane.f32.xlu1 %v730_v37 }
 0x2a9   :  { %v333_v38 = vpop.xlane.xlu2 %332 }
 0x2aa   :  { %3942 = vrcp.f32 %v333_v38 }
 0x2b0   :  { %v3943_v39 = vpop.eup %3942 }
 0x2b1   :  { %v339_v41 = vmul.f32 %v3943_v39, %v3927_v62  ;;  %v738_v49 = vpop.permute.xlu2 %737  ;;  %v4391_v39 = vmov 32.0  }
 0x2b3   :  { %3612 = vmatmul.msk.f32.vlgmr.msra.gmra.mxu3 %vm265_vm1, %v339_v41 }
 0x2b4   :  { %494 = vmatpush.msra.mxu3 %v474_v42 }
 0x2b7   :  { %v465_v44 = vpop.xlane.xlu0 %464 }
 0x2b8   :  { %v336_v43 = vpop.xlane.xlu1 %335 }
 0x2b9   :  { %3944 = vrcp.f32 %v336_v43 }
 0x2ba   :  { %3946 = vrcp.f32 %v465_v44 }
 0x2bf   :  { %v3945_v45 = vpop.eup %3944 }
 0x2c0   :  { %v340_v16 = vmul.f32 %v3945_v45, %v3931_v7  ;;  %v3947_v46 = vpop.eup %3946 }
 0x2c1   :  { %v471_v47 = vmul.f32 %v3947_v46, %v4652_v6 }
 0x2c2   :  { %3613 = vmatmul.msk.f32.vlgmr.msrb.gmra.mxu3 %vm265_vm1, %v340_v16 }
 0x2c3   :  { %626 = vmatpush.msrb.mxu3 %v606_v40 }
 0x2c8   :  { %v597_v48 = vpop.xlane.xlu1 %596 }
 0x2c9   :  { %3948 = vrcp.f32 %v597_v48 }
 0x2ca   :  { %3618 = vmatmul.msk.f32.vlgmr.msra.gmra.mxu3 %vm265_vm1, %v471_v47 }
 0x2cb   :  { %758 = vmatpush.msra.mxu3 %v738_v49 }
 0x2cf   :  { %v3949_v50 = vpop.eup %3948 }
 0x2d0   :  { %v603_v51 = vmul.f32 %v3949_v50, %v3933_v20  ;;  %v729_v52 = vpop.xlane.xlu1 %728 }
 0x2d1   :  { %3950 = vrcp.f32 %v729_v52 }
 0x2d2   :  { %3624 = vmatmul.msk.f32.vlgmr.msrb.gmra.mxu3 %vm265_vm1, %v603_v51 }
 0x2d7   :  { %v3951_v53 = vpop.eup %3950 }
 0x2d8   :  { %v735_v54 = vmul.f32 %v3951_v53, %v3935_v25  ;;  %v958_v53 = vld [vmem:[#allocation10 + $0x18] sm:$0xff] }
 0x2d9   :  { %v468_v55 = vpop.xlane.xlu0 %467  ;;  %981 = vmatpush.msrb.mxu3 %v958_v53 }
 0x2da   :  { %3630 = vmatmul.msk.f32.vlgmr.msra.gmra.mxu3 %vm265_vm1, %v735_v54  ;;  %3952 = vrcp.f32 %v468_v55  ;;  %v957_v54 = vld [vmem:[#allocation10 + $0x10] sm:$0xff]  ;;  %v956_v55 = vld [vmem:[#allocation10 + $0x8] sm:$0xff] }
 0x2db   :  { %982 = vmatpush.msrb.mxu3 %v957_v54 }
 0x2dd   :  { %983 = vmatpush.msrb.mxu3 %v956_v55 }
 0x2e0   :  { %v3953_v56 = vpop.eup %3952 }
 0x2e1   :  { %v472_v57 = vmul.f32 %v3953_v56, %v3937_v29  ;;  %v955_v56 = vld [vmem:[#allocation10] sm:$0xff] }
 0x2e2   :  { %984 = vmatpush.msrb.mxu3 %v955_v56 }
 0x2e8   :  { %v500_v58 = vpop.permute.xlu1 %499 }
 0x2e9   :  { %520 = vmatpush.msra.mxu1 %v500_v58  ;;  %v921_v58 = vld [vmem:[%s5321_s7 + $0x18] sm:$0xff] }
 0x2ea   :  { %3619 = vmatmul.msk.f32.vlgmr.msra.gmra.mxu1 %vm265_vm1, %v472_v57  ;;  %v600_v59 = vpop.xlane.xlu2 %599  ;;  %v217_v57 = vld [vmem:[#allocation5] sm:$0xff]  ;;  %944 = vmatpush.msrb.mxu0 %v921_v58 }
 0x2eb   :  { %3954 = vrcp.f32 %v600_v59  ;;  %3636 = vmatmul.msk.f32.vlgmr.msrb.gmra.mxu3 %vm227_vm0, %v217_v57  ;;  %v920_v59 = vld [vmem:[%s5321_s7 + $0x10] sm:$0xff] }
 0x2ec   :  { %v632_v60 = vpop.permute.xlu0 %631  ;;  %945 = vmatpush.msrb.mxu0 %v920_v59 }
 0x2ed   :  { %652 = vmatpush.msrb.mxu1 %v632_v60  ;;  %v919_v60 = vld [vmem:[%s5321_s7 + $0x8] sm:$0xff] }
 0x2ee   :  { %946 = vmatpush.msrb.mxu0 %v919_v60 }
 0x2f1   :  { %v3955_v61 = vpop.eup %3954 }
 0x2f2   :  { %v604_v62 = vmul.f32 %v3955_v61, %v3939_v32  ;;  %v764_v63 = vpop.permute.xlu2 %763  ;;  %v918_v61 = vld [vmem:[%s5321_s7] sm:$0xff] }
 0x2f3   :  { %784 = vmatpush.msra.mxu1 %v764_v63  ;;  %947 = vmatpush.msrb.mxu0 %v918_v61 }
 0x2f4   :  { %3625 = vmatmul.msk.f32.vlgmr.msrb.gmra.mxu1 %vm265_vm1, %v604_v62  ;;  %3637 = vmatmul.msk.f32.gmra.mxu3 %vm227_vm0, %v218_v17 }
 0x313   :  { %v732_v0 = vpop.xlane.xlu1 %731 }
 0x314   :  { %3956 = vrcp.f32 %v732_v0 }
 0x315   :  { %3958 = vrcp.f32 %v4391_v39 }
 0x31a   :  { %v3957_v1 = vpop.eup %3956 }
 0x31b   :  { %v736_v2 = vmul.f32 %v3957_v1, %v3941_v36  ;;  %v3959_v40 = vpop.eup %3958 }
 0x31c   :  { %v864_v41 = vmul.f32 32.0, %v3959_v40  ;;  %vm868_vm4 = vweird.f32 %v3959_v40 }
 0x31d   :  { %3631 = vmatmul.msk.f32.vlgmr.msra.gmra.mxu1 %vm265_vm1, %v736_v2 }
 0x31e   :  { %v865_v42 = vsub.f32 1.0, %v864_v41 }
 0x320   :  { %v866_v43 = vmul.f32 %v3959_v40, %v865_v42 }
 0x322   :  { %v867_v44 = vadd.f32 %v3959_v40, %v866_v43 }
 0x324   :  { %v4714_v45 = vsel %vm868_vm4, %v3959_v40, %v867_v44 }
 0x336   :  { %v364_v3 = vpop.f32.mrf.mxu3 }
 0x345   :  { %v390_v4 = vpop.f32.mrf.mxu3 }
 0x34d   :  { %v496_v5 = vpop.f32.mrf.mxu3 }
 0x34e   :  { %791 = vrot.lane.b32.xlu0 %v496_v5, %s5347_s5 }
 0x355   :  { %v628_v6 = vpop.f32.mrf.mxu3 }
 0x356   :  { %799 = vrot.lane.b32.xlu1 %v628_v6, %s5358_s11 }
 0x35d   :  { %v760_v7 = vpop.f32.mrf.mxu3 }
 0x35e   :  { %807 = vrot.lane.b32.xlu2 %v760_v7, %s5345_s0  ;;  %v3906_v7 = vld [vmem:[%s5327_s13] ss:$0 sm:$0xff] }
 0x367   :  { %v522_v9 = vpop.f32.mrf.mxu1 }
 0x368   :  { %793 = vrot.lane.b32.xlu0 %v522_v9, %s5347_s5 }
 0x371   :  { %v654_v10 = vpop.f32.mrf.mxu1 }
 0x372   :  { %801 = vrot.lane.b32.xlu2 %v654_v10, %s5358_s11 }
 0x39a   :  { %v786_v12 = vpop.f32.mrf.mxu1 }
 0x39b   :  { %809 = vrot.lane.b32.xlu0 %v786_v12, %s5345_s0  ;;  %v3907_v12 = vld [vmem:[#allocation13] ss:$0 sm:$0xff] }
 0x3b8   :  { %v808_v22 = vpop.permute.xlu2 %807 }
 0x3c0   :  { %v792_v19 = vpop.permute.xlu0 %791 }
 0x3c1   :  { %v813_v20 = vsel %vm265_vm1, %v364_v3, %v792_v19 }
 0x3c8   :  { %v800_v21 = vpop.permute.xlu1 %799 }
 0x3c9   :  { %v816_v23 = vsel %vm815_vm2, %v813_v20, %v800_v21 }
 0x3ca   :  { %v819_v24 = vsel %vm818_vm3, %v816_v23, %v808_v22 }
 0x3cb   :  { %3632 = vmatmul.msk.f32.vlgmr.msra.gmra.mxu2 %vm227_vm0, %v819_v24 }
 0x3cc   :  { %v802_v27 = vpop.permute.xlu2 %801 }
 0x3da   :  { %v794_v25 = vpop.permute.xlu0 %793 }
 0x3db   :  { %v814_v26 = vsel %vm265_vm1, %v390_v4, %v794_v25 }
 0x3dc   :  { %v817_v29 = vsel %vm815_vm2, %v814_v26, %v802_v27 }
 0x40d   :  { %v810_v28 = vpop.permute.xlu0 %809 }
 0x40e   :  { %v820_v14 = vsel %vm818_vm3, %v817_v29, %v810_v28 }
 0x40f   :  { %3633 = vmatmul.msk.f32.gmra.mxu2 %vm227_vm0, %v820_v14 }
 0x44e   :  { %v847_v31 = vpop.f32.mrf.mxu2 }
 0x44f   :  { %v848_v32 = vadd.f32 %v3905_v30, %v847_v31  ;;  %v986_v31 = vpop.f32.mrf.mxu3 }
 0x451   :  { %v853_v33 = vadd.f32 %v848_v32, %v4569_v8 }
 0x453   :  { %v857_v34 = vsel %vm227_vm0, %v853_v33, 0.0 }
 0x454   :  { %858 = vadd.xlane.f32.xlu2 %v857_v34 }
 0x492   :  { %v850_v35 = vpop.f32.mrf.mxu2 }
 0x493   :  { %v851_v36 = vadd.f32 %v3905_v30, %v850_v35  ;;  %v3908_v30 = vld [vmem:[%s5324_s10] ss:$0 sm:$0xff] }
 0x494   :  { %v4750_v32 = vadd.f32 %v3908_v30, %v986_v31 }
 0x495   :  { %v854_v37 = vadd.f32 %v851_v36, %v4573_v11  ;;  %v989_v36 = vpop.f32.mrf.mxu3 }
 0x496   :  { %3638 = vmatpush.xpose.msk.msrb.mxu1 %vm265_vm1, %v4750_v32 }
 0x497   :  { %v860_v38 = vsel %vm227_vm0, %v854_v37, 0.0 }
 0x498   :  { %861 = vadd.xlane.f32.xlu0 %v860_v38 }
 0x4ac   :  { %1127 = vrot.lane.b32.xlu0 %v4750_v32, %s4382_s17 }
 0x4c7   :  { %v859_v8 = vpop.xlane.xlu2 %858 }
 0x4c8   :  { %v870_v16 = vmul.f32 %v4714_v45, %v859_v8 }
 0x4ca   :  { %v872_v46 = vsub.f32 %v853_v33, %v870_v16  ;;  %v3909_v33 = vld [vmem:[#allocation8] ss:$0 sm:$0xff] }
 0x4cc   :  { %v874_v47 = vmul.f32 %v872_v46, %v872_v46 }
 0x4ce   :  { %v876_v11 = vsel %vm227_vm0, %v874_v47, 0.0 }
 0x4cf   :  { %877 = vadd.xlane.f32.xlu1 %v876_v11 }
 0x50b   :  { %v862_v48 = vpop.xlane.xlu0 %861 }
 0x50c   :  { %v871_v49 = vmul.f32 %v4714_v45, %v862_v48 }
 0x50e   :  { %v873_v50 = vsub.f32 %v854_v37, %v871_v49  ;;  %v4764_v37 = vadd.f32 %v3908_v30, %v989_v36 }
 0x510   :  { %v875_v51 = vmul.f32 %v873_v50, %v873_v50  ;;  %3640 = vmatpush.xpose.msk.msra.mxu1 %vm265_vm1, %v4764_v37  ;;  %v4781_v41 = vpack.i.bf16 %v4764_v37, %v4750_v32 }
 0x512   :  { %v879_v52 = vsel %vm227_vm0, %v875_v51, 0.0 }
 0x513   :  { %880 = vadd.xlane.f32.xlu2 %v879_v52 }
 0x51e   :  { %v1128_v40 = vpop.permute.xlu0 %1127 }
 0x51f   :  { %3644 = vmatpush.xpose.msk.msra.mxu3 %vm265_vm1, %v1128_v40 }
 0x52b   :  { %1259 = vrot.lane.b32.xlu2 %v4750_v32, %s4384_s14 }
 0x533   :  { %1155 = vrot.lane.b32.xlu2 %v4764_v37, %s4382_s17 }
 0x542   :  { %v878_v62 = vpop.xlane.xlu1 %877 }
 0x543   :  { %v882_v63 = vmul.f32 %v878_v62, %v4714_v45 }
 0x545   :  { %v884_v0 = vadd.f32 1e-05, %v882_v63 }
 0x547   :  { %3960 = vrsqrt.f32 %v884_v0  ;;  %vm892_vm6 = vweird.f32 %v884_v0 }
 0x54d   :  { %v3961_v1 = vpop.eup %3960 }
 0x54e   :  { %v887_v2 = vmul.f32 %v3961_v1, %v884_v0  ;;  %vm893_vm5 = vweird.f32 %v3961_v1 }
 0x54f   :  { %vm894_vm7 = vmor %vm892_vm6, %vm893_vm5 }
 0x550   :  { %v888_v3 = vmul.f32 %v3961_v1, %v887_v2 }
 0x552   :  { %v889_v4 = vmul.f32 0.5, %v888_v3 }
 0x554   :  { %v890_v5 = vsub.f32 1.5, %v889_v4 }
 0x556   :  { %v891_v6 = vmul.f32 %v3961_v1, %v890_v5 }
 0x558   :  { %v895_v9 = vsel %vm894_vm7, %v3961_v1, %v891_v6 }
 0x559   :  { %v906_v10 = vmul.f32 %v895_v9, %v872_v46 }
 0x55b   :  { %v911_v13 = vmul.f32 %v3906_v7, %v906_v10 }
 0x55d   :  { %v4737_v15 = vadd.f32 %v3907_v12, %v911_v13 }
 0x55f   :  { %3634 = vmatmul.msk.f32.vlgmr.msrb.gmra.mxu0 %vm227_vm0, %v4737_v15 }
 0x586   :  { %v881_v18 = vpop.xlane.xlu2 %880 }
 0x587   :  { %v883_v19 = vmul.f32 %v881_v18, %v4714_v45 }
 0x589   :  { %v885_v20 = vadd.f32 1e-05, %v883_v19 }
 0x58b   :  { %3962 = vrsqrt.f32 %v885_v20  ;;  %vm902_vm9 = vweird.f32 %v885_v20 }
 0x58e   :  { %v1260_v42 = vpop.permute.xlu2 %1259 }
 0x58f   :  { %3650 = vmatpush.xpose.msk.msrb.mxu3 %vm265_vm1, %v1260_v42 }
 0x591   :  { %v3963_v21 = vpop.eup %3962 }
 0x592   :  { %v897_v22 = vmul.f32 %v3963_v21, %v885_v20  ;;  %vm903_vm8 = vweird.f32 %v3963_v21 }
 0x593   :  { %vm904_vm10 = vmor %vm902_vm9, %vm903_vm8 }
 0x594   :  { %v898_v23 = vmul.f32 %v3963_v21, %v897_v22 }
 0x596   :  { %v899_v24 = vmul.f32 0.5, %v898_v23  ;;  %v1156_v43 = vpop.permute.xlu2 %1155 }
 0x598   :  { %v900_v25 = vsub.f32 1.5, %v899_v24 }
 0x59a   :  { %v901_v26 = vmul.f32 %v3963_v21, %v900_v25 }
 0x59c   :  { %v905_v27 = vsel %vm904_vm10, %v3963_v21, %v901_v26 }
 0x59d   :  { %v907_v28 = vmul.f32 %v905_v27, %v873_v50 }
 0x59f   :  { %v912_v29 = vmul.f32 %v3906_v7, %v907_v28 }
 0x5a1   :  { %v4743_v14 = vadd.f32 %v3907_v12, %v912_v29 }
 0x5a3   :  { %3635 = vmatmul.msk.f32.gmra.mxu0 %vm227_vm0, %v4743_v14 }
 0x5dc   :  { %v949_v34 = vpop.f32.mrf.mxu0 }
 0x5dd   :  { %v950_v35 = vadd.f32 %v3909_v33, %v949_v34 }
 0x5df   :  { %1125 = vrot.lane.b32.xlu1 %v950_v35, %s4382_s17  ;;  %3639 = vmatmul.msk.f32.vlgmr.msrb.gmra.mxu1 %vm265_vm1, %v950_v35 }
 0x5e0   :  { %1257 = vrot.lane.b32.xlu0 %v950_v35, %s4384_s14  ;;  %3646 = vmatpush.xpose.msk.msrb.mxu1 %vm265_vm1, %v1156_v43 }
 0x5e7   :  { %1391 = vrot.lane.b32.xlu1 %v4750_v32, %s4385_s29 }
 0x5e8   :  { %1389 = vrot.lane.b32.xlu0 %v950_v35, %s4385_s29 }
 0x5f0   :  { %1287 = vrot.lane.b32.xlu0 %v4764_v37, %s4384_s14 }
 0x620   :  { %v952_v38 = vpop.f32.mrf.mxu0 }
 0x621   :  { %v953_v39 = vadd.f32 %v3909_v33, %v952_v38 }
 0x623   :  { %1417 = vrot.lane.b32.xlu0 %v953_v39, %s4385_s29  ;;  %1285 = vrot.lane.b32.xlu2 %v953_v39, %s4384_s14 }
 0x624   :  { %1153 = vrot.lane.b32.xlu1 %v953_v39, %s4382_s17  ;;  %3641 = vmatmul.msk.f32.vlgmr.msra.gmra.mxu1 %vm265_vm1, %v953_v39 }
 0x62c   :  { %1419 = vrot.lane.b32.xlu1 %v4764_v37, %s4385_s29 }
 0x634   :  { %3855 = vrot.lane.b32.xlu1 %v4781_v41, %s4380_s9 }
 0x651   :  { %v1126_v44 = vpop.permute.xlu1 %1125 }
 0x652   :  { %3645 = vmatmul.msk.f32.vlgmr.msra.gmra.mxu3 %vm265_vm1, %v1126_v44  ;;  %v1258_v8 = vpop.permute.xlu0 %1257 }
 0x659   :  { %v1392_v16 = vpop.permute.xlu1 %1391 }
 0x65a   :  { %3651 = vmatmul.msk.f32.vlgmr.msrb.gmra.mxu3 %vm265_vm1, %v1258_v8  ;;  %v1390_v47 = vpop.permute.xlu0 %1389 }
 0x65b   :  { %3656 = vmatpush.xpose.msk.msra.mxu3 %vm265_vm1, %v1392_v16 }
 0x65c   :  { %v1020_v46 = vpop.f32.mrf.mxu1 }
 0x65d   :  { %v1049_v11 = vmul.f32 0.35355338, %v1020_v46 }
 0x65f   :  { %v1051_v48 = vsel %vm265_vm1, %v1049_v11, -inf }
 0x660   :  { %1052 = vmax.xlane.f32.xlu2 %v1051_v48 }
 0x662   :  { %3657 = vmatmul.msk.f32.vlgmr.msra.gmra.mxu3 %vm265_vm1, %v1390_v47  ;;  %v1288_v49 = vpop.permute.xlu0 %1287 }
 0x663   :  { %3652 = vmatpush.xpose.msk.msra.mxu1 %vm265_vm1, %v1288_v49 }
 0x67d   :  { %v1286_v51 = vpop.permute.xlu2 %1285 }
 0x695   :  { %v1418_v56 = vpop.permute.xlu0 %1417 }
 0x696   :  { %v1154_v50 = vpop.permute.xlu1 %1153 }
 0x697   :  { %3647 = vmatmul.msk.f32.vlgmr.msrb.gmra.mxu1 %vm265_vm1, %v1154_v50 }
 0x69e   :  { %v1420_v52 = vpop.permute.xlu1 %1419 }
 0x69f   :  { %3653 = vmatmul.msk.f32.vlgmr.msra.gmra.mxu1 %vm265_vm1, %v1286_v51 }
 0x6a0   :  { %3658 = vmatpush.xpose.msk.msrb.mxu1 %vm265_vm1, %v1420_v52 }
 0x6a1   :  { %v1046_v53 = vpop.f32.mrf.mxu1 }
 0x6a2   :  { %v1050_v54 = vmul.f32 0.35355338, %v1046_v53 }
 0x6a4   :  { %v1054_v55 = vsel %vm265_vm1, %v1050_v54, -inf }
 0x6a5   :  { %1055 = vmax.xlane.f32.xlu0 %v1054_v55 }
 0x6a6   :  { %v3856_v57 = vpop.permute.xlu1 %3855 }
 0x6a7   :  { %v3858_v58 = vunpack.i.h.bf16 %v3856_v57  ;;  %v3857_v59 = vunpack.i.l.bf16 %v3856_v57  ;;  %3659 = vmatmul.msk.f32.vlgmr.msrb.gmra.mxu1 %vm265_vm1, %v1418_v56 }
 0x6a9   :  { %1094 = vmatpush.msrb.mxu2 %v3857_v59  ;;  %1120 = vmatpush.msra.mxu0 %v3858_v58 }
 0x6d3   :  { %v1053_v60 = vpop.xlane.xlu2 %1052 }
 0x6d4   :  { %v1057_v61 = vsub.f32 %v1049_v11, %v1053_v60 }
 0x6d5   :  { %v1150_v62 = vpop.f32.mrf.mxu3 }
 0x6d6   :  { %v1059_v63 = vmul.f32 1.442695, %v1057_v61  ;;  %v1181_v0 = vmul.f32 0.35355338, %v1150_v62 }
 0x6d8   :  { %3964 = vpow2.f32 %v1059_v63  ;;  %v1183_v1 = vsel %vm265_vm1, %v1181_v0, -inf }
 0x6d9   :  { %1184 = vmax.xlane.f32.xlu1 %v1183_v1 }
 0x6dd   :  { %v1282_v2 = vpop.f32.mrf.mxu3 }
 0x6de   :  { %v3965_v3 = vpop.eup %3964  ;;  %v1313_v4 = vmul.f32 0.35355338, %v1282_v2 }
 0x6df   :  { %v1063_v5 = vsel %vm265_vm1, %v3965_v3, 0.0 }
 0x6e0   :  { %1064 = vadd.xlane.f32.xlu0 %v1063_v5  ;;  %v1315_v6 = vsel %vm265_vm1, %v1313_v4, -inf }
 0x6e1   :  { %1316 = vmax.xlane.f32.xlu2 %v1315_v6 }
 0x6e5   :  { %v1414_v7 = vpop.f32.mrf.mxu3 }
 0x6e6   :  { %v4801_v9 = vmul.f32 0.35355338, %v1414_v7 }
 0x6e8   :  { %v1447_v10 = vsel %vm265_vm1, %v4801_v9, -inf }
 0x6e9   :  { %1448 = vmax.xlane.f32.xlu0 %v1447_v10 }
 0x714   :  { %v1178_v12 = vpop.f32.mrf.mxu1 }
 0x715   :  { %v1182_v13 = vmul.f32 0.35355338, %v1178_v12 }
 0x717   :  { %v1186_v17 = vsel %vm265_vm1, %v1182_v13, -inf }
 0x718   :  { %1187 = vmax.xlane.f32.xlu1 %v1186_v17  ;;  %v1056_v18 = vpop.xlane.xlu0 %1055 }
 0x719   :  { %v1058_v19 = vsub.f32 %v1050_v54, %v1056_v18 }
 0x71b   :  { %v1061_v20 = vmul.f32 1.442695, %v1058_v19 }
 0x71c   :  { %v1310_v21 = vpop.f32.mrf.mxu1 }
 0x71d   :  { %3966 = vpow2.f32 %v1061_v20  ;;  %v1314_v22 = vmul.f32 0.35355338, %v1310_v21 }
 0x71f   :  { %v1318_v23 = vsel %vm265_vm1, %v1314_v22, -inf }
 0x720   :  { %1319 = vmax.xlane.f32.xlu2 %v1318_v23 }
 0x723   :  { %v3967_v24 = vpop.eup %3966 }
 0x724   :  { %v1442_v25 = vpop.f32.mrf.mxu1  ;;  %v1066_v26 = vsel %vm265_vm1, %v3967_v24, 0.0 }
 0x725   :  { %v1446_v27 = vmul.f32 0.35355338, %v1442_v25  ;;  %1067 = vadd.xlane.f32.xlu0 %v1066_v26 }
 0x727   :  { %v1450_v28 = vsel %vm265_vm1, %v1446_v27, -inf }
 0x728   :  { %1451 = vmax.xlane.f32.xlu1 %v1450_v28 }
 0x739   :  { %3860 = vrot.lane.b32.xlu0 %v4781_v41, %s4379_s21 }
 0x741   :  { %1337 = vrot.lane.b32.xlu1 %v4750_v32, %s4381_s2  ;;  %1469 = vrot.lane.b32.xlu0 %v4750_v32, %s4383_s27 }
 0x749   :  { %1495 = vrot.lane.b32.xlu0 %v4764_v37, %s4383_s27 }
 0x74c   :  { %v1185_v29 = vpop.xlane.xlu1 %1184 }
 0x74d   :  { %v1189_v30 = vsub.f32 %v1181_v0, %v1185_v29 }
 0x74f   :  { %v1191_v31 = vmul.f32 1.442695, %v1189_v30 }
 0x751   :  { %3968 = vpow2.f32 %v1191_v31 }
 0x753   :  { %v1065_v33 = vpop.xlane.xlu0 %1064 }
 0x754   :  { %3970 = vrcp.f32 %v1065_v33  ;;  %v1317_v39 = vpop.xlane.xlu2 %1316 }
 0x755   :  { %v1321_v41 = vsub.f32 %v1313_v4, %v1317_v39  ;;  %v995_v39 = vld [vmem:[#allocation11 + $0x18] sm:$0xff] }
 0x756   :  { %1572 = vmatpush.msrb.mxu3 %v995_v39 }
 0x757   :  { %v3969_v34 = vpop.eup %3968  ;;  %v1323_v44 = vmul.f32 1.442695, %v1321_v41  ;;  %v992_v41 = vld [vmem:[#allocation11] sm:$0xff] }
 0x758   :  { %v1195_v35 = vsel %vm265_vm1, %v3969_v34, 0.0 }
 0x759   :  { %1196 = vadd.xlane.f32.xlu2 %v1195_v35 }
 0x75a   :  { %v3971_v36 = vpop.eup %3970 }
 0x75b   :  { %v1071_v38 = vmul.f32 %v3971_v36, %v3965_v3 }
 0x75c   :  { %v1449_v43 = vpop.xlane.xlu0 %1448 }
 0x75d   :  { %3642 = vmatmul.msk.f32.vlgmr.msrb.gmra.mxu2 %vm265_vm1, %v1071_v38  ;;  %v1453_v52 = vsub.f32 %v4801_v9, %v1449_v43 }
 0x75f   :  { %v1455_v57 = vmul.f32 1.442695, %v1453_v52  ;;  %v3910_v52 = vld [vmem:[%s5326_s12] ss:$0 sm:$0xff] }
 0x78b   :  { %v1188_v40 = vpop.xlane.xlu1 %1187 }
 0x78c   :  { %v1190_v32 = vsub.f32 %v1182_v13, %v1188_v40  ;;  %v994_v40 = vld [vmem:[#allocation11 + $0x10] sm:$0xff] }
 0x78d   :  { %1573 = vmatpush.msrb.mxu3 %v994_v40 }
 0x78e   :  { %v1193_v42 = vmul.f32 1.442695, %v1190_v32  ;;  %v993_v32 = vld [vmem:[#allocation11 + $0x8] sm:$0xff] }
 0x78f   :  { %1574 = vmatpush.msrb.mxu3 %v993_v32 }
 0x790   :  { %3972 = vpow2.f32 %v1193_v42 }
 0x791   :  { %3974 = vpow2.f32 %v1323_v44  ;;  %1575 = vmatpush.msrb.mxu3 %v992_v41 }
 0x793   :  { %v1320_v8 = vpop.xlane.xlu2 %1319 }
 0x794   :  { %v1322_v46 = vsub.f32 %v1314_v22, %v1320_v8 }
 0x796   :  { %v3973_v16 = vpop.eup %3972  ;;  %v1325_v48 = vmul.f32 1.442695, %v1322_v46 }
 0x797   :  { %v1198_v47 = vsel %vm265_vm1, %v3973_v16, 0.0  ;;  %v3975_v50 = vpop.eup %3974 }
 0x798   :  { %1199 = vadd.xlane.f32.xlu2 %v1198_v47  ;;  %v1068_v11 = vpop.xlane.xlu0 %1067  ;;  %v1327_v55 = vsel %vm265_vm1, %v3975_v50, 0.0 }
 0x799   :  { %3976 = vrcp.f32 %v1068_v11 }
 0x79a   :  { %3978 = vpow2.f32 %v1325_v48 }
 0x79b   :  { %v1452_v49 = vpop.xlane.xlu1 %1451 }
 0x79c   :  { %v1454_v51 = vsub.f32 %v1446_v27, %v1452_v49 }
 0x79e   :  { %v1457_v53 = vmul.f32 1.442695, %v1454_v51 }
 0x79f   :  { %v3977_v54 = vpop.eup %3976 }
 0x7a0   :  { %v1072_v56 = vmul.f32 %v3977_v54, %v3967_v24  ;;  %3980 = vpow2.f32 %v1457_v53  ;;  %1328 = vadd.xlane.f32.xlu2 %v1327_v55  ;;  %v3979_v58 = vpop.eup %3978 }
 0x7a1   :  { %3982 = vpow2.f32 %v1455_v57  ;;  %v1330_v60 = vsel %vm265_vm1, %v3979_v58, 0.0 }
 0x7a2   :  { %3643 = vmatmul.msk.f32.vlgmr.msra.gmra.mxu0 %vm265_vm1, %v1072_v56 }
 0x7a6   :  { %v3981_v59 = vpop.eup %3980 }
 0x7a7   :  { %v1462_v61 = vsel %vm265_vm1, %v3981_v59, 0.0  ;;  %v3983_v63 = vpop.eup %3982 }
 0x7a8   :  { %1331 = vadd.xlane.f32.xlu2 %v1330_v60  ;;  %1463 = vadd.xlane.f32.xlu1 %v1462_v61  ;;  %v1459_v2 = vsel %vm265_vm1, %v3983_v63, 0.0 }
 0x7ab   :  { %v3861_v62 = vpop.permute.xlu0 %3860 }
 0x7ac   :  { %v3863_v0 = vunpack.i.h.bf16 %v3861_v62  ;;  %v3862_v1 = vunpack.i.l.bf16 %v3861_v62 }
 0x7ae   :  { %1226 = vmatpush.msra.mxu2 %v3862_v1  ;;  %1252 = vmatpush.msrb.mxu0 %v3863_v0 }
 0x7b0   :  { %1460 = vadd.xlane.f32.xlu2 %v1459_v2 }
 0x7b3   :  { %v1338_v3 = vpop.permute.xlu1 %1337  ;;  %v1470_v7 = vpop.permute.xlu0 %1469 }
 0x7b4   :  { %1358 = vmatpush.msrb.mxu2 %v1338_v3 }
 0x7bb   :  { %v1496_v26 = vpop.permute.xlu0 %1495 }
 0x7c8   :  { %1363 = vrot.lane.b32.xlu2 %v4764_v37, %s4381_s2 }
 0x7cc   :  { %v1197_v4 = vpop.xlane.xlu2 %1196 }
 0x7cd   :  { %3984 = vrcp.f32 %v1197_v4 }
 0x7d3   :  { %v3985_v5 = vpop.eup %3984 }
 0x7d4   :  { %v1203_v6 = vmul.f32 %v3985_v5, %v3969_v34 }
 0x7d6   :  { %3648 = vmatmul.msk.f32.vlgmr.msra.gmra.mxu2 %vm265_vm1, %v1203_v6 }
 0x7d7   :  { %1490 = vmatpush.msra.mxu2 %v1470_v7 }
 0x7e0   :  { %v1096_v29 = vpop.f32.mrf.mxu2 }
 0x80b   :  { %v1200_v9 = vpop.xlane.xlu2 %1199 }
 0x80c   :  { %3986 = vrcp.f32 %v1200_v9 }
 0x812   :  { %v3987_v10 = vpop.eup %3986 }
 0x813   :  { %v1204_v12 = vmul.f32 %v3987_v10, %v3973_v16  ;;  %v1329_v13 = vpop.xlane.xlu2 %1328 }
 0x814   :  { %3988 = vrcp.f32 %v1329_v13 }
 0x815   :  { %3649 = vmatmul.msk.f32.vlgmr.msrb.gmra.mxu0 %vm265_vm1, %v1204_v12 }
 0x81a   :  { %v3989_v17 = vpop.eup %3988 }
 0x81b   :  { %v1335_v18 = vmul.f32 %v3989_v17, %v3975_v50  ;;  %v1332_v19 = vpop.xlane.xlu2 %1331  ;;  %v1464_v20 = vpop.xlane.xlu1 %1463 }
 0x81c   :  { %3990 = vrcp.f32 %v1332_v19 }
 0x81d   :  { %3654 = vmatmul.msk.f32.vlgmr.msrb.gmra.mxu2 %vm265_vm1, %v1335_v18 }
 0x81f   :  { %v1122_v31 = vpop.f32.mrf.mxu0 }
 0x822   :  { %v3991_v21 = vpop.eup %3990 }
 0x823   :  { %v1461_v37 = vpop.xlane.xlu2 %1460  ;;  %v1336_v23 = vmul.f32 %v3991_v21, %v3979_v58  ;;  %v3911_v21 = vld [vmem:[%s5329_s15] ss:$0 sm:$0xff] }
 0x824   :  { %3992 = vrcp.f32 %v1461_v37 }
 0x825   :  { %3994 = vrcp.f32 %v1464_v20 }
 0x82a   :  { %v3993_v22 = vpop.eup %3992 }
 0x82b   :  { %v1467_v24 = vmul.f32 %v3993_v22, %v3983_v63  ;;  %v1364_v25 = vpop.permute.xlu2 %1363  ;;  %v3995_v27 = vpop.eup %3994 }
 0x82c   :  { %1384 = vmatpush.msra.mxu0 %v1364_v25  ;;  %v1468_v28 = vmul.f32 %v3995_v27, %v3981_v59 }
 0x82d   :  { %3655 = vmatmul.msk.f32.vlgmr.msra.gmra.mxu0 %vm265_vm1, %v1336_v23  ;;  %3660 = vmatmul.msk.f32.vlgmr.msra.gmra.mxu2 %vm265_vm1, %v1467_v24  ;;  %v3912_v24 = vld [vmem:[%s5330_s16] ss:$0 sm:$0xff] }
 0x82e   :  { %1516 = vmatpush.msrb.mxu0 %v1496_v26 }
 0x835   :  { %3661 = vmatmul.msk.f32.vlgmr.msrb.gmra.mxu0 %vm265_vm1, %v1468_v28 }
 0x859   :  { %v1228_v30 = vpop.f32.mrf.mxu2 }
 0x85a   :  { %1523 = vrot.lane.b32.xlu0 %v1228_v30, %s5347_s5 }
 0x892   :  { %v1254_v34 = vpop.f32.mrf.mxu0 }
 0x8a0   :  { %v1360_v33 = vpop.f32.mrf.mxu2 }
 0x8a1   :  { %1531 = vrot.lane.b32.xlu0 %v1360_v33, %s5358_s11 }
 0x8a9   :  { %1525 = vrot.lane.b32.xlu0 %v1254_v34, %s5347_s5 }
 0x8aa   :  { %v1386_v35 = vpop.f32.mrf.mxu0 }
 0x8b0   :  { %v1492_v36 = vpop.f32.mrf.mxu2 }
 0x8b1   :  { %1539 = vrot.lane.b32.xlu2 %v1492_v36, %s5345_s0 }
 0x8b2   :  { %v1518_v38 = vpop.f32.mrf.mxu0 }
 0x8b3   :  { %1541 = vrot.lane.b32.xlu0 %v1518_v38, %s5345_s0  ;;  %s5365_s0 = smov 40  }
 0x8b9   :  { %1533 = vrot.lane.b32.xlu2 %v1386_v35, %s5358_s11 }
 0x8cc   :  { %v1524_v42 = vpop.permute.xlu0 %1523 }
 0x8cd   :  { %v1545_v43 = vsel %vm265_vm1, %v1096_v29, %v1524_v42  ;;  %v1670_v42 = vld [vmem:[#allocation16 + $0x18] sm:$0xff] }
 0x8ce   :  { %1689 = vmatpush.msrb.mxu2 %v1670_v42 }
 0x90b   :  { %v1540_v8 = vpop.permute.xlu2 %1539 }
 0x913   :  { %v1532_v44 = vpop.permute.xlu0 %1531  ;;  %v1534_v48 = vpop.permute.xlu2 %1533 }
 0x914   :  { %v1547_v16 = vsel %vm815_vm2, %v1545_v43, %v1532_v44  ;;  %v1669_v43 = vld [vmem:[#allocation16 + $0x10] sm:$0xff]  ;;  %v1668_v44 = vld [vmem:[#allocation16 + $0x8] sm:$0xff] }
 0x915   :  { %v1549_v46 = vsel %vm818_vm3, %v1547_v16, %v1540_v8  ;;  %1690 = vmatpush.msrb.mxu2 %v1669_v43  ;;  %v1667_v8 = vld [vmem:[#allocation16] sm:$0xff] }
 0x916   :  { %3662 = vmatmul.msk.f32.vlgmr.msrb.gmra.mxu3 %vm227_vm0, %v1549_v46 }
 0x917   :  { %1691 = vmatpush.msrb.mxu2 %v1668_v44 }
 0x919   :  { %1692 = vmatpush.msrb.mxu2 %v1667_v8 }
 0x91b   :  { %v1526_v47 = vpop.permute.xlu0 %1525 }
 0x91c   :  { %v1546_v11 = vsel %vm265_vm1, %v1122_v31, %v1526_v47 }
 0x91d   :  { %v1548_v50 = vsel %vm815_vm2, %v1546_v11, %v1534_v48 }
 0x925   :  { %v1542_v49 = vpop.permute.xlu0 %1541 }
 0x926   :  { %v1550_v51 = vsel %vm818_vm3, %v1548_v50, %v1542_v49 }
 0x927   :  { %3663 = vmatmul.msk.f32.gmra.mxu3 %vm227_vm0, %v1550_v51 }
 0x999   :  { %v1577_v53 = vpop.f32.mrf.mxu3 }
 0x99a   :  { %v1578_v54 = vadd.f32 %v3910_v52, %v1577_v53 }
 0x99c   :  { %v1583_v55 = vadd.f32 %v1578_v54, %v4737_v15 }
 0x99e   :  { %v1587_v56 = vsel %vm227_vm0, %v1583_v55, 0.0 }
 0x99f   :  { %1588 = vadd.xlane.f32.xlu2 %v1587_v56 }
 0x9aa   :  { %v1580_v57 = vpop.f32.mrf.mxu3 }
 0x9ab   :  { %v1581_v58 = vadd.f32 %v3910_v52, %v1580_v57 }
 0x9ad   :  { %v1584_v59 = vadd.f32 %v1581_v58, %v4743_v14 }
 0x9af   :  { %v1590_v60 = vsel %vm227_vm0, %v1584_v59, 0.0 }
 0x9b0   :  { %1591 = vadd.xlane.f32.xlu1 %v1590_v60 }
 0xa12   :  { %v1589_v61 = vpop.xlane.xlu2 %1588 }
 0xa13   :  { %v1593_v62 = vmul.f32 %v1589_v61, %v4714_v45 }
 0xa15   :  { %v1595_v63 = vsub.f32 %v1583_v55, %v1593_v62 }
 0xa17   :  { %v1597_v0 = vmul.f32 %v1595_v63, %v1595_v63 }
 0xa19   :  { %v1599_v1 = vsel %vm227_vm0, %v1597_v0, 0.0 }
 0xa1a   :  { %1600 = vadd.xlane.f32.xlu0 %v1599_v1 }
 0xa23   :  { %v1592_v2 = vpop.xlane.xlu1 %1591 }
 0xa24   :  { %v1594_v15 = vmul.f32 %v1592_v2, %v4714_v45 }
 0xa26   :  { %v1596_v3 = vsub.f32 %v1584_v59, %v1594_v15 }
 0xa28   :  { %v1598_v4 = vmul.f32 %v1596_v3, %v1596_v3 }
 0xa2a   :  { %v1602_v5 = vsel %vm227_vm0, %v1598_v4, 0.0 }
 0xa2b   :  { %1603 = vadd.xlane.f32.xlu1 %v1602_v5 }
 0xa8d   :  { %v1601_v14 = vpop.xlane.xlu0 %1600 }
 0xa8e   :  { %v1605_v6 = vmul.f32 %v1601_v14, %v4714_v45 }
 0xa90   :  { %v1607_v7 = vadd.f32 1e-05, %v1605_v6 }
 0xa92   :  { %3996 = vrsqrt.f32 %v1607_v7  ;;  %vm1615_vm12 = vweird.f32 %v1607_v7 }
 0xa98   :  { %v3997_v9 = vpop.eup %3996 }
 0xa99   :  { %v1610_v10 = vmul.f32 %v3997_v9, %v1607_v7  ;;  %vm1616_vm11 = vweird.f32 %v3997_v9 }
 0xa9a   :  { %vm1617_vm13 = vmor %vm1615_vm12, %vm1616_vm11 }
 0xa9b   :  { %v1611_v12 = vmul.f32 %v3997_v9, %v1610_v10 }
 0xa9d   :  { %v1612_v13 = vmul.f32 0.5, %v1611_v12 }
 0xa9e   :  { %v1604_v17 = vpop.xlane.xlu1 %1603 }
 0xa9f   :  { %v1613_v18 = vsub.f32 1.5, %v1612_v13  ;;  %v1606_v19 = vmul.f32 %v1604_v17, %v4714_v45 }
 0xaa1   :  { %v1614_v37 = vmul.f32 %v3997_v9, %v1613_v18  ;;  %v1608_v20 = vadd.f32 1e-05, %v1606_v19 }
 0xaa3   :  { %v1618_v22 = vsel %vm1617_vm13, %v3997_v9, %v1614_v37  ;;  %3998 = vrsqrt.f32 %v1608_v20  ;;  %vm1625_vm15 = vweird.f32 %v1608_v20 }
 0xaa4   :  { %v1629_v23 = vmul.f32 %v1618_v22, %v1595_v63 }
 0xaa6   :  { %v1634_v25 = vmul.f32 %v3911_v21, %v1629_v23 }
 0xaa8   :  { %v4867_v26 = vadd.f32 %v3912_v24, %v1634_v25 }
 0xaa9   :  { %v3999_v27 = vpop.eup %3998 }
 0xaaa   :  { %v1620_v28 = vmul.f32 %v3999_v27, %v1608_v20  ;;  %v1641_v29 = vand.u32 2147483647, %v4867_v26  ;;  %vm1626_vm14 = vweird.f32 %v3999_v27 }
 0xaab   :  { %vm1627_vm4 = vmor %vm1625_vm15, %vm1626_vm14 }
 0xaac   :  { %v1621_v30 = vmul.f32 %v3999_v27, %v1620_v28  ;;  %v1643_v31 = vsel %vm227_vm0, %v1641_v29, -inf }
 0xaad   :  { %1644 = vmax.xlane.f32.xlu1 %v1643_v31 }
 0xaae   :  { %v1622_v33 = vmul.f32 0.5, %v1621_v30 }
 0xab0   :  { %v1623_v34 = vsub.f32 1.5, %v1622_v33 }
 0xab2   :  { %v1624_v35 = vmul.f32 %v3999_v27, %v1623_v34 }
 0xab4   :  { %v1628_v36 = vsel %vm1627_vm4, %v3999_v27, %v1624_v35  ;;  %vm1782_vm4 = vcmask 523264  }
 0xab5   :  { %v1630_v38 = vmul.f32 %v1628_v36, %v1596_v3 }
 0xab7   :  { %v1635_v39 = vmul.f32 %v3911_v21, %v1630_v38 }
 0xab9   :  { %v4871_v40 = vadd.f32 %v3912_v24, %v1635_v39 }
 0xabb   :  { %v1642_v32 = vand.u32 2147483647, %v4871_v40 }
 0xabd   :  { %v1646_v41 = vsel %vm227_vm0, %v1642_v32, -inf }
 0xabe   :  { %1647 = vmax.xlane.f32.xlu1 %v1646_v41 }
 0xb20   :  { %v1645_v16 = vpop.xlane.xlu1 %1644 }
 0xb21   :  { %v1649_v46 = vmax.f32 %v1645_v16, 1e-05 }
 0xb23   :  { %4000 = vrcp.f32 %v1649_v46  ;;  %v1663_v60 = vmul.f32 0.007874016, %v1649_v46 }
 0xb29   :  { %v4001_v47 = vpop.eup %4000 }
 0xb2a   :  { %v1653_v11 = vmul.f32 127.0, %v4001_v47 }
 0xb2c   :  { %v1655_v48 = vmul.f32 %v1653_v11, %v4867_v26 }
 0xb2e   :  { %v3760_v49 = vcvt.f32.s32 %v1655_v48  ;;  %v3758_v51 = vand.u32 2147483647, %v1655_v48  ;;  %v3763_v54 = vand.u32 2147483648, %v1655_v48 }
 0xb30   :  { %v3761_v50 = vcvt.s32.f32 %v3760_v49  ;;  %vm3759_vm5 = vcmp.lt.f32.partialorder %v3758_v51, 8388608.0 }
 0xb31   :  { %v1648_v52 = vpop.xlane.xlu1 %1647 }
 0xb32   :  { %v3762_v53 = vand.u32 2147483647, %v3761_v50  ;;  %v1650_v55 = vmax.f32 %v1648_v52, 1e-05 }
 0xb34   :  { %v3764_v56 = vor.u32 %v3763_v54, %v3762_v53  ;;  %4002 = vrcp.f32 %v1650_v55  ;;  %v1664_v7 = vmul.f32 0.007874016, %v1650_v55 }
 0xb36   :  { %v3765_v57 = vsel %vm3759_vm5, %v3764_v56, %v1655_v48 }
 0xb37   :  { %v1659_v58 = vmax.f32 %v3765_v57, -128.0 }
 0xb39   :  { %v1661_v59 = vmin.f32 %v1659_v58, 127.0 }
 0xb3a   :  { %v4003_v61 = vpop.eup %4002 }
 0xb3b   :  { %v1665_v62 = vmul.f32 %v1663_v60, %v1661_v59  ;;  %v1654_v63 = vmul.f32 127.0, %v4003_v61 }
 0xb3d   :  { %v1656_v0 = vmul.f32 %v1654_v63, %v4871_v40  ;;  %3664 = vmatmul.msk.f32.vlgmr.msrb.gmra.mxu2 %vm227_vm0, %v1665_v62 }
 0xb3f   :  { %v3768_v1 = vcvt.f32.s32 %v1656_v0  ;;  %v3766_v15 = vand.u32 2147483647, %v1656_v0  ;;  %v3771_v4 = vand.u32 2147483648, %v1656_v0 }
 0xb41   :  { %v3769_v2 = vcvt.s32.f32 %v3768_v1  ;;  %vm3767_vm6 = vcmp.lt.f32.partialorder %v3766_v15, 8388608.0 }
 0xb43   :  { %v3770_v3 = vand.u32 2147483647, %v3769_v2 }
 0xb45   :  { %v3772_v5 = vor.u32 %v3771_v4, %v3770_v3 }
 0xb47   :  { %v3773_v14 = vsel %vm3767_vm6, %v3772_v5, %v1656_v0 }
 0xb48   :  { %v1660_v6 = vmax.f32 %v3773_v14, -128.0 }
 0xb4a   :  { %v1662_v9 = vmin.f32 %v1660_v6, 127.0 }
 0xb4c   :  { %v1666_v10 = vmul.f32 %v1664_v7, %v1662_v9 }
 0xb4e   :  { %3665 = vmatmul.msk.f32.gmra.mxu2 %vm227_vm0, %v1666_v10 }
 0xbc0   :  { %v4879_v12 = vpop.f32.mrf.mxu2 }
 0xbc1   :  { %v4882_v13 = vmul.f32 0.70710677, %v4879_v12  ;;  %v1700_v4 = vmul.f32 0.5, %v4879_v12 }
 0xbc3   :  { %v1704_v17 = vand.u32 2147483647, %v4882_v13  ;;  %vm1770_vm15 = vcmp.lt.f32.partialorder %v4882_v13, 0.0 }
 0xbc5   :  { %v1706_v18 = vmul.f32 0.3275911, %v1704_v17  ;;  %v1758_v36 = vsub.f32 0.0, %v1704_v17 }
 0xbc7   :  { %v1708_v19 = vadd.f32 1.0, %v1706_v18  ;;  %v1760_v32 = vmul.f32 %v1758_v36, %v1704_v17  ;;  %v1807_v36 = vld [vmem:[%s5334_s20] sm:$0xff] }
 0xbc9   :  { %4004 = vrcp.f32 %v1708_v19  ;;  %v1721_v24 = vand.u32 2147483648, %v1708_v19  ;;  %v1719_v27 = vand.u32 2147483647, %v1708_v19  ;;  %vm1715_vm8 = vweird.f32 %v1708_v19 }
 0xbca   :  { %v1762_v44 = vmul.f32 1.442695, %v1760_v32 }
 0xbcb   :  { %v1722_v31 = vor.u32 1.1754944e-38, %v1721_v24  ;;  %vm1720_vm10 = vcmp.eq.f32.partialorder %v1719_v27, 8.507059e+37 }
 0xbcf   :  { %v4005_v37 = vpop.eup %4004 }
 0xbd0   :  { %v1711_v20 = vmul.f32 %v4005_v37, %v1708_v19  ;;  %vm1716_vm7 = vweird.f32 %v4005_v37 }
 0xbd1   :  { %v4885_v21 = vpop.f32.mrf.mxu2  ;;  %vm1717_vm9 = vmor %vm1715_vm8, %vm1716_vm7 }
 0xbd2   :  { %v1712_v22 = vsub.f32 1.0, %v1711_v20  ;;  %v4888_v23 = vmul.f32 0.70710677, %v4885_v21  ;;  %v1701_v24 = vmul.f32 0.5, %v4885_v21  ;;  %v1812_v21 = vld [vmem:[%s5334_s20 + $0x28] sm:$0xff] }
 0xbd4   :  { %v1713_v25 = vmul.f32 %v4005_v37, %v1712_v22  ;;  %v1705_v28 = vand.u32 2147483647, %v4888_v23  ;;  %vm1771_vm5 = vcmp.lt.f32.partialorder %v4888_v23, 0.0  ;;  %v1811_v23 = vld [vmem:[%s5334_s20 + $0x20] sm:$0xff] }
 0xbd6   :  { %v1714_v29 = vadd.f32 %v4005_v37, %v1713_v25  ;;  %v1707_v30 = vmul.f32 0.3275911, %v1705_v28  ;;  %v1759_v57 = vsub.f32 0.0, %v1705_v28 }
 0xbd8   :  { %v1718_v33 = vsel %vm1717_vm9, %v4005_v37, %v1714_v29  ;;  %v1709_v34 = vadd.f32 1.0, %v1707_v30  ;;  %v1761_v63 = vmul.f32 %v1759_v57, %v1705_v28  ;;  %v1814_v30 = vld [vmem:[%s5334_s20 + $0x38] sm:$0xff] }
 0xbd9   :  { %v1723_v35 = vsel %vm1720_vm10, %v1722_v31, %v1718_v33  ;;  %1829 = vmatpush.msra.mxu2 %v1814_v30  ;;  %v1813_v31 = vld [vmem:[%s5334_s20 + $0x30] sm:$0xff]  ;;  %v1810_v33 = vld [vmem:[%s5334_s20 + $0x18] sm:$0xff] }
 0xbda   :  { %v1740_v38 = vmul.f32 1.0614054, %v1723_v35  ;;  %4006 = vrcp.f32 %v1709_v34  ;;  %v1736_v11 = vand.u32 2147483648, %v1709_v34  ;;  %v1734_v49 = vand.u32 2147483647, %v1709_v34 }
 0xbdb   :  { %4008 = vpow2.f32 %v1762_v44  ;;  %vm1730_vm12 = vweird.f32 %v1709_v34  ;;  %v1764_v3 = vmul.f32 1.442695, %v1761_v63  ;;  %1830 = vmatpush.msra.mxu2 %v1813_v31 }
 0xbdc   :  { %v1742_v39 = vadd.f32 -1.4531521, %v1740_v38  ;;  %v1737_v53 = vor.u32 1.1754944e-38, %v1736_v11  ;;  %vm1735_vm14 = vcmp.eq.f32.partialorder %v1734_v49, 8.507059e+37 }
 0xbdd   :  { %4010 = vpow2.f32 %v1764_v3  ;;  %1831 = vmatpush.msra.mxu2 %v1812_v21 }
 0xbde   :  { %v1744_v41 = vmul.f32 %v1742_v39, %v1723_v35 }
 0xbdf   :  { %1832 = vmatpush.msra.mxu2 %v1811_v23 }
 0xbe0   :  { %v4007_v42 = vpop.eup %4006  ;;  %v1746_v43 = vadd.f32 1.4214138, %v1744_v41 }
 0xbe1   :  { %v1726_v8 = vmul.f32 %v4007_v42, %v1709_v34  ;;  %vm1731_vm11 = vweird.f32 %v4007_v42  ;;  %v4009_v58 = vpop.eup %4008  ;;  %1833 = vmatpush.msra.mxu2 %v1810_v33  ;;  %v1809_v34 = vld [vmem:[%s5334_s20 + $0x10] sm:$0xff] }
 0xbe2   :  { %v1748_v16 = vmul.f32 %v1746_v43, %v1723_v35  ;;  %vm1732_vm13 = vmor %vm1730_vm12, %vm1731_vm11 }
 0xbe3   :  { %v1727_v46 = vsub.f32 1.0, %v1726_v8  ;;  %v4011_v37 = vpop.eup %4010  ;;  %1834 = vmatpush.msra.mxu2 %v1809_v34 }
 0xbe4   :  { %v1750_v47 = vadd.f32 -0.28449672, %v1748_v16 }
 0xbe5   :  { %v1728_v48 = vmul.f32 %v4007_v42, %v1727_v46 }
 0xbe6   :  { %v1752_v50 = vmul.f32 %v1750_v47, %v1723_v35 }
 0xbe7   :  { %v1729_v51 = vadd.f32 %v4007_v42, %v1728_v48 }
 0xbe8   :  { %v1754_v52 = vadd.f32 0.2548296, %v1752_v50 }
 0xbe9   :  { %v1733_v54 = vsel %vm1732_vm13, %v4007_v42, %v1729_v51 }
 0xbea   :  { %v1756_v55 = vmul.f32 %v1754_v52, %v1723_v35  ;;  %v1738_v56 = vsel %vm1735_vm14, %v1737_v53, %v1733_v54  ;;  %v1808_v35 = vld [vmem:[%s5334_s20 + $0x8] sm:$0xff] }
 0xbeb   :  { %v1741_v59 = vmul.f32 1.0614054, %v1738_v56  ;;  %1835 = vmatpush.msra.mxu2 %v1808_v35 }
 0xbec   :  { %v1766_v60 = vmul.f32 %v4009_v58, %v1756_v55 }
 0xbed   :  { %v1743_v61 = vadd.f32 -1.4531521, %v1741_v59  ;;  %1836 = vmatpush.msra.mxu2 %v1807_v36 }
 0xbee   :  { %v1768_v62 = vsub.f32 1.0, %v1766_v60 }
 0xbef   :  { %v1745_v0 = vmul.f32 %v1743_v61, %v1738_v56 }
 0xbf0   :  { %v1772_v1 = vsub.f32 0.0, %v1768_v62 }
 0xbf1   :  { %v1747_v2 = vadd.f32 1.4214138, %v1745_v0 }
 0xbf2   :  { %v1774_v15 = vsel %vm1770_vm15, %v1772_v1, %v1768_v62 }
 0xbf3   :  { %v1776_v5 = vadd.f32 1.0, %v1774_v15  ;;  %v1749_v14 = vmul.f32 %v1747_v2, %v1738_v56 }
 0xbf5   :  { %v1778_v6 = vmul.f32 %v1776_v5, %v1700_v4  ;;  %v1751_v7 = vadd.f32 -0.28449672, %v1749_v14 }
 0xbf7   :  { %v1753_v9 = vmul.f32 %v1751_v7, %v1738_v56  ;;  %v1780_v10 = vand.u32 2147483647, %v1778_v6 }
 0xbf9   :  { %v1755_v17 = vadd.f32 0.2548296, %v1753_v9  ;;  %v1783_v18 = vsel %vm1782_vm4, %v1780_v10, -inf }
 0xbfa   :  { %1784 = vmax.xlane.f32.xlu1 %v1783_v18 }
 0xbfb   :  { %v1757_v19 = vmul.f32 %v1755_v17, %v1738_v56 }
 0xbfd   :  { %v1767_v13 = vmul.f32 %v4011_v37, %v1757_v19 }
 0xbff   :  { %v1769_v20 = vsub.f32 1.0, %v1767_v13 }
 0xc01   :  { %v1773_v22 = vsub.f32 0.0, %v1769_v20 }
 0xc03   :  { %v1775_v12 = vsel %vm1771_vm5, %v1773_v22, %v1769_v20 }
 0xc04   :  { %v1777_v25 = vadd.f32 1.0, %v1775_v12  ;;  %v3670_v12 = vld [vmem:[%s5360_s8 + $0x30] sm:$0xff] }
 0xc06   :  { %v1779_v27 = vmul.f32 %v1777_v25, %v1701_v24  ;;  %v3669_v24 = vld [vmem:[%s5360_s8 + $0x28] sm:$0xff]  ;;  %v3668_v25 = vld [vmem:[%s5360_s8 + $0x20] sm:$0xff] }
 0xc08   :  { %v1781_v28 = vand.u32 2147483647, %v1779_v27 }
 0xc0a   :  { %v1786_v29 = vsel %vm1782_vm4, %v1781_v28, -inf }
 0xc0b   :  { %1787 = vmax.xlane.f32.xlu2 %v1786_v29 }
 0xc6d   :  { %v1785_v38 = vpop.xlane.xlu1 %1784 }
 0xc6e   :  { %v1789_v39 = vmax.f32 %v1785_v38, 1e-05 }
 0xc70   :  { %4012 = vrcp.f32 %v1789_v39  ;;  %v1803_v52 = vmul.f32 0.007874016, %v1789_v39  ;;  %v3913_v39 = vld [vmem:[#allocation14] ss:$0 sm:$0xff] }
 0xc76   :  { %v4013_v32 = vpop.eup %4012 }
 0xc77   :  { %v1793_v41 = vmul.f32 127.0, %v4013_v32 }
 0xc79   :  { %v1795_v42 = vmul.f32 %v1793_v41, %v1778_v6 }
 0xc7b   :  { %v3776_v43 = vcvt.f32.s32 %v1795_v42  ;;  %v3774_v8 = vand.u32 2147483647, %v1795_v42  ;;  %v3779_v47 = vand.u32 2147483648, %v1795_v42 }
 0xc7d   :  { %v3777_v44 = vcvt.s32.f32 %v3776_v43  ;;  %vm3775_vm6 = vcmp.lt.f32.partialorder %v3774_v8, 8388608.0 }
 0xc7e   :  { %v1788_v16 = vpop.xlane.xlu2 %1787 }
 0xc7f   :  { %v3778_v46 = vand.u32 2147483647, %v3777_v44  ;;  %v1790_v11 = vmax.f32 %v1788_v16, 1e-05 }
 0xc81   :  { %v3780_v48 = vor.u32 %v3779_v47, %v3778_v46  ;;  %4014 = vrcp.f32 %v1790_v11  ;;  %v1804_v1 = vmul.f32 0.007874016, %v1790_v11 }
 0xc83   :  { %v3781_v49 = vsel %vm3775_vm6, %v3780_v48, %v1795_v42  ;;  %v3914_v42 = vld [vmem:[%s5332_s18] ss:$0 sm:$0xff] }
 0xc84   :  { %v1799_v50 = vmax.f32 %v3781_v49, -128.0 }
 0xc86   :  { %v1801_v51 = vmin.f32 %v1799_v50, 127.0 }
 0xc87   :  { %v4015_v53 = vpop.eup %4014 }
 0xc88   :  { %v1805_v54 = vmul.f32 %v1803_v52, %v1801_v51  ;;  %v1794_v55 = vmul.f32 127.0, %v4015_v53  ;;  %v3915_v53 = vld [vmem:[%s5361_s26 + $0x1] ss:$0 sm:$0xff]  ;;  %s5363_s26 = smov 56  }
 0xc8a   :  { %v1796_v56 = vmul.f32 %v1794_v55, %v1779_v27  ;;  %3666 = vmatmul.msk.f32.vlgmr.msra.gmra.mxu2 %vm1782_vm4, %v1805_v54 }
 0xc8c   :  { %v3784_v57 = vcvt.f32.s32 %v1796_v56  ;;  %v3782_v59 = vand.u32 2147483647, %v1796_v56  ;;  %v3787_v61 = vand.u32 2147483648, %v1796_v56 }
 0xc8e   :  { %v3785_v58 = vcvt.s32.f32 %v3784_v57  ;;  %vm3783_vm7 = vcmp.lt.f32.partialorder %v3782_v59, 8388608.0 }
 0xc90   :  { %v3786_v60 = vand.u32 2147483647, %v3785_v58 }
 0xc92   :  { %v3788_v62 = vor.u32 %v3787_v61, %v3786_v60 }
 0xc94   :  { %v3789_v63 = vsel %vm3783_vm7, %v3788_v62, %v1796_v56 }
 0xc95   :  { %v1800_v0 = vmax.f32 %v3789_v63, -128.0 }
 0xc97   :  { %v1802_v2 = vmin.f32 %v1800_v0, 127.0 }
 0xc99   :  { %v1806_v15 = vmul.f32 %v1804_v1, %v1802_v2 }
 0xc9b   :  { %3667 = vmatmul.msk.f32.gmra.mxu2 %vm1782_vm4, %v1806_v15 }
 0xd0d   :  { %v1838_v3 = vpop.f32.mrf.mxu2 }
 0xd0e   :  { %v1839_v4 = vadd.f32 %v1838_v3, %v4867_v26 }
 0xd10   :  { %v1846_v5 = vsel %vm227_vm0, %v1839_v4, 0.0 }
 0xd11   :  { %1847 = vadd.xlane.f32.xlu1 %v1846_v5 }
 0xd1e   :  { %v1841_v14 = vpop.f32.mrf.mxu2 }
 0xd1f   :  { %v1842_v6 = vadd.f32 %v1841_v14, %v4871_v40  ;;  %v3671_v40 = vld [vmem:[%s5360_s8 + $0x38] sm:$0xff]  ;;  %s4392_s8 = smov [#allocation17]  }
 0xd20   :  { %1928 = vmatpush.msra.mxu0 %v3671_v40 }
 0xd21   :  { %v1849_v7 = vsel %vm227_vm0, %v1842_v6, 0.0 }
 0xd22   :  { %1850 = vadd.xlane.f32.xlu0 %v1849_v7  ;;  %1929 = vmatpush.msra.mxu0 %v3670_v12 }
 0xd24   :  { %1930 = vmatpush.msra.mxu0 %v3669_v24 }
 0xd26   :  { %1931 = vmatpush.msra.mxu0 %v3668_v25 }
 0xd84   :  { %v1848_v9 = vpop.xlane.xlu1 %1847 }
 0xd85   :  { %v1852_v10 = vmul.f32 %v1848_v9, %v4714_v45 }
 0xd87   :  { %v1854_v17 = vsub.f32 %v1839_v4, %v1852_v10 }
 0xd89   :  { %v1856_v18 = vmul.f32 %v1854_v17, %v1854_v17 }
 0xd8b   :  { %v1858_v19 = vsel %vm227_vm0, %v1856_v18, 0.0 }
 0xd8c   :  { %1859 = vadd.xlane.f32.xlu2 %v1858_v19 }
 0xd95   :  { %v1851_v37 = vpop.xlane.xlu0 %1850 }
 0xd96   :  { %v1853_v26 = vmul.f32 %v1851_v37, %v4714_v45 }
 0xd98   :  { %v1855_v13 = vsub.f32 %v1842_v6, %v1853_v26 }
 0xd9a   :  { %v1857_v20 = vmul.f32 %v1855_v13, %v1855_v13 }
 0xd9c   :  { %v1861_v22 = vsel %vm227_vm0, %v1857_v20, 0.0 }
 0xd9d   :  { %1862 = vadd.xlane.f32.xlu1 %v1861_v22 }
 0xdff   :  { %v1860_v27 = vpop.xlane.xlu2 %1859 }
 0xe00   :  { %v1864_v28 = vmul.f32 %v1860_v27, %v4714_v45 }
 0xe02   :  { %v1866_v29 = vadd.f32 1e-05, %v1864_v28 }
 0xe04   :  { %4016 = vrsqrt.f32 %v1866_v29  ;;  %vm1874_vm9 = vweird.f32 %v1866_v29 }
 0xe0a   :  { %v4017_v30 = vpop.eup %4016 }
 0xe0b   :  { %v1869_v31 = vmul.f32 %v4017_v30, %v1866_v29  ;;  %vm1875_vm8 = vweird.f32 %v4017_v30 }
 0xe0c   :  { %vm1876_vm10 = vmor %vm1874_vm9, %vm1875_vm8 }
 0xe0d   :  { %v1870_v21 = vmul.f32 %v4017_v30, %v1869_v31 }
 0xe0f   :  { %v1871_v23 = vmul.f32 0.5, %v1870_v21 }
 0xe10   :  { %v1863_v33 = vpop.xlane.xlu1 %1862 }
 0xe11   :  { %v1872_v34 = vsub.f32 1.5, %v1871_v23  ;;  %v1865_v35 = vmul.f32 %v1863_v33, %v4714_v45 }
 0xe13   :  { %v1873_v36 = vmul.f32 %v4017_v30, %v1872_v34  ;;  %v1867_v38 = vadd.f32 1e-05, %v1865_v35 }
 0xe15   :  { %v1877_v32 = vsel %vm1876_vm10, %v4017_v30, %v1873_v36  ;;  %4018 = vrsqrt.f32 %v1867_v38  ;;  %vm1884_vm12 = vweird.f32 %v1867_v38 }
 0xe16   :  { %v1888_v41 = vmul.f32 %v1877_v32, %v1854_v17 }
 0xe18   :  { %v1893_v43 = vmul.f32 %v3913_v39, %v1888_v41 }
 0xe1a   :  { %v4948_v44 = vadd.f32 %v3914_v42, %v1893_v43 }
 0xe1b   :  { %v4019_v8 = vpop.eup %4018 }
 0xe1c   :  { %v1879_v16 = vmul.f32 %v4019_v8, %v1867_v38  ;;  %3673 = vmatmul.msk.f32.vlgmr.msra.gmra.mxu0 %vm227_vm0, %v4948_v44  ;;  %vm1885_vm11 = vweird.f32 %v4019_v8 }
 0xe1d   :  { %vm1886_vm13 = vmor %vm1884_vm12, %vm1885_vm11 }
 0xe1e   :  { %v1880_v46 = vmul.f32 %v4019_v8, %v1879_v16 }
 0xe20   :  { %v1881_v47 = vmul.f32 0.5, %v1880_v46 }
 0xe22   :  { %v1882_v11 = vsub.f32 1.5, %v1881_v47 }
 0xe24   :  { %v1883_v48 = vmul.f32 %v4019_v8, %v1882_v11 }
 0xe26   :  { %v1887_v49 = vsel %vm1886_vm13, %v4019_v8, %v1883_v48 }
 0xe27   :  { %v1889_v50 = vmul.f32 %v1887_v49, %v1855_v13 }
 0xe29   :  { %v1894_v51 = vmul.f32 %v3913_v39, %v1889_v50 }
 0xe2b   :  { %v4952_v52 = vadd.f32 %v3914_v42, %v1894_v51 }
 0xe2d   :  { %3674 = vmatmul.msk.f32.gmra.mxu0 %vm227_vm0, %v4952_v52 }
 0xe99   :  { %v1933_v54 = vpop.f32.mrf.mxu0 }
 0xe9a   :  { %v4959_v55 = vadd.f32 %v3915_v53, %v1933_v54 }
 0xe9c   :  { %1947 = vrot.lane.b32.xlu0 %v4959_v55, %s4380_s9 }
 0xea4   :  { %2076 = vrot.lane.b32.xlu0 %v4959_v55, %s4382_s17 }
 0xeaa   :  { %v1936_v56 = vpop.f32.mrf.mxu0 }
 0xeab   :  { %v4965_v57 = vadd.f32 %v3915_v53, %v1936_v56 }
 0xead   :  { %2104 = vrot.lane.b32.xlu0 %v4965_v57, %s4382_s17  ;;  %2106 = vrot.lane.b32.xlu1 %v4965_v57, %s4379_s21  ;;  %v3864_v34 = vpack.i.bf16 %v4965_v57, %v4959_v55 }
 0xeae   :  { %1974 = vrot.lane.b32.xlu2 %v4965_v57, %s4380_s9 }
 0xeb5   :  { %2210 = vrot.lane.b32.xlu0 %v4959_v55, %s4381_s2  ;;  %2238 = vrot.lane.b32.xlu1 %v4965_v57, %s4381_s2 }
 0xeb6   :  { %2078 = vrot.lane.b32.xlu2 %v4959_v55, %s4379_s21 }
 0xebd   :  { %2368 = vrot.lane.b32.xlu0 %v4965_v57, %s4385_s29  ;;  %2208 = vrot.lane.b32.xlu1 %v4959_v55, %s4384_s14 }
 0xebe   :  { %2236 = vrot.lane.b32.xlu2 %v4965_v57, %s4384_s14 }
 0xec5   :  { %2342 = vrot.lane.b32.xlu1 %v4959_v55, %s4383_s27 }
 0xec6   :  { %2370 = vrot.lane.b32.xlu2 %v4965_v57, %s4383_s27 }
 0xece   :  { %2340 = vrot.lane.b32.xlu2 %v4959_v55, %s4385_s29 }
 0xf08   :  { %v1975_v58 = vpop.permute.xlu2 %1974 }
 0xf09   :  { %3682 = vmatpush.xpose.msk.msra.mxu1 %vm265_vm1, %v1975_v58 }
 0xf0c   :  { %3683 = vmatmul.msk.f32.vlgmr.msra.gmra.mxu1 %vm265_vm1, %v4965_v57 }
 0xf0e   :  { %v1948_v59 = vpop.permute.xlu0 %1947 }
 0xf0f   :  { %3680 = vmatpush.xpose.msk.msra.mxu3 %vm265_vm1, %v1948_v59 }
 0xf10   :  { %v2079_v60 = vpop.permute.xlu2 %2078 }
 0xf11   :  { %3686 = vmatpush.xpose.msk.msrb.mxu1 %vm265_vm1, %v2079_v60 }
 0xf12   :  { %3681 = vmatmul.msk.f32.vlgmr.msra.gmra.mxu3 %vm265_vm1, %v4959_v55 }
 0xf16   :  { %v2077_v61 = vpop.permute.xlu0 %2076 }
 0xf17   :  { %3687 = vmatmul.msk.f32.vlgmr.msrb.gmra.mxu1 %vm265_vm1, %v2077_v61 }
 0xf18   :  { %v2237_v62 = vpop.permute.xlu2 %2236 }
 0xf1f   :  { %v2105_v63 = vpop.permute.xlu0 %2104  ;;  %v2107_v0 = vpop.permute.xlu1 %2106 }
 0xf20   :  { %3688 = vmatpush.xpose.msk.msrb.mxu2 %vm265_vm1, %v2107_v0  ;;  %v2371_v15 = vpop.permute.xlu2 %2370 }
 0xf23   :  { %3689 = vmatmul.msk.f32.vlgmr.msrb.gmra.mxu2 %vm265_vm1, %v2105_v63 }
 0xf27   :  { %v2211_v1 = vpop.permute.xlu0 %2210  ;;  %v2239_v2 = vpop.permute.xlu1 %2238 }
 0xf28   :  { %3692 = vmatpush.xpose.msk.msra.mxu1 %vm265_vm1, %v2211_v1  ;;  %3694 = vmatpush.xpose.msk.msra.mxu2 %vm265_vm1, %v2239_v2  ;;  %v2341_v14 = vpop.permute.xlu2 %2340 }
 0xf2b   :  { %3695 = vmatmul.msk.f32.vlgmr.msra.gmra.mxu2 %vm265_vm1, %v2237_v62 }
 0xf2c   :  { %3700 = vmatpush.xpose.msk.msrb.mxu2 %vm265_vm1, %v2371_v15 }
 0xf2f   :  { %v2209_v3 = vpop.permute.xlu1 %2208  ;;  %v2369_v4 = vpop.permute.xlu0 %2368 }
 0xf30   :  { %3693 = vmatmul.msk.f32.vlgmr.msra.gmra.mxu1 %vm265_vm1, %v2209_v3 }
 0xf33   :  { %3701 = vmatmul.msk.f32.vlgmr.msrb.gmra.mxu2 %vm265_vm1, %v2369_v4 }
 0xf37   :  { %v2343_v5 = vpop.permute.xlu1 %2342 }
 0xf38   :  { %3698 = vmatpush.xpose.msk.msrb.mxu1 %vm265_vm1, %v2343_v5 }
 0xf3b   :  { %3699 = vmatmul.msk.f32.vlgmr.msrb.gmra.mxu1 %vm265_vm1, %v2341_v14 }
 0xf89   :  { %v1997_v6 = vpop.f32.mrf.mxu1 }
 0xf8a   :  { %v2001_v7 = vmul.f32 0.35355338, %v1997_v6 }
 0xf8c   :  { %v2005_v9 = vsel %vm265_vm1, %v2001_v7, -inf }
 0xf8d   :  { %2006 = vmax.xlane.f32.xlu1 %v2005_v9 }
 0xf94   :  { %v2101_v10 = vpop.f32.mrf.mxu1 }
 0xf95   :  { %v2132_v17 = vmul.f32 0.35355338, %v2101_v10  ;;  %v1970_v18 = vpop.f32.mrf.mxu3 }
 0xf96   :  { %v2000_v19 = vmul.f32 0.35355338, %v1970_v18 }
 0xf97   :  { %v2134_v37 = vsel %vm265_vm1, %v2132_v17, -inf }
 0xf98   :  { %2135 = vmax.xlane.f32.xlu2 %v2134_v37  ;;  %v2002_v26 = vsel %vm265_vm1, %v2000_v19, -inf }
 0xf99   :  { %2003 = vmax.xlane.f32.xlu0 %v2002_v26 }
 0xfa6   :  { %v2129_v13 = vpop.f32.mrf.mxu2 }
 0xfa7   :  { %v2133_v20 = vmul.f32 0.35355338, %v2129_v13 }
 0xfa9   :  { %v2137_v22 = vsel %vm265_vm1, %v2133_v20, -inf }
 0xfaa   :  { %2138 = vmax.xlane.f32.xlu0 %v2137_v22 }
 0xfad   :  { %v2233_v40 = vpop.f32.mrf.mxu1 }
 0xfae   :  { %v2264_v12 = vmul.f32 0.35355338, %v2233_v40  ;;  %v2261_v24 = vpop.f32.mrf.mxu2 }
 0xfaf   :  { %v2265_v25 = vmul.f32 0.35355338, %v2261_v24 }
 0xfb0   :  { %v2266_v27 = vsel %vm265_vm1, %v2264_v12, -inf }
 0xfb1   :  { %2267 = vmax.xlane.f32.xlu1 %v2266_v27  ;;  %v2269_v28 = vsel %vm265_vm1, %v2265_v25, -inf }
 0xfb2   :  { %2270 = vmax.xlane.f32.xlu2 %v2269_v28 }
 0xfb6   :  { %v2393_v29 = vpop.f32.mrf.mxu2 }
 0xfb7   :  { %v5015_v30 = vmul.f32 0.35355338, %v2393_v29 }
 0xfb8   :  { %v2365_v31 = vpop.f32.mrf.mxu1 }
 0xfb9   :  { %v2396_v21 = vmul.f32 0.35355338, %v2365_v31  ;;  %v2401_v23 = vsel %vm265_vm1, %v5015_v30, -inf }
 0xfba   :  { %2402 = vmax.xlane.f32.xlu1 %v2401_v23 }
 0xfbb   :  { %v2398_v33 = vsel %vm265_vm1, %v2396_v21, -inf }
 0xfbc   :  { %2399 = vmax.xlane.f32.xlu0 %v2398_v33 }
 0xfca   :  { %3865 = vrot.lane.b32.xlu2 %v3864_v34, %s4386_s19  ;;  %s5364_s19 = smov 48  }
 0xfd0   :  { %3870 = vrot.lane.b32.xlu0 %v3864_v34, %s5363_s26 }
0x1000   :  { %v2007_v35 = vpop.xlane.xlu1 %2006 }
0x1001   :  { %v2009_v36 = vsub.f32 %v2001_v7, %v2007_v35 }
0x1003   :  { %v2012_v38 = vmul.f32 1.442695, %v2009_v36 }
0x1005   :  { %4020 = vpow2.f32 %v2012_v38 }
0x100b   :  { %v5024_v39 = vpop.eup %4020  ;;  %v2136_v32 = vpop.xlane.xlu2 %2135 }
0x100c   :  { %v2140_v41 = vsub.f32 %v2132_v17, %v2136_v32  ;;  %v2004_v42 = vpop.xlane.xlu0 %2003  ;;  %v2017_v43 = vsel %vm265_vm1, %v5024_v39, 0.0 }
0x100d   :  { %v2008_v8 = vsub.f32 %v2000_v19, %v2004_v42  ;;  %2018 = vadd.xlane.f32.xlu0 %v2017_v43 }
0x100e   :  { %v2142_v16 = vmul.f32 1.442695, %v2140_v41 }
0x100f   :  { %v2010_v46 = vmul.f32 1.442695, %v2008_v8 }
0x1010   :  { %4022 = vpow2.f32 %v2142_v16 }
0x1011   :  { %4024 = vpow2.f32 %v2010_v46 }
0x1016   :  { %v5028_v47 = vpop.eup %4022 }
0x1017   :  { %v4025_v11 = vpop.eup %4024  ;;  %v2146_v48 = vsel %vm265_vm1, %v5028_v47, 0.0 }
0x1018   :  { %2147 = vadd.xlane.f32.xlu1 %v2146_v48  ;;  %v2014_v49 = vsel %vm265_vm1, %v4025_v11, 0.0 }
0x1019   :  { %2015 = vadd.xlane.f32.xlu2 %v2014_v49 }
0x101d   :  { %v2139_v50 = vpop.xlane.xlu0 %2138 }
0x101e   :  { %v2141_v51 = vsub.f32 %v2133_v20, %v2139_v50 }
0x1020   :  { %v2144_v53 = vmul.f32 1.442695, %v2141_v51 }
0x1022   :  { %4026 = vpow2.f32 %v2144_v53 }
0x1024   :  { %v2268_v54 = vpop.xlane.xlu1 %2267 }
0x1025   :  { %v2271_v55 = vpop.xlane.xlu2 %2270  ;;  %v2272_v58 = vsub.f32 %v2264_v12, %v2268_v54 }
0x1026   :  { %v2273_v56 = vsub.f32 %v2265_v25, %v2271_v55 }
0x1027   :  { %v2274_v61 = vmul.f32 1.442695, %v2272_v58 }
0x1028   :  { %v5033_v57 = vpop.eup %4026  ;;  %v2276_v59 = vmul.f32 1.442695, %v2273_v56 }
0x1029   :  { %v2149_v60 = vsel %vm265_vm1, %v5033_v57, 0.0 }
0x102a   :  { %4028 = vpow2.f32 %v2276_v59  ;;  %2150 = vadd.xlane.f32.xlu0 %v2149_v60  ;;  %v3678_v59 = vld [vmem:[%s5362_s22 + $0x38] sm:$0xff]  ;;  %v3677_v60 = vld [vmem:[%s5362_s22 + $0x30] sm:$0xff] }
0x102b   :  { %4030 = vpow2.f32 %v2274_v61  ;;  %2523 = vmatpush.msra.mxu1 %v3678_v59  ;;  %v3676_v61 = vld [vmem:[%s5362_s22 + $0x28] sm:$0xff]  ;;  %v3918_v59 = vld [vmem:[#allocation13 + $0x1] ss:$0 sm:$0xff] }
0x102d   :  { %v3866_v62 = vpop.permute.xlu2 %3865  ;;  %v2403_v5 = vpop.xlane.xlu1 %2402  ;;  %2524 = vmatpush.msra.mxu1 %v3677_v60 }
0x102e   :  { %v3868_v63 = vunpack.i.h.bf16 %v3866_v62  ;;  %v3867_v0 = vunpack.i.l.bf16 %v3866_v62  ;;  %v2405_v6 = vsub.f32 %v5015_v30, %v2403_v5  ;;  %v3675_v62 = vld [vmem:[%s5362_s22 + $0x20] sm:$0xff] }
0x102f   :  { %v2400_v1 = vpop.xlane.xlu0 %2399  ;;  %2525 = vmatpush.msra.mxu1 %v3676_v61 }
0x1030   :  { %v4029_v2 = vpop.eup %4028  ;;  %v2404_v15 = vsub.f32 %v2396_v21, %v2400_v1  ;;  %2045 = vmatpush.msrb.mxu0 %v3867_v0  ;;  %2071 = vmatpush.msrb.mxu3 %v3868_v63  ;;  %v2408_v9 = vmul.f32 1.442695, %v2405_v6 }
0x1031   :  { %3875 = vrot.lane.b32.xlu2 %v3864_v34, %s5364_s19  ;;  %v2281_v3 = vsel %vm265_vm1, %v4029_v2, 0.0  ;;  %v4031_v14 = vpop.eup %4030  ;;  %2526 = vmatpush.msra.mxu1 %v3675_v62 }
0x1032   :  { %2282 = vadd.xlane.f32.xlu1 %v2281_v3  ;;  %v2406_v4 = vmul.f32 1.442695, %v2404_v15  ;;  %v2278_v7 = vsel %vm265_vm1, %v4031_v14, 0.0 }
0x1034   :  { %4032 = vpow2.f32 %v2406_v4 }
0x1035   :  { %4034 = vpow2.f32 %v2408_v9 }
0x103a   :  { %2279 = vadd.xlane.f32.xlu1 %v2278_v7  ;;  %v4033_v10 = vpop.eup %4032 }
0x103b   :  { %v2410_v17 = vsel %vm265_vm1, %v4033_v10, 0.0  ;;  %v4035_v26 = vpop.eup %4034 }
0x103c   :  { %v2413_v13 = vsel %vm265_vm1, %v4035_v26, 0.0 }
0x103e   :  { %3880 = vrot.lane.b32.xlu0 %v3864_v34, %s5365_s0 }
0x1042   :  { %v3871_v18 = vpop.permute.xlu0 %3870  ;;  %2411 = vadd.xlane.f32.xlu1 %v2410_v17 }
0x1043   :  { %v3873_v19 = vunpack.i.h.bf16 %v3871_v18  ;;  %v3872_v37 = vunpack.i.l.bf16 %v3871_v18 }
0x1045   :  { %2177 = vmatpush.msra.mxu0 %v3872_v37  ;;  %2203 = vmatpush.msra.mxu3 %v3873_v19 }
0x104a   :  { %2414 = vadd.xlane.f32.xlu1 %v2413_v13 }
0x1080   :  { %v2019_v20 = vpop.xlane.xlu0 %2018 }
0x1081   :  { %4036 = vrcp.f32 %v2019_v20 }
0x1087   :  { %v4037_v22 = vpop.eup %4036 }
0x1088   :  { %v2023_v40 = vmul.f32 %v4037_v22, %v5024_v39 }
0x108a   :  { %3685 = vmatmul.msk.f32.vlgmr.msrb.gmra.mxu3 %vm265_vm1, %v2023_v40 }
0x108b   :  { %v2148_v24 = vpop.xlane.xlu1 %2147 }
0x108c   :  { %v2016_v12 = vpop.xlane.xlu2 %2015 }
0x108d   :  { %4038 = vrcp.f32 %v2016_v12 }
0x108e   :  { %4040 = vrcp.f32 %v2148_v24 }
0x1093   :  { %v4039_v25 = vpop.eup %4038 }
0x1094   :  { %v2022_v27 = vmul.f32 %v4039_v25, %v4025_v11  ;;  %v3876_v28 = vpop.permute.xlu2 %3875  ;;  %v4041_v31 = vpop.eup %4040 }
0x1095   :  { %v3878_v29 = vunpack.i.h.bf16 %v3876_v28  ;;  %v3877_v30 = vunpack.i.l.bf16 %v3876_v28  ;;  %v2154_v21 = vmul.f32 %v4041_v31, %v5028_v47 }
0x1096   :  { %3684 = vmatmul.msk.f32.vlgmr.msrb.gmra.mxu0 %vm265_vm1, %v2022_v27 }
0x1097   :  { %2309 = vmatpush.msrb.mxu0 %v3877_v30  ;;  %2335 = vmatpush.msrb.mxu3 %v3878_v29 }
0x109d   :  { %v2151_v23 = vpop.xlane.xlu0 %2150 }
0x109e   :  { %4042 = vrcp.f32 %v2151_v23  ;;  %3690 = vmatmul.msk.f32.vlgmr.msra.gmra.mxu0 %vm265_vm1, %v2154_v21  ;;  %v2636_v21 = vld [vmem:[#allocation10 + $0x30] sm:$0xff]  ;;  %v2635_v23 = vld [vmem:[#allocation10 + $0x28] sm:$0xff] }
0x10a4   :  { %v4043_v33 = vpop.eup %4042 }
0x10a5   :  { %v2155_v34 = vmul.f32 %v4043_v33, %v5033_v57  ;;  %v2283_v35 = vpop.xlane.xlu1 %2282  ;;  %v2634_v33 = vld [vmem:[#allocation10 + $0x20] sm:$0xff] }
0x10a6   :  { %4044 = vrcp.f32 %v2283_v35  ;;  %v4113_v35 = vld [vmem:[#allocation5 + $0x8] sm:$0xff] }
0x10a7   :  { %3691 = vmatmul.msk.f32.vlgmr.msra.gmra.mxu3 %vm265_vm1, %v2155_v34  ;;  %v4112_v34 = vld [vmem:[#allocation5] sm:$0xff] }
0x10ac   :  { %v4045_v36 = vpop.eup %4044 }
0x10ad   :  { %v2287_v38 = vmul.f32 %v4045_v36, %v4029_v2  ;;  %v2280_v39 = vpop.xlane.xlu1 %2279  ;;  %v3710_v36 = vld [vmem:[%s5321_s7 + $0x38] sm:$0xff] }
0x10ae   :  { %4046 = vrcp.f32 %v2280_v39  ;;  %2622 = vmatpush.msra.mxu2 %v3710_v36  ;;  %v3708_v39 = vld [vmem:[%s5321_s7 + $0x28] sm:$0xff] }
0x10af   :  { %3697 = vmatmul.msk.f32.vlgmr.msrb.gmra.mxu3 %vm265_vm1, %v2287_v38  ;;  %v3709_v38 = vld [vmem:[%s5321_s7 + $0x30] sm:$0xff] }
0x10b0   :  { %v3881_v32 = vpop.permute.xlu0 %3880  ;;  %2623 = vmatpush.msra.mxu2 %v3709_v38 }
0x10b1   :  { %v3883_v41 = vunpack.i.h.bf16 %v3881_v32  ;;  %v3882_v42 = vunpack.i.l.bf16 %v3881_v32  ;;  %v3707_v32 = vld [vmem:[%s5321_s7 + $0x20] sm:$0xff]  ;;  %s3587_s7 = sshll.u32 %s4392_s8, 4  ;;  %s3588_s7 = int_to_ptr.vmem [resolvable:$true] %s3587_s7 }
0x10b2   :  { %2624 = vmatpush.msra.mxu2 %v3708_v39 }
0x10b3   :  { %2441 = vmatpush.msra.mxu0 %v3882_v42  ;;  %2467 = vmatpush.msra.mxu3 %v3883_v41 }
0x10b4   :  { %v4047_v43 = vpop.eup %4046  ;;  %2625 = vmatpush.msra.mxu2 %v3707_v32 }
0x10b5   :  { %v2286_v8 = vmul.f32 %v4047_v43, %v4031_v14  ;;  %v2412_v16 = vpop.xlane.xlu1 %2411 }
0x10b6   :  { %4048 = vrcp.f32 %v2412_v16 }
0x10b7   :  { %3696 = vmatmul.msk.f32.vlgmr.msrb.gmra.mxu0 %vm265_vm1, %v2286_v8 }
0x10bc   :  { %v4049_v46 = vpop.eup %4048 }
0x10bd   :  { %v2418_v47 = vmul.f32 %v4049_v46, %v4033_v10  ;;  %v2415_v11 = vpop.xlane.xlu1 %2414  ;;  %v3916_v10 = vld [vmem:[%s5320_s6 + $0x1] ss:$0 sm:$0xff] }
0x10be   :  { %4050 = vrcp.f32 %v2415_v11 }
0x10bf   :  { %3702 = vmatmul.msk.f32.vlgmr.msra.gmra.mxu0 %vm265_vm1, %v2418_v47 }
0x10c4   :  { %v4051_v48 = vpop.eup %4050 }
0x10c5   :  { %v2419_v49 = vmul.f32 %v4051_v48, %v4035_v26 }
0x10c7   :  { %3703 = vmatmul.msk.f32.vlgmr.msra.gmra.mxu3 %vm265_vm1, %v2419_v49 }
0x110d   :  { %v2073_v53 = vpop.f32.mrf.mxu3 }
0x1113   :  { %v2047_v50 = vpop.f32.mrf.mxu0 }
0x111b   :  { %v2179_v51 = vpop.f32.mrf.mxu0 }
0x111c   :  { %2474 = vrot.lane.b32.xlu2 %v2179_v51, %s5366_s1 }
0x112a   :  { %v2205_v54 = vpop.f32.mrf.mxu3 }
0x112b   :  { %2476 = vrot.lane.b32.xlu2 %v2205_v54, %s5366_s1  ;;  %v3917_v54 = vld [vmem:[%s5327_s13 + $0x1] ss:$0 sm:$0xff] }
0x1132   :  { %v2337_v57 = vpop.f32.mrf.mxu3 }
0x1134   :  { %v2311_v55 = vpop.f32.mrf.mxu0 }
0x1135   :  { %2482 = vrot.lane.b32.xlu1 %v2311_v55, %s5358_s11 }
0x113c   :  { %v2443_v56 = vpop.f32.mrf.mxu0 }
0x113d   :  { %2490 = vrot.lane.b32.xlu0 %v2443_v56, %s5367_s3 }
0x1145   :  { %2484 = vrot.lane.b32.xlu0 %v2337_v57, %s5358_s11 }
0x114a   :  { %v2469_v58 = vpop.f32.mrf.mxu3 }
0x114b   :  { %2492 = vrot.lane.b32.xlu2 %v2469_v58, %s5367_s3 }
0x1176   :  { %v2475_v63 = vpop.permute.xlu2 %2474 }
0x1177   :  { %v2496_v1 = vsel %vm265_vm1, %v2047_v50, %v2475_v63 }
0x1185   :  { %v2477_v3 = vpop.permute.xlu2 %2476 }
0x1186   :  { %v2497_v5 = vsel %vm265_vm1, %v2073_v53, %v2477_v3 }
0x11a5   :  { %v2493_v6 = vpop.permute.xlu2 %2492 }
0x11a7   :  { %v2483_v0 = vpop.permute.xlu1 %2482 }
0x11a8   :  { %v2498_v2 = vsel %vm815_vm2, %v2496_v1, %v2483_v0 }
0x11af   :  { %v2491_v15 = vpop.permute.xlu0 %2490 }
0x11b0   :  { %v2500_v4 = vsel %vm818_vm3, %v2498_v2, %v2491_v15 }
0x11b1   :  { %3704 = vmatmul.msk.f32.vlgmr.msra.gmra.mxu1 %vm227_vm0, %v2500_v4  ;;  %v3919_v4 = vld [vmem:[%s5324_s10 + $0x1] ss:$0 sm:$0xff]  ;;  %s5369_s10 = smov 128  }
0x11b7   :  { %v2485_v14 = vpop.permute.xlu0 %2484 }
0x11b8   :  { %v2499_v7 = vsel %vm815_vm2, %v2497_v5, %v2485_v14 }
0x11b9   :  { %v2501_v9 = vsel %vm818_vm3, %v2499_v7, %v2493_v6 }
0x11ba   :  { %3705 = vmatmul.msk.f32.gmra.mxu1 %vm227_vm0, %v2501_v9  ;;  %v3920_v9 = vld [vmem:[#allocation8 + $0x1] ss:$0 sm:$0xff] }
0x122e   :  { %v2528_v17 = vpop.f32.mrf.mxu1 }
0x122f   :  { %v2529_v18 = vadd.f32 %v3916_v10, %v2528_v17 }
0x1231   :  { %v2534_v19 = vadd.f32 %v2529_v18, %v4948_v44 }
0x1233   :  { %v2540_v37 = vsel %vm227_vm0, %v2534_v19, 0.0 }
0x1234   :  { %2541 = vadd.xlane.f32.xlu0 %v2540_v37 }
0x1237   :  { %v2531_v26 = vpop.f32.mrf.mxu1 }
0x1238   :  { %v2532_v13 = vadd.f32 %v3916_v10, %v2531_v26 }
0x123a   :  { %v2535_v20 = vadd.f32 %v2532_v13, %v4952_v52  ;;  %v2637_v52 = vld [vmem:[#allocation10 + $0x38] sm:$0xff] }
0x123b   :  { %2655 = vmatpush.msrb.mxu0 %v2637_v52 }
0x123c   :  { %v2543_v22 = vsel %vm227_vm0, %v2535_v20, 0.0 }
0x123d   :  { %2544 = vadd.xlane.f32.xlu2 %v2543_v22  ;;  %2656 = vmatpush.msrb.mxu0 %v2636_v21 }
0x123f   :  { %2657 = vmatpush.msrb.mxu0 %v2635_v23 }
0x1241   :  { %2658 = vmatpush.msrb.mxu0 %v2634_v33 }
0x1242   :  { %3714 = vmatmul.msk.f32.vlgmr.msrb.gmra.mxu0 %vm227_vm0, %v4112_v34 }
0x124a   :  { %3715 = vmatmul.msk.f32.gmra.mxu0 %vm227_vm0, %v4113_v35 }
0x12a7   :  { %v2542_v40 = vpop.xlane.xlu0 %2541 }
0x12a8   :  { %v2546_v12 = vmul.f32 %v2542_v40, %v4714_v45 }
0x12aa   :  { %v2548_v24 = vsub.f32 %v2534_v19, %v2546_v12 }
0x12ac   :  { %v2550_v25 = vmul.f32 %v2548_v24, %v2548_v24 }
0x12ae   :  { %v2552_v27 = vsel %vm227_vm0, %v2550_v25, 0.0 }
0x12af   :  { %2553 = vadd.xlane.f32.xlu1 %v2552_v27 }
0x12b0   :  { %v2545_v28 = vpop.xlane.xlu2 %2544 }
0x12b1   :  { %v2547_v44 = vmul.f32 %v2545_v28, %v4714_v45 }
0x12b3   :  { %v2549_v29 = vsub.f32 %v2535_v20, %v2547_v44 }
0x12b5   :  { %v2551_v30 = vmul.f32 %v2549_v29, %v2549_v29 }
0x12b7   :  { %v2555_v31 = vsel %vm227_vm0, %v2551_v30, 0.0 }
0x12b8   :  { %2556 = vadd.xlane.f32.xlu0 %v2555_v31 }
0x12bf   :  { %v2660_v5 = vpop.f32.mrf.mxu0 }
0x12c0   :  { %v5122_v14 = vadd.f32 %v3919_v4, %v2660_v5 }
0x12c2   :  { %3717 = vmatpush.xpose.msk.msrb.mxu3 %vm265_vm1, %v5122_v14 }
0x12c7   :  { %v2663_v6 = vpop.f32.mrf.mxu0 }
0x12c8   :  { %v5128_v7 = vadd.f32 %v3919_v4, %v2663_v6 }
0x12ca   :  { %2831 = vrot.lane.b32.xlu2 %v5128_v7, %s4382_s17  ;;  %3719 = vmatpush.xpose.msk.msra.mxu3 %vm265_vm1, %v5128_v7 }
0x12cc   :  { %2803 = vrot.lane.b32.xlu0 %v5122_v14, %s4382_s17 }
0x12d4   :  { %2963 = vrot.lane.b32.xlu0 %v5128_v7, %s4384_s14 }
0x1322   :  { %v2554_v41 = vpop.xlane.xlu1 %2553 }
0x1323   :  { %v2558_v42 = vmul.f32 %v2554_v41, %v4714_v45 }
0x1324   :  { %v2832_v37 = vpop.permute.xlu2 %2831 }
0x1325   :  { %v2560_v43 = vadd.f32 1e-05, %v2558_v42 }
0x1327   :  { %4052 = vrsqrt.f32 %v2560_v43  ;;  %vm2568_vm15 = vweird.f32 %v2560_v43 }
0x132b   :  { %v2557_v8 = vpop.xlane.xlu0 %2556 }
0x132c   :  { %v2559_v16 = vmul.f32 %v2557_v8, %v4714_v45 }
0x132d   :  { %v4053_v46 = vpop.eup %4052 }
0x132e   :  { %v2563_v47 = vmul.f32 %v4053_v46, %v2560_v43  ;;  %v2561_v11 = vadd.f32 1e-05, %v2559_v16  ;;  %vm2569_vm14 = vweird.f32 %v4053_v46 }
0x132f   :  { %vm2570_vm5 = vmor %vm2568_vm15, %vm2569_vm14 }
0x1330   :  { %v2564_v48 = vmul.f32 %v4053_v46, %v2563_v47  ;;  %4054 = vrsqrt.f32 %v2561_v11  ;;  %vm2578_vm7 = vweird.f32 %v2561_v11 }
0x1332   :  { %v2565_v49 = vmul.f32 0.5, %v2564_v48 }
0x1334   :  { %v2566_v50 = vsub.f32 1.5, %v2565_v49 }
0x1336   :  { %v4055_v51 = vpop.eup %4054  ;;  %v2567_v53 = vmul.f32 %v4053_v46, %v2566_v50 }
0x1337   :  { %v2573_v55 = vmul.f32 %v4055_v51, %v2561_v11  ;;  %vm2579_vm6 = vweird.f32 %v4055_v51 }
0x1338   :  { %v2571_v56 = vsel %vm2570_vm5, %v4053_v46, %v2567_v53  ;;  %vm2580_vm8 = vmor %vm2578_vm7, %vm2579_vm6 }
0x1339   :  { %v2582_v57 = vmul.f32 %v2571_v56, %v2548_v24  ;;  %v2574_v58 = vmul.f32 %v4055_v51, %v2573_v55 }
0x133b   :  { %v2587_v60 = vmul.f32 %v3917_v54, %v2582_v57  ;;  %v2575_v61 = vmul.f32 0.5, %v2574_v58 }
0x133d   :  { %v2576_v62 = vsub.f32 1.5, %v2575_v61  ;;  %v5111_v63 = vadd.f32 %v3918_v59, %v2587_v60 }
0x133e   :  { %v2804_v26 = vpop.permute.xlu0 %2803 }
0x133f   :  { %v2577_v0 = vmul.f32 %v4055_v51, %v2576_v62  ;;  %3711 = vmatmul.msk.f32.vlgmr.msra.gmra.mxu2 %vm227_vm0, %v5111_v63  ;;  %3723 = vmatpush.xpose.msk.msra.mxu0 %vm265_vm1, %v2804_v26  ;;  %v3884_v62 = vpack.i.bf16 %v5128_v7, %v5122_v14 }
0x1341   :  { %v2581_v1 = vsel %vm2580_vm8, %v4055_v51, %v2577_v0 }
0x1342   :  { %v2583_v2 = vmul.f32 %v2581_v1, %v2549_v29 }
0x1344   :  { %v2588_v15 = vmul.f32 %v3917_v54, %v2583_v2 }
0x1346   :  { %v5115_v3 = vadd.f32 %v3918_v59, %v2588_v15  ;;  %v2964_v13 = vpop.permute.xlu0 %2963 }
0x1348   :  { %3712 = vmatmul.msk.f32.gmra.mxu2 %vm227_vm0, %v5115_v3 }
0x13c2   :  { %v2627_v10 = vpop.f32.mrf.mxu2 }
0x13c3   :  { %v2628_v17 = vadd.f32 %v3920_v9, %v2627_v10 }
0x13c5   :  { %2801 = vrot.lane.b32.xlu2 %v2628_v17, %s4382_s17  ;;  %2933 = vrot.lane.b32.xlu0 %v2628_v17, %s4384_s14 }
0x13c6   :  { %3718 = vmatmul.msk.f32.vlgmr.msrb.gmra.mxu3 %vm265_vm1, %v2628_v17 }
0x13c7   :  { %3725 = vmatpush.xpose.msk.msrb.mxu3 %vm265_vm1, %v2832_v37 }
0x13cb   :  { %v2630_v18 = vpop.f32.mrf.mxu2 }
0x13cc   :  { %v2631_v19 = vadd.f32 %v3920_v9, %v2630_v18 }
0x13cd   :  { %2935 = vrot.lane.b32.xlu2 %v5122_v14, %s4384_s14  ;;  %3067 = vrot.lane.b32.xlu0 %v5122_v14, %s4385_s29 }
0x13ce   :  { %2829 = vrot.lane.b32.xlu1 %v2631_v19, %s4382_s17  ;;  %3720 = vmatmul.msk.f32.vlgmr.msra.gmra.mxu3 %vm265_vm1, %v2631_v19 }
0x13cf   :  { %3731 = vmatpush.xpose.msk.msra.mxu3 %vm265_vm1, %v2964_v13 }
0x13d5   :  { %3093 = vrot.lane.b32.xlu2 %v2631_v19, %s4385_s29 }
0x13d6   :  { %2961 = vrot.lane.b32.xlu1 %v2631_v19, %s4384_s14 }
0x13de   :  { %3095 = vrot.lane.b32.xlu1 %v5128_v7, %s4385_s29 }
0x13e6   :  { %3065 = vrot.lane.b32.xlu1 %v2628_v17, %s4385_s29 }
0x141f   :  { %v2802_v20 = vpop.permute.xlu2 %2801 }
0x1420   :  { %3724 = vmatmul.msk.f32.vlgmr.msra.gmra.mxu0 %vm265_vm1, %v2802_v20 }
0x1427   :  { %v2936_v22 = vpop.permute.xlu2 %2935 }
0x1428   :  { %3729 = vmatpush.xpose.msk.msrb.mxu0 %vm265_vm1, %v2936_v22 }
0x142f   :  { %v3094_v52 = vpop.permute.xlu2 %3093 }
0x1437   :  { %v2934_v40 = vpop.permute.xlu0 %2933 }
0x1438   :  { %3730 = vmatmul.msk.f32.vlgmr.msrb.gmra.mxu0 %vm265_vm1, %v2934_v40 }
0x143f   :  { %v3068_v12 = vpop.permute.xlu0 %3067 }
0x1440   :  { %v2830_v24 = vpop.permute.xlu1 %2829  ;;  %3735 = vmatpush.xpose.msk.msra.mxu0 %vm265_vm1, %v3068_v12 }
0x1441   :  { %3726 = vmatmul.msk.f32.vlgmr.msrb.gmra.mxu3 %vm265_vm1, %v2830_v24 }
0x1448   :  { %v2962_v25 = vpop.permute.xlu1 %2961 }
0x1449   :  { %v2696_v27 = vpop.f32.mrf.mxu3  ;;  %3732 = vmatmul.msk.f32.vlgmr.msra.gmra.mxu3 %vm265_vm1, %v2962_v25 }
0x144a   :  { %v2725_v28 = vmul.f32 0.35355338, %v2696_v27 }
0x144c   :  { %v2727_v44 = vsel %vm265_vm1, %v2725_v28, -inf }
0x144d   :  { %2728 = vmax.xlane.f32.xlu2 %v2727_v44 }
0x1450   :  { %v3096_v29 = vpop.permute.xlu1 %3095 }
0x1451   :  { %v2722_v30 = vpop.f32.mrf.mxu3  ;;  %3737 = vmatpush.xpose.msk.msrb.mxu3 %vm265_vm1, %v3096_v29 }
0x1452   :  { %v2726_v31 = vmul.f32 0.35355338, %v2722_v30 }
0x1454   :  { %3738 = vmatmul.msk.f32.vlgmr.msrb.gmra.mxu3 %vm265_vm1, %v3094_v52  ;;  %v2730_v21 = vsel %vm265_vm1, %v2726_v31, -inf }
0x1455   :  { %2731 = vmax.xlane.f32.xlu0 %v2730_v21 }
0x1458   :  { %v3066_v23 = vpop.permute.xlu1 %3065 }
0x1459   :  { %3736 = vmatmul.msk.f32.vlgmr.msra.gmra.mxu0 %vm265_vm1, %v3066_v23 }
0x149d   :  { %v2826_v33 = vpop.f32.mrf.mxu0 }
0x149e   :  { %v2857_v34 = vmul.f32 0.35355338, %v2826_v33 }
0x14a0   :  { %v2859_v35 = vsel %vm265_vm1, %v2857_v34, -inf }
0x14a1   :  { %2860 = vmax.xlane.f32.xlu1 %v2859_v35 }
0x14b5   :  { %v2958_v36 = vpop.f32.mrf.mxu0 }
0x14b6   :  { %v2989_v38 = vmul.f32 0.35355338, %v2958_v36 }
0x14b8   :  { %v2991_v39 = vsel %vm265_vm1, %v2989_v38, -inf }
0x14b9   :  { %2992 = vmax.xlane.f32.xlu0 %v2991_v39 }
0x14c0   :  { %v2729_v32 = vpop.xlane.xlu2 %2728 }
0x14c1   :  { %v2733_v43 = vsub.f32 %v2725_v28, %v2729_v32 }
0x14c3   :  { %v2735_v16 = vmul.f32 1.442695, %v2733_v43 }
0x14c4   :  { %v2854_v41 = vpop.f32.mrf.mxu3 }
0x14c5   :  { %v2858_v42 = vmul.f32 0.35355338, %v2854_v41  ;;  %4056 = vpow2.f32 %v2735_v16 }
0x14c7   :  { %v2862_v8 = vsel %vm265_vm1, %v2858_v42, -inf }
0x14c8   :  { %2863 = vmax.xlane.f32.xlu2 %v2862_v8  ;;  %v2732_v47 = vpop.xlane.xlu0 %2731 }
0x14c9   :  { %v2734_v49 = vsub.f32 %v2726_v31, %v2732_v47 }
0x14cb   :  { %v5168_v50 = vpop.eup %4056  ;;  %v2737_v51 = vmul.f32 1.442695, %v2734_v49 }
0x14cc   :  { %v2986_v46 = vpop.f32.mrf.mxu3  ;;  %v2739_v56 = vsel %vm265_vm1, %v5168_v50, 0.0 }
0x14cd   :  { %v2990_v11 = vmul.f32 0.35355338, %v2986_v46  ;;  %4058 = vpow2.f32 %v2737_v51 }
0x14cf   :  { %v2994_v48 = vsel %vm265_vm1, %v2990_v11, -inf }
0x14d0   :  { %2995 = vmax.xlane.f32.xlu1 %v2994_v48 }
0x14d3   :  { %v4059_v60 = vpop.eup %4058 }
0x14d4   :  { %v2742_v61 = vsel %vm265_vm1, %v4059_v60, 0.0 }
0x14d6   :  { %v3090_v53 = vpop.f32.mrf.mxu0 }
0x14d7   :  { %v3121_v54 = vmul.f32 0.35355338, %v3090_v53  ;;  %v3118_v55 = vpop.f32.mrf.mxu3 }
0x14d8   :  { %v3122_v57 = vmul.f32 0.35355338, %v3118_v55  ;;  %2740 = vadd.xlane.f32.xlu1 %v2739_v56 }
0x14d9   :  { %v3123_v58 = vsel %vm265_vm1, %v3121_v54, -inf }
0x14da   :  { %3124 = vmax.xlane.f32.xlu2 %v3123_v58  ;;  %v3126_v59 = vsel %vm265_vm1, %v3122_v57, -inf }
0x14db   :  { %3127 = vmax.xlane.f32.xlu0 %v3126_v59 }
0x14e2   :  { %2743 = vadd.xlane.f32.xlu2 %v2742_v61 }
0x14f1   :  { %3885 = vrot.lane.b32.xlu1 %v3884_v62, %s4380_s9 }
0x14f9   :  { %3895 = vrot.lane.b32.xlu1 %v3884_v62, %s4381_s2 }
0x1501   :  { %3900 = vrot.lane.b32.xlu1 %v3884_v62, %s4383_s27 }
0x1514   :  { %v2861_v0 = vpop.xlane.xlu1 %2860 }
0x1515   :  { %v2865_v1 = vsub.f32 %v2857_v34, %v2861_v0 }
0x1517   :  { %v2867_v2 = vmul.f32 1.442695, %v2865_v1 }
0x1519   :  { %4060 = vpow2.f32 %v2867_v2 }
0x151f   :  { %v5180_v15 = vpop.eup %4060 }
0x1520   :  { %v2871_v4 = vsel %vm265_vm1, %v5180_v15, 0.0 }
0x1521   :  { %2872 = vadd.xlane.f32.xlu0 %v2871_v4 }
0x152c   :  { %v2993_v5 = vpop.xlane.xlu0 %2992 }
0x152d   :  { %v2997_v6 = vsub.f32 %v2989_v38, %v2993_v5 }
0x152f   :  { %v2999_v9 = vmul.f32 1.442695, %v2997_v6 }
0x1531   :  { %4062 = vpow2.f32 %v2999_v9 }
0x1537   :  { %v5184_v14 = vpop.eup %4062 }
0x1538   :  { %v3003_v7 = vsel %vm265_vm1, %v5184_v14, 0.0 }
0x1539   :  { %3004 = vadd.xlane.f32.xlu0 %v3003_v7 }
0x153b   :  { %v2864_v10 = vpop.xlane.xlu2 %2863 }
0x153c   :  { %v2866_v17 = vsub.f32 %v2858_v42, %v2864_v10 }
0x153e   :  { %v2869_v18 = vmul.f32 1.442695, %v2866_v17 }
0x1540   :  { %4064 = vpow2.f32 %v2869_v18 }
0x1543   :  { %v2996_v26 = vpop.xlane.xlu1 %2995 }
0x1544   :  { %v2998_v22 = vsub.f32 %v2990_v11, %v2996_v26  ;;  %v2668_v26 = vld [vmem:[#allocation11 + $0x28] sm:$0xff] }
0x1546   :  { %v4065_v19 = vpop.eup %4064  ;;  %v3001_v12 = vmul.f32 1.442695, %v2998_v22 }
0x1547   :  { %v2874_v37 = vsel %vm265_vm1, %v4065_v19, 0.0 }
0x1548   :  { %2875 = vadd.xlane.f32.xlu2 %v2874_v37  ;;  %v2669_v37 = vld [vmem:[#allocation11 + $0x30] sm:$0xff] }
0x154b   :  { %v2741_v27 = vpop.xlane.xlu1 %2740 }
0x154d   :  { %v3125_v13 = vpop.xlane.xlu2 %3124 }
0x154e   :  { %v3129_v20 = vsub.f32 %v3121_v54, %v3125_v13  ;;  %v3128_v24 = vpop.xlane.xlu0 %3127  ;;  %v2667_v13 = vld [vmem:[#allocation11 + $0x20] sm:$0xff] }
0x154f   :  { %v3130_v28 = vsub.f32 %v3122_v57, %v3128_v24 }
0x1550   :  { %v3131_v40 = vmul.f32 1.442695, %v3129_v20 }
0x1551   :  { %v3133_v30 = vmul.f32 1.442695, %v3130_v28 }
0x1552   :  { %4066 = vpow2.f32 %v3131_v40 }
0x1553   :  { %4068 = vpow2.f32 %v3001_v12 }
0x1554   :  { %4070 = vrcp.f32 %v2741_v27 }
0x1555   :  { %v2744_v44 = vpop.xlane.xlu2 %2743 }
0x1556   :  { %4072 = vrcp.f32 %v2744_v44 }
0x1557   :  { %4074 = vpow2.f32 %v3133_v30 }
0x1558   :  { %v4067_v25 = vpop.eup %4066 }
0x1559   :  { %v3135_v29 = vsel %vm265_vm1, %v4067_v25, 0.0  ;;  %v4069_v31 = vpop.eup %4068 }
0x155a   :  { %3136 = vadd.xlane.f32.xlu0 %v3135_v29  ;;  %v4071_v52 = vpop.eup %4070  ;;  %v3006_v21 = vsel %vm265_vm1, %v4069_v31, 0.0 }
0x155b   :  { %v2747_v36 = vmul.f32 %v4071_v52, %v5168_v50  ;;  %v3921_v52 = vld [vmem:[%s5326_s12 + $0x1] ss:$0 sm:$0xff] }
0x155c   :  { %v4073_v23 = vpop.eup %4072 }
0x155d   :  { %v2748_v38 = vmul.f32 %v4073_v23, %v4059_v60  ;;  %v4075_v39 = vpop.eup %4074 }
0x155e   :  { %v3138_v32 = vsel %vm265_vm1, %v4075_v39, 0.0 }
0x1560   :  { %3890 = vrot.lane.b32.xlu2 %v3884_v62, %s4379_s21 }
0x1562   :  { %3007 = vadd.xlane.f32.xlu0 %v3006_v21 }
0x1563   :  { %v3886_v33 = vpop.permute.xlu1 %3885 }
0x1564   :  { %v3888_v34 = vunpack.i.h.bf16 %v3886_v33  ;;  %v3887_v35 = vunpack.i.l.bf16 %v3886_v33 }
0x1566   :  { %2770 = vmatpush.msrb.mxu1 %v3887_v35  ;;  %2796 = vmatpush.msrb.mxu2 %v3888_v34 }
0x1567   :  { %3721 = vmatmul.msk.f32.vlgmr.msrb.gmra.mxu1 %vm265_vm1, %v2747_v36  ;;  %3722 = vmatmul.msk.f32.vlgmr.msrb.gmra.mxu2 %vm265_vm1, %v2748_v38 }
0x156a   :  { %3139 = vadd.xlane.f32.xlu0 %v3138_v32 }
0x156b   :  { %v3896_v42 = vpop.permute.xlu1 %3895 }
0x156c   :  { %v3898_v53 = vunpack.i.h.bf16 %v3896_v42  ;;  %v3897_v54 = vunpack.i.l.bf16 %v3896_v42 }
0x1573   :  { %v3901_v11 = vpop.permute.xlu1 %3900 }
0x1574   :  { %v3903_v55 = vunpack.i.h.bf16 %v3901_v11  ;;  %v3902_v56 = vunpack.i.l.bf16 %v3901_v11 }
0x1594   :  { %v2873_v41 = vpop.xlane.xlu0 %2872 }
0x1595   :  { %4076 = vrcp.f32 %v2873_v41 }
0x159b   :  { %v4077_v8 = vpop.eup %4076 }
0x159c   :  { %v2879_v50 = vmul.f32 %v4077_v8, %v5180_v15 }
0x15ac   :  { %v3005_v16 = vpop.xlane.xlu0 %3004 }
0x15bb   :  { %v2876_v43 = vpop.xlane.xlu2 %2875 }
0x15bc   :  { %4078 = vrcp.f32 %v2876_v43 }
0x15bd   :  { %4080 = vrcp.f32 %v3005_v16 }
0x15c2   :  { %v4079_v46 = vpop.eup %4078 }
0x15c3   :  { %v3891_v47 = vpop.permute.xlu2 %3890  ;;  %v2880_v51 = vmul.f32 %v4079_v46, %v4065_v19  ;;  %v4081_v57 = vpop.eup %4080  ;;  %v2670_v19 = vld [vmem:[#allocation11 + $0x38] sm:$0xff] }
0x15c4   :  { %v3893_v48 = vunpack.i.h.bf16 %v3891_v47  ;;  %v3892_v49 = vunpack.i.l.bf16 %v3891_v47  ;;  %v3011_v58 = vmul.f32 %v4081_v57, %v5184_v14  ;;  %3248 = vmatpush.msrb.mxu0 %v2670_v19 }
0x15c6   :  { %2902 = vmatpush.msra.mxu1 %v3892_v49  ;;  %2928 = vmatpush.msra.mxu2 %v3893_v48 }
0x15c7   :  { %3727 = vmatmul.msk.f32.vlgmr.msra.gmra.mxu1 %vm265_vm1, %v2879_v50  ;;  %3728 = vmatmul.msk.f32.vlgmr.msra.gmra.mxu2 %vm265_vm1, %v2880_v51 }
0x15c8   :  { %3034 = vmatpush.msrb.mxu1 %v3897_v54  ;;  %3060 = vmatpush.msrb.mxu2 %v3898_v53 }
0x15c9   :  { %3249 = vmatpush.msrb.mxu0 %v2669_v37 }
0x15ca   :  { %3166 = vmatpush.msra.mxu1 %v3902_v56  ;;  %3192 = vmatpush.msra.mxu2 %v3903_v55 }
0x15cb   :  { %3250 = vmatpush.msrb.mxu0 %v2668_v26 }
0x15cd   :  { %v3137_v59 = vpop.xlane.xlu0 %3136  ;;  %3251 = vmatpush.msrb.mxu0 %v2667_v13 }
0x15ce   :  { %4082 = vrcp.f32 %v3137_v59 }
0x15cf   :  { %3733 = vmatmul.msk.f32.vlgmr.msrb.gmra.mxu1 %vm265_vm1, %v3011_v58 }
0x15d4   :  { %v4083_v60 = vpop.eup %4082 }
0x15d5   :  { %v3143_v61 = vmul.f32 %v4083_v60, %v4067_v25  ;;  %v3008_v62 = vpop.xlane.xlu0 %3007  ;;  %v3922_v60 = vld [vmem:[%s5329_s15 + $0x1] ss:$0 sm:$0xff] }
0x15d6   :  { %4084 = vrcp.f32 %v3008_v62 }
0x15d7   :  { %3739 = vmatmul.msk.f32.vlgmr.msra.gmra.mxu1 %vm265_vm1, %v3143_v61 }
0x15dc   :  { %v4085_v0 = vpop.eup %4084 }
0x15dd   :  { %v3012_v1 = vmul.f32 %v4085_v0, %v4069_v31  ;;  %v3140_v2 = vpop.xlane.xlu0 %3139  ;;  %v3923_v0 = vld [vmem:[%s5330_s16 + $0x1] ss:$0 sm:$0xff] }
0x15de   :  { %4086 = vrcp.f32 %v3140_v2 }
0x15df   :  { %3734 = vmatmul.msk.f32.vlgmr.msrb.gmra.mxu2 %vm265_vm1, %v3012_v1 }
0x15e4   :  { %v4087_v15 = vpop.eup %4086  ;;  %v2772_v5 = vpop.f32.mrf.mxu1 }
0x15e5   :  { %v3144_v4 = vmul.f32 %v4087_v15, %v4075_v39 }
0x15e7   :  { %3740 = vmatmul.msk.f32.vlgmr.msra.gmra.mxu2 %vm265_vm1, %v3144_v4 }
0x15ea   :  { %v2798_v6 = vpop.f32.mrf.mxu2 }
0x1644   :  { %v2904_v9 = vpop.f32.mrf.mxu1 }
0x1645   :  { %3199 = vrot.lane.b32.xlu2 %v2904_v9, %s5366_s1 }
0x164a   :  { %v2930_v14 = vpop.f32.mrf.mxu2 }
0x164c   :  { %v3036_v7 = vpop.f32.mrf.mxu1 }
0x164d   :  { %3201 = vrot.lane.b32.xlu2 %v2930_v14, %s5366_s1  ;;  %3207 = vrot.lane.b32.xlu0 %v3036_v7, %s5358_s11 }
0x1654   :  { %v3168_v10 = vpop.f32.mrf.mxu1 }
0x1655   :  { %3215 = vrot.lane.b32.xlu1 %v3168_v10, %s5367_s3 }
0x1662   :  { %v3062_v17 = vpop.f32.mrf.mxu2 }
0x1663   :  { %3209 = vrot.lane.b32.xlu1 %v3062_v17, %s5358_s11 }
0x166a   :  { %v3194_v18 = vpop.f32.mrf.mxu2 }
0x166b   :  { %3217 = vrot.lane.b32.xlu2 %v3194_v18, %s5367_s3 }
0x169f   :  { %v3200_v20 = vpop.permute.xlu2 %3199 }
0x16a0   :  { %v3221_v40 = vsel %vm265_vm1, %v2772_v5, %v3200_v20  ;;  %v3349_v20 = vld [vmem:[#allocation16 + $0x38] sm:$0xff] }
0x16a1   :  { %3368 = vmatpush.msra.mxu3 %v3349_v20 }
0x16a7   :  { %v3202_v27 = vpop.permute.xlu2 %3201 }
0x16a8   :  { %v3222_v28 = vsel %vm265_vm1, %v2798_v6, %v3202_v27 }
0x16bf   :  { %v3208_v22 = vpop.permute.xlu0 %3207 }
0x16c0   :  { %v3223_v12 = vsel %vm815_vm2, %v3221_v40, %v3208_v22  ;;  %v3348_v22 = vld [vmem:[#allocation16 + $0x30] sm:$0xff]  ;;  %v3347_v40 = vld [vmem:[#allocation16 + $0x28] sm:$0xff] }
0x16c1   :  { %3369 = vmatpush.msra.mxu3 %v3348_v22 }
0x16c3   :  { %3370 = vmatpush.msra.mxu3 %v3347_v40 }
0x16c5   :  { %v3218_v29 = vpop.permute.xlu2 %3217 }
0x16c7   :  { %v3216_v24 = vpop.permute.xlu1 %3215 }
0x16c8   :  { %v3225_v25 = vsel %vm818_vm3, %v3223_v12, %v3216_v24  ;;  %v3346_v12 = vld [vmem:[#allocation16 + $0x20] sm:$0xff] }
0x16c9   :  { %3741 = vmatmul.msk.f32.vlgmr.msrb.gmra.mxu0 %vm227_vm0, %v3225_v25  ;;  %3371 = vmatpush.msra.mxu3 %v3346_v12 }
0x16d5   :  { %v3210_v44 = vpop.permute.xlu1 %3209 }
0x16d6   :  { %v3224_v30 = vsel %vm815_vm2, %v3222_v28, %v3210_v44 }
0x16d7   :  { %v3226_v31 = vsel %vm818_vm3, %v3224_v30, %v3218_v29 }
0x16d8   :  { %3742 = vmatmul.msk.f32.gmra.mxu0 %vm227_vm0, %v3226_v31 }
0x1746   :  { %v3253_v21 = vpop.f32.mrf.mxu0 }
0x1747   :  { %v3254_v23 = vadd.f32 %v3921_v52, %v3253_v21 }
0x1749   :  { %v3259_v33 = vadd.f32 %v3254_v23, %v5111_v63 }
0x174b   :  { %v3265_v34 = vsel %vm227_vm0, %v3259_v33, 0.0 }
0x174c   :  { %3266 = vadd.xlane.f32.xlu0 %v3265_v34 }
0x1755   :  { %v3256_v35 = vpop.f32.mrf.mxu0 }
0x1756   :  { %v3257_v36 = vadd.f32 %v3921_v52, %v3256_v35 }
0x1758   :  { %v3260_v38 = vadd.f32 %v3257_v36, %v5115_v3 }
0x175a   :  { %v3268_v39 = vsel %vm227_vm0, %v3260_v38, 0.0 }
0x175b   :  { %3269 = vadd.xlane.f32.xlu1 %v3268_v39 }
0x17bf   :  { %v3267_v32 = vpop.xlane.xlu0 %3266 }
0x17c0   :  { %v3271_v41 = vmul.f32 %v3267_v32, %v4714_v45 }
0x17c2   :  { %v3273_v42 = vsub.f32 %v3259_v33, %v3271_v41 }
0x17c4   :  { %v3275_v43 = vmul.f32 %v3273_v42, %v3273_v42 }
0x17c6   :  { %v3277_v8 = vsel %vm227_vm0, %v3275_v43, 0.0 }
0x17c7   :  { %3278 = vadd.xlane.f32.xlu2 %v3277_v8 }
0x17ce   :  { %v3270_v16 = vpop.xlane.xlu1 %3269 }
0x17cf   :  { %v3272_v63 = vmul.f32 %v3270_v16, %v4714_v45 }
0x17d1   :  { %v3274_v46 = vsub.f32 %v3260_v38, %v3272_v63 }
0x17d3   :  { %v3276_v47 = vmul.f32 %v3274_v46, %v3274_v46 }
0x17d5   :  { %v3280_v11 = vsel %vm227_vm0, %v3276_v47, 0.0 }
0x17d6   :  { %3281 = vadd.xlane.f32.xlu2 %v3280_v11 }
0x183a   :  { %v3279_v3 = vpop.xlane.xlu2 %3278 }
0x183b   :  { %v3283_v48 = vmul.f32 %v3279_v3, %v4714_v45 }
0x183d   :  { %v3285_v49 = vadd.f32 1e-05, %v3283_v48 }
0x183f   :  { %4088 = vrsqrt.f32 %v3285_v49  ;;  %vm3293_vm2 = vweird.f32 %v3285_v49 }
0x1845   :  { %v4089_v50 = vpop.eup %4088 }
0x1846   :  { %v3288_v51 = vmul.f32 %v4089_v50, %v3285_v49  ;;  %vm3294_vm1 = vweird.f32 %v4089_v50 }
0x1847   :  { %vm3295_vm3 = vmor %vm3293_vm2, %vm3294_vm1 }
0x1848   :  { %v3289_v53 = vmul.f32 %v4089_v50, %v3288_v51 }
0x1849   :  { %v3282_v54 = vpop.xlane.xlu2 %3281 }
0x184a   :  { %v3290_v55 = vmul.f32 0.5, %v3289_v53  ;;  %v3284_v56 = vmul.f32 %v3282_v54, %v4714_v45 }
0x184c   :  { %v3291_v57 = vsub.f32 1.5, %v3290_v55  ;;  %v3286_v58 = vadd.f32 1e-05, %v3284_v56 }
0x184e   :  { %v3292_v59 = vmul.f32 %v4089_v50, %v3291_v57  ;;  %4090 = vrsqrt.f32 %v3286_v58  ;;  %vm3303_vm10 = vweird.f32 %v3286_v58 }
0x1850   :  { %v3296_v61 = vsel %vm3295_vm3, %v4089_v50, %v3292_v59 }
0x1851   :  { %v3307_v62 = vmul.f32 %v3296_v61, %v3273_v42 }
0x1853   :  { %v3312_v1 = vmul.f32 %v3922_v60, %v3307_v62 }
0x1854   :  { %v4091_v2 = vpop.eup %4090 }
0x1855   :  { %v3298_v15 = vmul.f32 %v4091_v2, %v3286_v58  ;;  %v5237_v4 = vadd.f32 %v3923_v0, %v3312_v1  ;;  %vm3304_vm9 = vweird.f32 %v4091_v2 }
0x1856   :  { %vm3305_vm11 = vmor %vm3303_vm10, %vm3304_vm9 }
0x1857   :  { %v3299_v5 = vmul.f32 %v4091_v2, %v3298_v15  ;;  %v3319_v6 = vand.u32 2147483647, %v5237_v4 }
0x1859   :  { %v3300_v9 = vmul.f32 0.5, %v3299_v5  ;;  %v3321_v14 = vsel %vm227_vm0, %v3319_v6, -inf }
0x185a   :  { %3322 = vmax.xlane.f32.xlu0 %v3321_v14 }
0x185b   :  { %v3301_v7 = vsub.f32 1.5, %v3300_v9 }
0x185d   :  { %v3302_v10 = vmul.f32 %v4091_v2, %v3301_v7 }
0x185f   :  { %v3306_v17 = vsel %vm3305_vm11, %v4091_v2, %v3302_v10 }
0x1860   :  { %v3308_v18 = vmul.f32 %v3306_v17, %v3274_v46 }
0x1862   :  { %v3313_v19 = vmul.f32 %v3922_v60, %v3308_v18 }
0x1864   :  { %v5241_v37 = vadd.f32 %v3923_v0, %v3313_v19 }
0x1866   :  { %v3320_v26 = vand.u32 2147483647, %v5241_v37 }
0x1868   :  { %v3324_v13 = vsel %vm227_vm0, %v3320_v26, -inf }
0x1869   :  { %3325 = vmax.xlane.f32.xlu1 %v3324_v13 }
0x18cd   :  { %v3323_v24 = vpop.xlane.xlu0 %3322 }
0x18ce   :  { %v3327_v25 = vmax.f32 %v3323_v24, 1e-05 }
0x18d0   :  { %4092 = vrcp.f32 %v3327_v25  ;;  %v3341_v32 = vmul.f32 0.007874016, %v3327_v25 }
0x18d6   :  { %v4093_v27 = vpop.eup %4092 }
0x18d7   :  { %v3331_v28 = vmul.f32 127.0, %v4093_v27 }
0x18d9   :  { %v3333_v44 = vmul.f32 %v3331_v28, %v5237_v4 }
0x18db   :  { %v3792_v29 = vcvt.f32.s32 %v3333_v44  ;;  %v3790_v21 = vand.u32 2147483647, %v3333_v44  ;;  %v3795_v33 = vand.u32 2147483648, %v3333_v44 }
0x18dc   :  { %v3326_v30 = vpop.xlane.xlu1 %3325 }
0x18dd   :  { %v3793_v31 = vcvt.s32.f32 %v3792_v29  ;;  %v3328_v52 = vmax.f32 %v3326_v30, 1e-05  ;;  %vm3791_vm12 = vcmp.lt.f32.partialorder %v3790_v21, 8388608.0 }
0x18df   :  { %v3794_v23 = vand.u32 2147483647, %v3793_v31  ;;  %4094 = vrcp.f32 %v3328_v52  ;;  %v3342_v49 = vmul.f32 0.007874016, %v3328_v52 }
0x18e1   :  { %v3796_v34 = vor.u32 %v3795_v33, %v3794_v23 }
0x18e3   :  { %v3797_v35 = vsel %vm3791_vm12, %v3796_v34, %v3333_v44 }
0x18e4   :  { %v3337_v36 = vmax.f32 %v3797_v35, -128.0 }
0x18e5   :  { %v4095_v38 = vpop.eup %4094 }
0x18e6   :  { %v3339_v39 = vmin.f32 %v3337_v36, 127.0  ;;  %v3332_v41 = vmul.f32 127.0, %v4095_v38 }
0x18e8   :  { %v3343_v42 = vmul.f32 %v3341_v32, %v3339_v39  ;;  %v3334_v43 = vmul.f32 %v3332_v41, %v5241_v37 }
0x18ea   :  { %3745 = vmatmul.msk.f32.vlgmr.msra.gmra.mxu3 %vm227_vm0, %v3343_v42  ;;  %v3800_v8 = vcvt.f32.s32 %v3334_v43  ;;  %v3798_v63 = vand.u32 2147483647, %v3334_v43  ;;  %v3803_v47 = vand.u32 2147483648, %v3334_v43 }
0x18ec   :  { %v3801_v16 = vcvt.s32.f32 %v3800_v8  ;;  %vm3799_vm13 = vcmp.lt.f32.partialorder %v3798_v63, 8388608.0 }
0x18ee   :  { %v3802_v46 = vand.u32 2147483647, %v3801_v16 }
0x18f0   :  { %v3804_v11 = vor.u32 %v3803_v47, %v3802_v46 }
0x18f2   :  { %v3805_v3 = vsel %vm3799_vm13, %v3804_v11, %v3334_v43 }
0x18f3   :  { %v3338_v48 = vmax.f32 %v3805_v3, -128.0 }
0x18f5   :  { %v3340_v50 = vmin.f32 %v3338_v48, 127.0 }
0x18f7   :  { %v3344_v51 = vmul.f32 %v3342_v49, %v3340_v50 }
0x18f9   :  { %3746 = vmatmul.msk.f32.gmra.mxu3 %vm227_vm0, %v3344_v51 }
0x196d   :  { %v5249_v53 = vpop.f32.mrf.mxu3 }
0x196e   :  { %v5252_v54 = vmul.f32 0.70710677, %v5249_v53  ;;  %v3379_v11 = vmul.f32 0.5, %v5249_v53 }
0x1970   :  { %v3383_v55 = vand.u32 2147483647, %v5252_v54  ;;  %vm3449_vm3 = vcmp.lt.f32.partialorder %v5252_v54, 0.0 }
0x1972   :  { %v3385_v56 = vmul.f32 0.3275911, %v3383_v55  ;;  %v3437_v17 = vsub.f32 0.0, %v3383_v55 }
0x1974   :  { %v3387_v57 = vadd.f32 1.0, %v3385_v56  ;;  %v3439_v26 = vmul.f32 %v3437_v17, %v3383_v55  ;;  %v3747_v17 = vld [vmem:[%s5334_s20 + $0x40] sm:$0xff] }
0x1976   :  { %4096 = vrcp.f32 %v3387_v57  ;;  %v3400_v1 = vand.u32 2147483648, %v3387_v57  ;;  %v3398_v15 = vand.u32 2147483647, %v3387_v57  ;;  %vm3394_vm15 = vweird.f32 %v3387_v57 }
0x1977   :  { %v3441_v12 = vmul.f32 1.442695, %v3439_v26 }
0x1978   :  { %v3401_v14 = vor.u32 1.1754944e-38, %v3400_v1  ;;  %vm3399_vm6 = vcmp.eq.f32.partialorder %v3398_v15, 8.507059e+37 }
0x197c   :  { %v4097_v58 = vpop.eup %4096  ;;  %v5255_v59 = vpop.f32.mrf.mxu3 }
0x197d   :  { %v3390_v60 = vmul.f32 %v4097_v58, %v3387_v57  ;;  %v5258_v61 = vmul.f32 0.70710677, %v5255_v59  ;;  %vm3395_vm14 = vweird.f32 %v4097_v58  ;;  %v3380_v53 = vmul.f32 0.5, %v5255_v59  ;;  %v3752_v59 = vld [vmem:[%s5334_s20 + $0x68] sm:$0xff] }
0x197e   :  { %vm3396_vm5 = vmor %vm3394_vm15, %vm3395_vm14 }
0x197f   :  { %v3391_v62 = vsub.f32 1.0, %v3390_v60  ;;  %v3384_v0 = vand.u32 2147483647, %v5258_v61  ;;  %vm3450_vm9 = vcmp.lt.f32.partialorder %v5258_v61, 0.0  ;;  %v3751_v61 = vld [vmem:[%s5334_s20 + $0x60] sm:$0xff] }
0x1981   :  { %v3392_v2 = vmul.f32 %v4097_v58, %v3391_v62  ;;  %v3386_v5 = vmul.f32 0.3275911, %v3384_v0  ;;  %v3438_v34 = vsub.f32 0.0, %v3384_v0 }
0x1983   :  { %v3393_v6 = vadd.f32 %v4097_v58, %v3392_v2  ;;  %v3388_v9 = vadd.f32 1.0, %v3386_v5  ;;  %v3440_v41 = vmul.f32 %v3438_v34, %v3384_v0 }
0x1985   :  { %v3397_v7 = vsel %vm3396_vm5, %v4097_v58, %v3393_v6  ;;  %4098 = vrcp.f32 %v3388_v9  ;;  %v3415_v27 = vand.u32 2147483648, %v3388_v9  ;;  %v3413_v44 = vand.u32 2147483647, %v3388_v9  ;;  %v3754_v6 = vld [vmem:[%s5334_s20 + $0x78] sm:$0xff] }
0x1986   :  { %v3402_v10 = vsel %vm3399_vm6, %v3401_v14, %v3397_v7  ;;  %4100 = vpow2.f32 %v3441_v12  ;;  %vm3409_vm8 = vweird.f32 %v3388_v9  ;;  %v3443_v63 = vmul.f32 1.442695, %v3440_v41  ;;  %3508 = vmatpush.msrb.mxu1 %v3754_v6  ;;  %v3750_v14 = vld [vmem:[%s5334_s20 + $0x58] sm:$0xff]  ;;  %v3749_v7 = vld [vmem:[%s5334_s20 + $0x50] sm:$0xff] }
0x1987   :  { %v3419_v18 = vmul.f32 1.0614054, %v3402_v10  ;;  %v3416_v52 = vor.u32 1.1754944e-38, %v3415_v27  ;;  %vm3414_vm2 = vcmp.eq.f32.partialorder %v3413_v44, 8.507059e+37 }
0x1988   :  { %4102 = vpow2.f32 %v3443_v63 }
0x1989   :  { %v3421_v19 = vadd.f32 -1.4531521, %v3419_v18 }
0x198b   :  { %v4099_v13 = vpop.eup %4098  ;;  %v3423_v20 = vmul.f32 %v3421_v19, %v3402_v10 }
0x198c   :  { %v3405_v22 = vmul.f32 %v4099_v13, %v3388_v9  ;;  %vm3410_vm7 = vweird.f32 %v4099_v13  ;;  %v4101_v38 = vpop.eup %4100  ;;  %v3753_v9 = vld [vmem:[%s5334_s20 + $0x70] sm:$0xff] }
0x198d   :  { %v3425_v40 = vadd.f32 1.4214138, %v3423_v20  ;;  %vm3411_vm1 = vmor %vm3409_vm8, %vm3410_vm7  ;;  %3509 = vmatpush.msrb.mxu1 %v3753_v9 }
0x198e   :  { %v3406_v24 = vsub.f32 1.0, %v3405_v22  ;;  %v4103_v58 = vpop.eup %4102 }
0x198f   :  { %v3427_v25 = vmul.f32 %v3425_v40, %v3402_v10  ;;  %3510 = vmatpush.msrb.mxu1 %v3752_v59 }
0x1990   :  { %v3407_v28 = vmul.f32 %v4099_v13, %v3406_v24 }
0x1991   :  { %v3429_v29 = vadd.f32 -0.28449672, %v3427_v25  ;;  %3511 = vmatpush.msrb.mxu1 %v3751_v61 }
0x1992   :  { %v3408_v30 = vadd.f32 %v4099_v13, %v3407_v28 }
0x1993   :  { %v3431_v31 = vmul.f32 %v3429_v29, %v3402_v10  ;;  %3512 = vmatpush.msrb.mxu1 %v3750_v14 }
0x1994   :  { %v3412_v21 = vsel %vm3411_vm1, %v4099_v13, %v3408_v30 }
0x1995   :  { %v3433_v23 = vadd.f32 0.2548296, %v3431_v31  ;;  %v3417_v33 = vsel %vm3414_vm2, %v3416_v52, %v3412_v21  ;;  %3513 = vmatpush.msrb.mxu1 %v3749_v7  ;;  %v3924_v7 = vld [vmem:[#allocation14 + $0x1] ss:$0 sm:$0xff] }
0x1996   :  { %v3420_v35 = vmul.f32 1.0614054, %v3417_v33 }
0x1997   :  { %v3435_v36 = vmul.f32 %v3433_v23, %v3402_v10  ;;  %v3748_v10 = vld [vmem:[%s5334_s20 + $0x48] sm:$0xff] }
0x1998   :  { %v3422_v39 = vadd.f32 -1.4531521, %v3420_v35  ;;  %3514 = vmatpush.msrb.mxu1 %v3748_v10 }
0x1999   :  { %v3445_v32 = vmul.f32 %v4101_v38, %v3435_v36 }
0x199a   :  { %v3424_v42 = vmul.f32 %v3422_v39, %v3417_v33  ;;  %3515 = vmatpush.msrb.mxu1 %v3747_v17 }
0x199b   :  { %v3447_v43 = vsub.f32 1.0, %v3445_v32 }
0x199c   :  { %v3426_v8 = vadd.f32 1.4214138, %v3424_v42 }
0x199d   :  { %v3451_v16 = vsub.f32 0.0, %v3447_v43 }
0x199e   :  { %v3428_v46 = vmul.f32 %v3426_v8, %v3417_v33 }
0x199f   :  { %v3453_v47 = vsel %vm3449_vm3, %v3451_v16, %v3447_v43 }
0x19a0   :  { %v3455_v3 = vadd.f32 1.0, %v3453_v47  ;;  %v3430_v48 = vadd.f32 -0.28449672, %v3428_v46 }
0x19a2   :  { %v3457_v49 = vmul.f32 %v3455_v3, %v3379_v11  ;;  %v3432_v50 = vmul.f32 %v3430_v48, %v3417_v33 }
0x19a4   :  { %v3434_v51 = vadd.f32 0.2548296, %v3432_v50  ;;  %v3459_v55 = vand.u32 2147483647, %v3457_v49 }
0x19a6   :  { %v3436_v56 = vmul.f32 %v3434_v51, %v3417_v33  ;;  %v3461_v57 = vsel %vm1782_vm4, %v3459_v55, -inf }
0x19a7   :  { %3462 = vmax.xlane.f32.xlu2 %v3461_v57 }
0x19a8   :  { %v3446_v60 = vmul.f32 %v4103_v58, %v3436_v56 }
0x19aa   :  { %v3448_v62 = vsub.f32 1.0, %v3446_v60 }
0x19ac   :  { %v3452_v0 = vsub.f32 0.0, %v3448_v62 }
0x19ae   :  { %v3454_v54 = vsel %vm3450_vm9, %v3452_v0, %v3448_v62 }
0x19af   :  { %v3456_v1 = vadd.f32 1.0, %v3454_v54 }
0x19b1   :  { %v3458_v2 = vmul.f32 %v3456_v1, %v3380_v53 }
0x19b3   :  { %v3460_v15 = vand.u32 2147483647, %v3458_v2 }
0x19b5   :  { %v3464_v5 = vsel %vm1782_vm4, %v3460_v15, -inf }
0x19b6   :  { %3465 = vmax.xlane.f32.xlu0 %v3464_v5 }
0x1a1a   :  { %v3463_v18 = vpop.xlane.xlu2 %3462 }
0x1a1b   :  { %v3467_v19 = vmax.f32 %v3463_v18, 1e-05  ;;  %v3925_v18 = vld [vmem:[%s5332_s18 + $0x1] ss:$0 sm:$0xff]  ;;  %s5368_s18 = sld [smem:[#allocation30_spill]] }
0x1a1d   :  { %4104 = vrcp.f32 %v3467_v19  ;;  %v3481_v21 = vmul.f32 0.007874016, %v3467_v19 }
0x1a21   :  { %s3589_s24 = sshll.u32 %s5368_s18, 4  ;;  %s3590_s24 = int_to_ptr.hbm [resolvable:$true] %s3589_s24 }
0x1a23   :  { %v4105_v26 = vpop.eup %4104 }
0x1a24   :  { %v3471_v13 = vmul.f32 127.0, %v4105_v26 }
0x1a26   :  { %v3473_v20 = vmul.f32 %v3471_v13, %v3457_v49 }
0x1a28   :  { %v3808_v22 = vcvt.f32.s32 %v3473_v20  ;;  %v3806_v25 = vand.u32 2147483647, %v3473_v20  ;;  %v3811_v28 = vand.u32 2147483648, %v3473_v20 }
0x1a29   :  { %v3466_v40 = vpop.xlane.xlu0 %3465 }
0x1a2a   :  { %v3809_v12 = vcvt.s32.f32 %v3808_v22  ;;  %v3468_v24 = vmax.f32 %v3466_v40, 1e-05  ;;  %vm3807_vm10 = vcmp.lt.f32.partialorder %v3806_v25, 8388608.0 }
0x1a2c   :  { %v3810_v27 = vand.u32 2147483647, %v3809_v12  ;;  %4106 = vrcp.f32 %v3468_v24  ;;  %v3482_v8 = vmul.f32 0.007874016, %v3468_v24 }
0x1a2e   :  { %v3812_v44 = vor.u32 %v3811_v28, %v3810_v27 }
0x1a30   :  { %v3813_v29 = vsel %vm3807_vm10, %v3812_v44, %v3473_v20 }
0x1a31   :  { %v3477_v30 = vmax.f32 %v3813_v29, -128.0 }
0x1a32   :  { %v4107_v31 = vpop.eup %4106 }
0x1a33   :  { %v3479_v52 = vmin.f32 %v3477_v30, 127.0  ;;  %v3472_v23 = vmul.f32 127.0, %v4107_v31 }
0x1a35   :  { %v3483_v33 = vmul.f32 %v3481_v21, %v3479_v52  ;;  %v3474_v34 = vmul.f32 %v3472_v23, %v3458_v2 }
0x1a37   :  { %3755 = vmatmul.msk.f32.vlgmr.msrb.gmra.mxu1 %vm1782_vm4, %v3483_v33  ;;  %v3816_v35 = vcvt.f32.s32 %v3474_v34  ;;  %v3814_v38 = vand.u32 2147483647, %v3474_v34  ;;  %v3819_v32 = vand.u32 2147483648, %v3474_v34 }
0x1a39   :  { %v3817_v36 = vcvt.s32.f32 %v3816_v35  ;;  %vm3815_vm11 = vcmp.lt.f32.partialorder %v3814_v38, 8388608.0 }
0x1a3b   :  { %v3818_v39 = vand.u32 2147483647, %v3817_v36 }
0x1a3d   :  { %v3820_v41 = vor.u32 %v3819_v32, %v3818_v39 }
0x1a3f   :  { %v3821_v42 = vsel %vm3815_vm11, %v3820_v41, %v3474_v34 }
0x1a40   :  { %v3478_v43 = vmax.f32 %v3821_v42, -128.0 }
0x1a42   :  { %v3480_v16 = vmin.f32 %v3478_v43, 127.0 }
0x1a44   :  { %v3484_v63 = vmul.f32 %v3482_v8, %v3480_v16 }
0x1a46   :  { %3756 = vmatmul.msk.f32.gmra.mxu1 %vm1782_vm4, %v3484_v63 }
0x1ab4   :  { %v3517_v46 = vpop.f32.mrf.mxu1 }
0x1ab5   :  { %v3518_v47 = vadd.f32 %v3517_v46, %v5237_v4 }
0x1ab7   :  { %v3527_v11 = vsel %vm227_vm0, %v3518_v47, 0.0 }
0x1ab8   :  { %3528 = vadd.xlane.f32.xlu1 %v3527_v11 }
0x1ac3   :  { %v3520_v3 = vpop.f32.mrf.mxu1 }
0x1ac4   :  { %v3521_v48 = vadd.f32 %v3520_v3, %v5241_v37 }
0x1ac6   :  { %v3530_v49 = vsel %vm227_vm0, %v3521_v48, 0.0 }
0x1ac7   :  { %3531 = vadd.xlane.f32.xlu2 %v3530_v49 }
0x1b2b   :  { %v3529_v50 = vpop.xlane.xlu1 %3528 }
0x1b2c   :  { %v3533_v51 = vmul.f32 %v3529_v50, %v4714_v45 }
0x1b2e   :  { %v3535_v55 = vsub.f32 %v3518_v47, %v3533_v51 }
0x1b30   :  { %v3537_v56 = vmul.f32 %v3535_v55, %v3535_v55 }
0x1b32   :  { %v3539_v57 = vsel %vm227_vm0, %v3537_v56, 0.0 }
0x1b33   :  { %3540 = vadd.xlane.f32.xlu0 %v3539_v57 }
0x1b3a   :  { %v3532_v58 = vpop.xlane.xlu2 %3531 }
0x1b3b   :  { %v3534_v4 = vmul.f32 %v3532_v58, %v4714_v45 }
0x1b3d   :  { %v3536_v60 = vsub.f32 %v3521_v48, %v3534_v4 }
0x1b3f   :  { %v3538_v62 = vmul.f32 %v3536_v60, %v3536_v60 }
0x1b41   :  { %v3542_v0 = vsel %vm227_vm0, %v3538_v62, 0.0 }
0x1b42   :  { %3543 = vadd.xlane.f32.xlu1 %v3542_v0 }
0x1ba6   :  { %v3541_v37 = vpop.xlane.xlu0 %3540 }
0x1ba7   :  { %v3545_v54 = vmul.f32 %v3541_v37, %v4714_v45 }
0x1ba9   :  { %v3547_v53 = vadd.f32 1e-05, %v3545_v54 }
0x1bab   :  { %4108 = vrsqrt.f32 %v3547_v53  ;;  %vm3555_vm12 = vweird.f32 %v3547_v53 }
0x1bb1   :  { %v4109_v1 = vpop.eup %4108 }
0x1bb2   :  { %v3550_v2 = vmul.f32 %v4109_v1, %v3547_v53  ;;  %vm3556_vm4 = vweird.f32 %v4109_v1 }
0x1bb3   :  { %vm3557_vm13 = vmor %vm3555_vm12, %vm3556_vm4 }
0x1bb4   :  { %v3551_v15 = vmul.f32 %v4109_v1, %v3550_v2 }
0x1bb5   :  { %v3544_v5 = vpop.xlane.xlu1 %3543 }
0x1bb6   :  { %v3552_v6 = vmul.f32 0.5, %v3551_v15  ;;  %v3546_v9 = vmul.f32 %v3544_v5, %v4714_v45 }
0x1bb8   :  { %v3553_v59 = vsub.f32 1.5, %v3552_v6  ;;  %v3548_v61 = vadd.f32 1e-05, %v3546_v9 }
0x1bba   :  { %v3554_v14 = vmul.f32 %v4109_v1, %v3553_v59  ;;  %4110 = vrsqrt.f32 %v3548_v61  ;;  %vm3565_vm15 = vweird.f32 %v3548_v61 }
0x1bbc   :  { %v3558_v10 = vsel %vm3557_vm13, %v4109_v1, %v3554_v14 }
0x1bbd   :  { %v3569_v17 = vmul.f32 %v3558_v10, %v3535_v55 }
0x1bbf   :  { %v3574_v19 = vmul.f32 %v3924_v7, %v3569_v17 }
0x1bc0   :  { %v4111_v26 = vpop.eup %4110 }
0x1bc1   :  { %v3560_v13 = vmul.f32 %v4111_v26, %v3548_v61  ;;  %v3579_v20 = vadd.f32 %v3925_v18, %v3574_v19  ;;  %vm3566_vm14 = vweird.f32 %v4111_v26 }
0x1bc2   :  { %vm3567_vm5 = vmor %vm3565_vm15, %vm3566_vm14 }
0x1bc3   :  { %v3561_v22 = vmul.f32 %v4111_v26, %v3560_v13  ;;  %3581 = vst.msk [vmem:[#allocation17] sm:$0xff] %vm227_vm0, %v3579_v20 }
0x1bc5   :  { %v3562_v45 = vmul.f32 0.5, %v3561_v22 }
0x1bc7   :  { %v3563_v40 = vsub.f32 1.5, %v3562_v45 }
0x1bc9   :  { %v3564_v12 = vmul.f32 %v4111_v26, %v3563_v40 }
0x1bcb   :  { %v3568_v24 = vsel %vm3567_vm5, %v4111_v26, %v3564_v12 }
0x1bcc   :  { %v3570_v25 = vmul.f32 %v3568_v24, %v3536_v60 }
0x1bce   :  { %v3575_v27 = vmul.f32 %v3924_v7, %v3570_v25 }
0x1bd0   :  { %v3580_v28 = vadd.f32 %v3925_v18, %v3575_v27 }
0x1bd2   :  { %3582 = vst.msk [vmem:[#allocation17 + $0x8] sm:$0xff] %vm227_vm0, %v3580_v28 }
0x1bd3   :  { %3595 = dma.vmem_to_hbm [thread:$0]  %s3588_s7, 256, %s3590_s24, [#allocation4], %s5369_s10, %s5369_s10, %s5366_s1  }
0x1bd4   :  { %4364 = dma.done.wait [#allocation4], 256  }
0x1bd5   :  { %4365 = vsyncadd [#allocation4], 4294967040 }
0x1bd6   :  { %3600 = vsyncpa [#allocation3], 1 }
0x1bd7   :  { %3601 = vsyncpa [#allocation6], 1 }
0x1bd8   :  { %3602 = vsyncpa [#allocation9], 1 }
0x1bd9   :  { %3603 = vsyncpa [#allocation12], 1 }
0x1bda   :  { %3604 = vsyncpa [#allocation15], 1 }
0x1bdb   :  { %3605 = vsyncpa [#allocation4], 1 }

</bundles_post_ra>
